<compile_context>
chip_gen: v7x
topology: tpu7x:2x2x1
jax: 0.10.0
libtpu: 0.0.40
codegen_flags: <defaults>
</compile_context>

<pallas_src>
import numpy as np
import jax
import jax.numpy as jnp
from jax import lax
from jax.experimental import pallas as pl
from jax.experimental.pallas import tpu as pltpu


def make_gnnreg_kernel(num_edges, num_nodes):
    f32 = jnp.float32
    bf16 = jnp.bfloat16

    def kernel(src_ref, dst_ref, batch_ref,              # SMEM int32 indices
               x_ref, w0_ref, b0_ref,                     # lin0
               ea_ref, wt_ref, bt_ref,                    # transformation_layer
               w1_ref, b1_ref, w2_ref, b2_ref,            # gine_nn
               wf1_ref, bf1_ref,                          # fc1
               wf2x_ref, wf2t_ref, bf2_ref,               # fc2 (split for cat fold)
               wf3_ref, bf3_ref,                          # fc3
               temp_ref,                                  # data.T  [B_pad, 1]
               out_ref,                                   # [B_pad, 128] lane-dense
               h_ref, e_ref, aggr_ref, z_ref, g_ref):     # VMEM scratch
        # ---- h = relu(lin0(x))  (bf16 operands, f32 accumulate) ----
        h_ref[...] = jnp.maximum(
            jnp.dot(x_ref[...], w0_ref[...], preferred_element_type=f32)
            + b0_ref[...], 0.0)

        # ---- edge embedding e = transformation_layer(edge_attr) ----
        e_ref[...] = (jnp.dot(ea_ref[...], wt_ref[...], preferred_element_type=f32)
                      + bt_ref[...])

        # ---- GINEConv (eps=0): msg = relu(h[src] + e); aggr = scatter_add @ dst ----
        aggr_ref[...] = jnp.zeros_like(aggr_ref)

        def edge_body(eidx, carry):
            s = src_ref[eidx]
            d = dst_ref[eidx]
            msg = jnp.maximum(h_ref[pl.ds(s, 1), :] + e_ref[pl.ds(eidx, 1), :], 0.0)
            aggr_ref[pl.ds(d, 1), :] = aggr_ref[pl.ds(d, 1), :] + msg
            return carry

        lax.fori_loop(0, num_edges, edge_body, 0, unroll=True)

        # ---- gine_nn: Linear(D,2D) -> ReLU -> Linear(2D,D), then outer ReLU ----
        z = h_ref[...] + aggr_ref[...]                    # (1 + eps) * h + aggr
        z = jnp.maximum(
            jnp.dot(z.astype(bf16), w1_ref[...], preferred_element_type=f32)
            + b1_ref[...], 0.0)
        z = jnp.dot(z.astype(bf16), w2_ref[...], preferred_element_type=f32) + b2_ref[...]
        z_ref[...] = jnp.maximum(z, 0.0)

        # ---- scatter_add pooling over data.batch -> per-graph features ----
        g_ref[...] = jnp.zeros_like(g_ref)

        def pool_body(nidx, carry):
            b = batch_ref[nidx]
            g_ref[pl.ds(b, 1), :] = g_ref[pl.ds(b, 1), :] + z_ref[pl.ds(nidx, 1), :]
            return carry

        lax.fori_loop(0, num_nodes, pool_body, 0, unroll=True)

        # ---- fc1 + relu ----
        g = jnp.maximum(
            jnp.dot(g_ref[...].astype(bf16), wf1_ref[...], preferred_element_type=f32)
            + bf1_ref[...], 0.0)

        # ---- cat([g, 10*T]) @ Wf2 folded: g @ Wf2[:D] + (10*T) * Wf2[D:] ----
        t = 10.0 * temp_ref[...]                          # [B_pad, 1] f32 (exact path)
        g = jnp.maximum(
            jnp.dot(g.astype(bf16), wf2x_ref[...], preferred_element_type=f32)
            + t * wf2t_ref[...] + bf2_ref[...], 0.0)

        # ---- fc3: lane-dense padded output; real scalar in column 0 ----
        out_ref[...] = (jnp.dot(g.astype(bf16), wf3_ref[...], preferred_element_type=f32)
                        + bf3_ref[...])

    return kernel


def gnnreg_pallas(src_idx, dst_idx, batch, vmem_inputs, *, num_edges, num_nodes,
                  b_pad, d_pad):
    kernel = make_gnnreg_kernel(num_edges, num_nodes)
    smem = pl.BlockSpec(memory_space=pltpu.MemorySpace.SMEM)
    vmem = pl.BlockSpec(memory_space=pltpu.MemorySpace.VMEM)

    n_pad = vmem_inputs[0].shape[0]      # padded node rows (x)
    e_pad = vmem_inputs[3].shape[0]      # padded edge rows (edge_attr)
    hid_pad = vmem_inputs[6].shape[1]    # padded hidden dim (w1)

    flops = 2 * (n_pad * d_pad * d_pad          # lin0
                 + e_pad * d_pad * d_pad        # edge transform
                 + n_pad * d_pad * hid_pad      # gine_nn[0]
                 + n_pad * hid_pad * d_pad      # gine_nn[2]
                 + 3 * b_pad * d_pad * d_pad)   # fc1, fc2, fc3
    all_args = (src_idx, dst_idx, batch) + tuple(vmem_inputs)
    bytes_accessed = sum(int(np.prod(a.shape)) * np.dtype(a.dtype).itemsize
                         for a in all_args) + b_pad * d_pad * 4

    return pl.pallas_call(
        kernel,
        out_shape=jax.ShapeDtypeStruct((b_pad, d_pad), jnp.float32),
        in_specs=[smem, smem, smem] + [vmem] * len(vmem_inputs),
        out_specs=vmem,
        scratch_shapes=[
            pltpu.VMEM((n_pad, d_pad), jnp.float32),   # h
            pltpu.VMEM((e_pad, d_pad), jnp.float32),   # edge embeddings
            pltpu.VMEM((n_pad, d_pad), jnp.float32),   # aggr
            pltpu.VMEM((n_pad, d_pad), jnp.float32),   # z (post gine_nn)
            pltpu.VMEM((b_pad, d_pad), jnp.float32),   # pooled g
        ],
        compiler_params=pltpu.CompilerParams(vmem_limit_bytes=32 * 1024 * 1024),
        cost_estimate=pl.CostEstimate(flops=flops, transcendentals=0,
                                      bytes_accessed=bytes_accessed),
    )(src_idx, dst_idx, batch, *vmem_inputs)


def gnnreg_reference(x, w0, b0, ea, wt, bt, src_idx, dst_idx, batch, n_graphs,
                     w1, b1, w2, b2, wf1, bf1, wf2x, wf2t, bf2, wf3, bf3, temp):
    # Pure-JAX reference mirroring the kernel's bf16 matmul operands / f32 accumulate.
    f32, bf16 = jnp.float32, jnp.bfloat16
    dot = lambda a, b: jnp.dot(a.astype(bf16), b.astype(bf16), preferred_element_type=f32)
    h = jnp.maximum(dot(x, w0) + b0, 0.0)
    e = dot(ea, wt) + bt
    msg = jnp.maximum(h[src_idx] + e, 0.0)
    aggr = jnp.zeros_like(h).at[dst_idx].add(msg)
    z = h + aggr
    z = jnp.maximum(dot(z, w1) + b1, 0.0)
    z = jnp.maximum(dot(z, w2) + b2, 0.0)
    g = jnp.zeros((n_graphs, z.shape[1]), f32).at[batch].add(z)
    g = jnp.maximum(dot(g, wf1) + bf1, 0.0)
    t = 10.0 * temp
    g = jnp.maximum(dot(g, wf2x) + t * wf2t + bf2, 0.0)
    return dot(g, wf3) + bf3


if __name__ == "__main__":
    # small synthetic problem sizes
    DIM = 32            # args.dim
    NUM_FEAT = 8        # dataset.num_features
    NUM_EDGE_FEAT = 6   # dataset.num_edge_features
    B = 2               # graphs in batch
    NODES_PER_GRAPH = 8
    N = B * NODES_PER_GRAPH

    D_PAD = 128
    HID_PAD = 256

    def rup(v, m):
        return ((v + m - 1) // m) * m

    # ring edges (both directions) inside each graph
    src_idx, dst_idx = [], []
    for g in range(B):
        off = g * NODES_PER_GRAPH
        for i in range(NODES_PER_GRAPH):
            a, b = off + i, off + (i + 1) % NODES_PER_GRAPH
            src_idx += [a, b]
            dst_idx += [b, a]
    src_idx = np.asarray(src_idx, np.int32)
    dst_idx = np.asarray(dst_idx, np.int32)
    E = src_idx.shape[0]
    batch_vec = np.repeat(np.arange(B), NODES_PER_GRAPH).astype(np.int32)

    N_PAD, E_PAD, B_PAD = rup(N, 8), rup(E, 8), rup(B, 8)

    key = jax.random.PRNGKey(0)
    ks = jax.random.split(key, 16)
    f32, bf16 = jnp.float32, jnp.bfloat16

    # data
    x = jax.random.normal(ks[0], (N, NUM_FEAT), f32)
    edge_attr = jax.random.normal(ks[1], (E, NUM_EDGE_FEAT), f32)
    temp = jax.random.normal(ks[2], (B, 1), f32)          # data.T, one scalar per graph

    # deterministic synthetic parameters (stored as [in, out]; y = x @ W + b)
    def lin(k, fan_in, fan_out):
        kw, kb = jax.random.split(k)
        w = jax.random.normal(kw, (fan_in, fan_out), f32) * 0.1
        b = jax.random.normal(kb, (1, fan_out), f32) * 0.1
        return w, b

    w0, b0 = lin(ks[3], NUM_FEAT, DIM)               # lin0
    wt, bt = lin(ks[4], NUM_EDGE_FEAT, DIM)          # transformation_layer
    w1, b1 = lin(ks[5], DIM, 2 * DIM)                # gine_nn[0]
    w2, b2 = lin(ks[6], 2 * DIM, DIM)                # gine_nn[2]
    wf1, bf1 = lin(ks[7], DIM, DIM)                  # fc1
    wf2, bf2 = lin(ks[8], DIM + 1, DIM)              # fc2
    wf3, bf3 = lin(ks[9], DIM, 1)                    # fc3
    wf2x, wf2t = wf2[:DIM, :], wf2[DIM:, :]          # split for the in-kernel cat fold

    # ---- zero-pad to lane/sublane-friendly shapes; bf16 for MXU operands ----
    def pad2(a, rows, cols):
        return jnp.pad(a, ((0, rows - a.shape[0]), (0, cols - a.shape[1])))

    vmem_inputs = (
        pad2(x, N_PAD, D_PAD).astype(bf16),          # x
        pad2(w0, D_PAD, D_PAD).astype(bf16), pad2(b0, 1, D_PAD),
        pad2(edge_attr, E_PAD, D_PAD).astype(bf16),  # edge_attr
        pad2(wt, D_PAD, D_PAD).astype(bf16), pad2(bt, 1, D_PAD),
        pad2(w1, D_PAD, HID_PAD).astype(bf16), pad2(b1, 1, HID_PAD),
        pad2(w2, HID_PAD, D_PAD).astype(bf16), pad2(b2, 1, D_PAD),
        pad2(wf1, D_PAD, D_PAD).astype(bf16), pad2(bf1, 1, D_PAD),
        pad2(wf2x, D_PAD, D_PAD).astype(bf16),
        pad2(wf2t, 1, D_PAD),                        # f32: elementwise (exact) path
        pad2(bf2, 1, D_PAD),
        pad2(wf3, D_PAD, D_PAD).astype(bf16), pad2(bf3, 1, D_PAD),
        pad2(temp, B_PAD, 1),                        # data.T
    )

    src_s = jnp.asarray(src_idx, jnp.int32)
    dst_s = jnp.asarray(dst_idx, jnp.int32)
    batch_s = jnp.asarray(batch_vec, jnp.int32)

    out_padded = gnnreg_pallas(src_s, dst_s, batch_s, vmem_inputs,
                               num_edges=E, num_nodes=N, b_pad=B_PAD, d_pad=D_PAD)
    out_padded = jax.block_until_ready(out_padded)
    out = np.asarray(out_padded)[:B, :1]             # lane-dense slab -> real [B, 1]

    ref = gnnreg_reference(x, w0, b0, edge_attr, wt, bt, src_idx, dst_idx,
                           batch_vec, B, w1, b1, w2, b2, wf1, bf1,
                           wf2x, wf2t, bf2, wf3, bf3, temp)
    np.testing.assert_allclose(out, np.asarray(ref), rtol=1e-2, atol=1e-2)

    print("KERNEL_OK")
</pallas_src>

<mosaic_0001>
module attributes {stable_mosaic.version = 11 : i64} {
  func.func @kernel(%arg0: memref<32xi32, #tpu.memory_space<smem>>, %arg1: memref<32xi32, #tpu.memory_space<smem>>, %arg2: memref<16xi32, #tpu.memory_space<smem>>, %arg3: memref<16x128xbf16, #tpu.memory_space<vmem>>, %arg4: memref<128x128xbf16, #tpu.memory_space<vmem>>, %arg5: memref<1x128xf32, #tpu.memory_space<vmem>>, %arg6: memref<32x128xbf16, #tpu.memory_space<vmem>>, %arg7: memref<128x128xbf16, #tpu.memory_space<vmem>>, %arg8: memref<1x128xf32, #tpu.memory_space<vmem>>, %arg9: memref<128x256xbf16, #tpu.memory_space<vmem>>, %arg10: memref<1x256xf32, #tpu.memory_space<vmem>>, %arg11: memref<256x128xbf16, #tpu.memory_space<vmem>>, %arg12: memref<1x128xf32, #tpu.memory_space<vmem>>, %arg13: memref<128x128xbf16, #tpu.memory_space<vmem>>, %arg14: memref<1x128xf32, #tpu.memory_space<vmem>>, %arg15: memref<128x128xbf16, #tpu.memory_space<vmem>>, %arg16: memref<1x128xf32, #tpu.memory_space<vmem>>, %arg17: memref<1x128xf32, #tpu.memory_space<vmem>>, %arg18: memref<128x128xbf16, #tpu.memory_space<vmem>>, %arg19: memref<1x128xf32, #tpu.memory_space<vmem>>, %arg20: memref<8x1xf32, #tpu.memory_space<vmem>>, %arg21: memref<8x128xf32, #tpu.memory_space<vmem>>, %arg22: memref<16x128xf32, #tpu.memory_space<vmem>>, %arg23: memref<32x128xf32, #tpu.memory_space<vmem>>, %arg24: memref<16x128xf32, #tpu.memory_space<vmem>>, %arg25: memref<16x128xf32, #tpu.memory_space<vmem>>, %arg26: memref<8x128xf32, #tpu.memory_space<vmem>>) attributes {dimension_semantics = [], scalar_prefetch = 0 : i64, scratch_operands = 5 : i64, tpu.core_type = #tpu.core_type<tc>} {
    %c0 = arith.constant 0 : index
    %c0_0 = arith.constant 0 : index
    %0 = vector.load %arg3[%c0, %c0_0] : memref<16x128xbf16, #tpu.memory_space<vmem>>, vector<16x128xbf16>
    %c0_1 = arith.constant 0 : index
    %c0_2 = arith.constant 0 : index
    %1 = vector.load %arg4[%c0_1, %c0_2] : memref<128x128xbf16, #tpu.memory_space<vmem>>, vector<128x128xbf16>
    %cst = arith.constant dense<0.000000e+00> : vector<16x128xf32>
    %2 = tpu.matmul %0, %1, %cst {dimension_numbers = #tpu.dot_dimension_numbers<[1], [0], [0], [1], [0, 0, 1, 1], [], []>} : vector<16x128xbf16>, vector<128x128xbf16>, vector<16x128xf32> -> vector<16x128xf32>
    %c0_3 = arith.constant 0 : index
    %c0_4 = arith.constant 0 : index
    %3 = vector.load %arg5[%c0_3, %c0_4] : memref<1x128xf32, #tpu.memory_space<vmem>>, vector<1x128xf32>
    %4 = vector.broadcast %3 : vector<1x128xf32> to vector<16x128xf32>
    %5 = arith.addf %2, %4 : vector<16x128xf32>
    %cst_5 = arith.constant 0.000000e+00 : f32
    %6 = vector.broadcast %cst_5 : f32 to vector<16x128xf32>
    %7 = arith.maximumf %5, %6 : vector<16x128xf32>
    %c0_6 = arith.constant 0 : index
    %c0_7 = arith.constant 0 : index
    %8 = vector.load %arg22[%c0_6, %c0_7] : memref<16x128xf32, #tpu.memory_space<vmem>>, vector<16x128xf32>
    tpu.vector_store %arg22[%c0_6, %c0_7], %7 {strides = array<i32>} : memref<16x128xf32, #tpu.memory_space<vmem>>, vector<16x128xf32>,
    %c0_8 = arith.constant 0 : index
    %c0_9 = arith.constant 0 : index
    %9 = vector.load %arg6[%c0_8, %c0_9] : memref<32x128xbf16, #tpu.memory_space<vmem>>, vector<32x128xbf16>
    %c0_10 = arith.constant 0 : index
    %c0_11 = arith.constant 0 : index
    %10 = vector.load %arg7[%c0_10, %c0_11] : memref<128x128xbf16, #tpu.memory_space<vmem>>, vector<128x128xbf16>
    %cst_12 = arith.constant dense<0.000000e+00> : vector<32x128xf32>
    %11 = tpu.matmul %9, %10, %cst_12 {dimension_numbers = #tpu.dot_dimension_numbers<[1], [0], [0], [1], [0, 0, 1, 1], [], []>} : vector<32x128xbf16>, vector<128x128xbf16>, vector<32x128xf32> -> vector<32x128xf32>
    %c0_13 = arith.constant 0 : index
    %c0_14 = arith.constant 0 : index
    %12 = vector.load %arg8[%c0_13, %c0_14] : memref<1x128xf32, #tpu.memory_space<vmem>>, vector<1x128xf32>
    %13 = vector.broadcast %12 : vector<1x128xf32> to vector<32x128xf32>
    %14 = arith.addf %11, %13 : vector<32x128xf32>
    %c0_15 = arith.constant 0 : index
    %c0_16 = arith.constant 0 : index
    %15 = vector.load %arg23[%c0_15, %c0_16] : memref<32x128xf32, #tpu.memory_space<vmem>>, vector<32x128xf32>
    tpu.vector_store %arg23[%c0_15, %c0_16], %14 {strides = array<i32>} : memref<32x128xf32, #tpu.memory_space<vmem>>, vector<32x128xf32>,
    %cst_17 = arith.constant 0.000000e+00 : f32
    %16 = vector.broadcast %cst_17 : f32 to vector<16x128xf32>
    %c0_18 = arith.constant 0 : index
    %c0_19 = arith.constant 0 : index
    %17 = vector.load %arg24[%c0_18, %c0_19] : memref<16x128xf32, #tpu.memory_space<vmem>>, vector<16x128xf32>
    tpu.vector_store %arg24[%c0_18, %c0_19], %16 {strides = array<i32>} : memref<16x128xf32, #tpu.memory_space<vmem>>, vector<16x128xf32>,
    %c0_i32 = arith.constant 0 : i32
    %18 = arith.index_cast %c0_i32 : i32 to index
    %19 = memref.load %arg0[%18] : memref<32xi32, #tpu.memory_space<smem>>
    %20 = arith.index_cast %c0_i32 : i32 to index
    %21 = memref.load %arg1[%20] : memref<32xi32, #tpu.memory_space<smem>>
    %22 = arith.index_cast %19 : i32 to index
    %c0_20 = arith.constant 0 : index
    %23 = vector.load %arg22[%22, %c0_20] : memref<16x128xf32, #tpu.memory_space<vmem>>, vector<1x128xf32>
    %24 = arith.index_cast %c0_i32 : i32 to index
    %c0_21 = arith.constant 0 : index
    %25 = vector.load %arg23[%24, %c0_21] : memref<32x128xf32, #tpu.memory_space<vmem>>, vector<1x128xf32>
    %26 = arith.addf %23, %25 : vector<1x128xf32>
    %cst_22 = arith.constant 0.000000e+00 : f32
    %27 = vector.broadcast %cst_22 : f32 to vector<1x128xf32>
    %28 = arith.maximumf %26, %27 : vector<1x128xf32>
    %29 = arith.index_cast %21 : i32 to index
    %c0_23 = arith.constant 0 : index
    %30 = vector.load %arg24[%29, %c0_23] : memref<16x128xf32, #tpu.memory_space<vmem>>, vector<1x128xf32>
    %31 = arith.addf %30, %28 : vector<1x128xf32>
    %32 = arith.index_cast %21 : i32 to index
    %c0_24 = arith.constant 0 : index
    %33 = vector.load %arg24[%32, %c0_24] : memref<16x128xf32, #tpu.memory_space<vmem>>, vector<1x128xf32>
    tpu.vector_store %arg24[%32, %c0_24], %31 {strides = array<i32>} : memref<16x128xf32, #tpu.memory_space<vmem>>, vector<1x128xf32>,
    %c1_i32 = arith.constant 1 : i32
    %34 = arith.index_cast %c1_i32 : i32 to index
    %35 = memref.load %arg0[%34] : memref<32xi32, #tpu.memory_space<smem>>
    %36 = arith.index_cast %c1_i32 : i32 to index
    %37 = memref.load %arg1[%36] : memref<32xi32, #tpu.memory_space<smem>>
    %38 = arith.index_cast %35 : i32 to index
    %c0_25 = arith.constant 0 : index
    %39 = vector.load %arg22[%38, %c0_25] : memref<16x128xf32, #tpu.memory_space<vmem>>, vector<1x128xf32>
    %40 = arith.index_cast %c1_i32 : i32 to index
    %c0_26 = arith.constant 0 : index
    %41 = vector.load %arg23[%40, %c0_26] : memref<32x128xf32, #tpu.memory_space<vmem>>, vector<1x128xf32>
    %42 = arith.addf %39, %41 : vector<1x128xf32>
    %cst_27 = arith.constant 0.000000e+00 : f32
    %43 = vector.broadcast %cst_27 : f32 to vector<1x128xf32>
    %44 = arith.maximumf %42, %43 : vector<1x128xf32>
    %45 = arith.index_cast %37 : i32 to index
    %c0_28 = arith.constant 0 : index
    %46 = vector.load %arg24[%45, %c0_28] : memref<16x128xf32, #tpu.memory_space<vmem>>, vector<1x128xf32>
    %47 = arith.addf %46, %44 : vector<1x128xf32>
    %48 = arith.index_cast %37 : i32 to index
    %c0_29 = arith.constant 0 : index
    %49 = vector.load %arg24[%48, %c0_29] : memref<16x128xf32, #tpu.memory_space<vmem>>, vector<1x128xf32>
    tpu.vector_store %arg24[%48, %c0_29], %47 {strides = array<i32>} : memref<16x128xf32, #tpu.memory_space<vmem>>, vector<1x128xf32>,
    %c2_i32 = arith.constant 2 : i32
    %50 = arith.index_cast %c2_i32 : i32 to index
    %51 = memref.load %arg0[%50] : memref<32xi32, #tpu.memory_space<smem>>
    %52 = arith.index_cast %c2_i32 : i32 to index
    %53 = memref.load %arg1[%52] : memref<32xi32, #tpu.memory_space<smem>>
    %54 = arith.index_cast %51 : i32 to index
    %c0_30 = arith.constant 0 : index
    %55 = vector.load %arg22[%54, %c0_30] : memref<16x128xf32, #tpu.memory_space<vmem>>, vector<1x128xf32>
    %56 = arith.index_cast %c2_i32 : i32 to index
    %c0_31 = arith.constant 0 : index
    %57 = vector.load %arg23[%56, %c0_31] : memref<32x128xf32, #tpu.memory_space<vmem>>, vector<1x128xf32>
    %58 = arith.addf %55, %57 : vector<1x128xf32>
    %cst_32 = arith.constant 0.000000e+00 : f32
    %59 = vector.broadcast %cst_32 : f32 to vector<1x128xf32>
    %60 = arith.maximumf %58, %59 : vector<1x128xf32>
    %61 = arith.index_cast %53 : i32 to index
    %c0_33 = arith.constant 0 : index
    %62 = vector.load %arg24[%61, %c0_33] : memref<16x128xf32, #tpu.memory_space<vmem>>, vector<1x128xf32>
    %63 = arith.addf %62, %60 : vector<1x128xf32>
    %64 = arith.index_cast %53 : i32 to index
    %c0_34 = arith.constant 0 : index
    %65 = vector.load %arg24[%64, %c0_34] : memref<16x128xf32, #tpu.memory_space<vmem>>, vector<1x128xf32>
    tpu.vector_store %arg24[%64, %c0_34], %63 {strides = array<i32>} : memref<16x128xf32, #tpu.memory_space<vmem>>, vector<1x128xf32>,
    %c3_i32 = arith.constant 3 : i32
    %66 = arith.index_cast %c3_i32 : i32 to index
    %67 = memref.load %arg0[%66] : memref<32xi32, #tpu.memory_space<smem>>
    %68 = arith.index_cast %c3_i32 : i32 to index
    %69 = memref.load %arg1[%68] : memref<32xi32, #tpu.memory_space<smem>>
    %70 = arith.index_cast %67 : i32 to index
    %c0_35 = arith.constant 0 : index
    %71 = vector.load %arg22[%70, %c0_35] : memref<16x128xf32, #tpu.memory_space<vmem>>, vector<1x128xf32>
    %72 = arith.index_cast %c3_i32 : i32 to index
    %c0_36 = arith.constant 0 : index
    %73 = vector.load %arg23[%72, %c0_36] : memref<32x128xf32, #tpu.memory_space<vmem>>, vector<1x128xf32>
    %74 = arith.addf %71, %73 : vector<1x128xf32>
    %cst_37 = arith.constant 0.000000e+00 : f32
    %75 = vector.broadcast %cst_37 : f32 to vector<1x128xf32>
    %76 = arith.maximumf %74, %75 : vector<1x128xf32>
    %77 = arith.index_cast %69 : i32 to index
    %c0_38 = arith.constant 0 : index
    %78 = vector.load %arg24[%77, %c0_38] : memref<16x128xf32, #tpu.memory_space<vmem>>, vector<1x128xf32>
    %79 = arith.addf %78, %76 : vector<1x128xf32>
    %80 = arith.index_cast %69 : i32 to index
    %c0_39 = arith.constant 0 : index
    %81 = vector.load %arg24[%80, %c0_39] : memref<16x128xf32, #tpu.memory_space<vmem>>, vector<1x128xf32>
    tpu.vector_store %arg24[%80, %c0_39], %79 {strides = array<i32>} : memref<16x128xf32, #tpu.memory_space<vmem>>, vector<1x128xf32>,
    %c4_i32 = arith.constant 4 : i32
    %82 = arith.index_cast %c4_i32 : i32 to index
    %83 = memref.load %arg0[%82] : memref<32xi32, #tpu.memory_space<smem>>
    %84 = arith.index_cast %c4_i32 : i32 to index
    %85 = memref.load %arg1[%84] : memref<32xi32, #tpu.memory_space<smem>>
    %86 = arith.index_cast %83 : i32 to index
    %c0_40 = arith.constant 0 : index
    %87 = vector.load %arg22[%86, %c0_40] : memref<16x128xf32, #tpu.memory_space<vmem>>, vector<1x128xf32>
    %88 = arith.index_cast %c4_i32 : i32 to index
    %c0_41 = arith.constant 0 : index
    %89 = vector.load %arg23[%88, %c0_41] : memref<32x128xf32, #tpu.memory_space<vmem>>, vector<1x128xf32>
    %90 = arith.addf %87, %89 : vector<1x128xf32>
    %cst_42 = arith.constant 0.000000e+00 : f32
    %91 = vector.broadcast %cst_42 : f32 to vector<1x128xf32>
    %92 = arith.maximumf %90, %91 : vector<1x128xf32>
    %93 = arith.index_cast %85 : i32 to index
    %c0_43 = arith.constant 0 : index
    %94 = vector.load %arg24[%93, %c0_43] : memref<16x128xf32, #tpu.memory_space<vmem>>, vector<1x128xf32>
    %95 = arith.addf %94, %92 : vector<1x128xf32>
    %96 = arith.index_cast %85 : i32 to index
    %c0_44 = arith.constant 0 : index
    %97 = vector.load %arg24[%96, %c0_44] : memref<16x128xf32, #tpu.memory_space<vmem>>, vector<1x128xf32>
    tpu.vector_store %arg24[%96, %c0_44], %95 {strides = array<i32>} : memref<16x128xf32, #tpu.memory_space<vmem>>, vector<1x128xf32>,
    %c5_i32 = arith.constant 5 : i32
    %98 = arith.index_cast %c5_i32 : i32 to index
    %99 = memref.load %arg0[%98] : memref<32xi32, #tpu.memory_space<smem>>
    %100 = arith.index_cast %c5_i32 : i32 to index
    %101 = memref.load %arg1[%100] : memref<32xi32, #tpu.memory_space<smem>>
    %102 = arith.index_cast %99 : i32 to index
    %c0_45 = arith.constant 0 : index
    %103 = vector.load %arg22[%102, %c0_45] : memref<16x128xf32, #tpu.memory_space<vmem>>, vector<1x128xf32>
    %104 = arith.index_cast %c5_i32 : i32 to index
    %c0_46 = arith.constant 0 : index
    %105 = vector.load %arg23[%104, %c0_46] : memref<32x128xf32, #tpu.memory_space<vmem>>, vector<1x128xf32>
    %106 = arith.addf %103, %105 : vector<1x128xf32>
    %cst_47 = arith.constant 0.000000e+00 : f32
    %107 = vector.broadcast %cst_47 : f32 to vector<1x128xf32>
    %108 = arith.maximumf %106, %107 : vector<1x128xf32>
    %109 = arith.index_cast %101 : i32 to index
    %c0_48 = arith.constant 0 : index
    %110 = vector.load %arg24[%109, %c0_48] : memref<16x128xf32, #tpu.memory_space<vmem>>, vector<1x128xf32>
    %111 = arith.addf %110, %108 : vector<1x128xf32>
    %112 = arith.index_cast %101 : i32 to index
    %c0_49 = arith.constant 0 : index
    %113 = vector.load %arg24[%112, %c0_49] : memref<16x128xf32, #tpu.memory_space<vmem>>, vector<1x128xf32>
    tpu.vector_store %arg24[%112, %c0_49], %111 {strides = array<i32>} : memref<16x128xf32, #tpu.memory_space<vmem>>, vector<1x128xf32>,
    %c6_i32 = arith.constant 6 : i32
    %114 = arith.index_cast %c6_i32 : i32 to index
    %115 = memref.load %arg0[%114] : memref<32xi32, #tpu.memory_space<smem>>
    %116 = arith.index_cast %c6_i32 : i32 to index
    %117 = memref.load %arg1[%116] : memref<32xi32, #tpu.memory_space<smem>>
    %118 = arith.index_cast %115 : i32 to index
    %c0_50 = arith.constant 0 : index
    %119 = vector.load %arg22[%118, %c0_50] : memref<16x128xf32, #tpu.memory_space<vmem>>, vector<1x128xf32>
    %120 = arith.index_cast %c6_i32 : i32 to index
    %c0_51 = arith.constant 0 : index
    %121 = vector.load %arg23[%120, %c0_51] : memref<32x128xf32, #tpu.memory_space<vmem>>, vector<1x128xf32>
    %122 = arith.addf %119, %121 : vector<1x128xf32>
    %cst_52 = arith.constant 0.000000e+00 : f32
    %123 = vector.broadcast %cst_52 : f32 to vector<1x128xf32>
    %124 = arith.maximumf %122, %123 : vector<1x128xf32>
    %125 = arith.index_cast %117 : i32 to index
    %c0_53 = arith.constant 0 : index
    %126 = vector.load %arg24[%125, %c0_53] : memref<16x128xf32, #tpu.memory_space<vmem>>, vector<1x128xf32>
    %127 = arith.addf %126, %124 : vector<1x128xf32>
    %128 = arith.index_cast %117 : i32 to index
    %c0_54 = arith.constant 0 : index
    %129 = vector.load %arg24[%128, %c0_54] : memref<16x128xf32, #tpu.memory_space<vmem>>, vector<1x128xf32>
    tpu.vector_store %arg24[%128, %c0_54], %127 {strides = array<i32>} : memref<16x128xf32, #tpu.memory_space<vmem>>, vector<1x128xf32>,
    %c7_i32 = arith.constant 7 : i32
    %130 = arith.index_cast %c7_i32 : i32 to index
    %131 = memref.load %arg0[%130] : memref<32xi32, #tpu.memory_space<smem>>
    %132 = arith.index_cast %c7_i32 : i32 to index
    %133 = memref.load %arg1[%132] : memref<32xi32, #tpu.memory_space<smem>>
    %134 = arith.index_cast %131 : i32 to index
    %c0_55 = arith.constant 0 : index
    %135 = vector.load %arg22[%134, %c0_55] : memref<16x128xf32, #tpu.memory_space<vmem>>, vector<1x128xf32>
    %136 = arith.index_cast %c7_i32 : i32 to index
    %c0_56 = arith.constant 0 : index
    %137 = vector.load %arg23[%136, %c0_56] : memref<32x128xf32, #tpu.memory_space<vmem>>, vector<1x128xf32>
    %138 = arith.addf %135, %137 : vector<1x128xf32>
    %cst_57 = arith.constant 0.000000e+00 : f32
    %139 = vector.broadcast %cst_57 : f32 to vector<1x128xf32>
    %140 = arith.maximumf %138, %139 : vector<1x128xf32>
    %141 = arith.index_cast %133 : i32 to index
    %c0_58 = arith.constant 0 : index
    %142 = vector.load %arg24[%141, %c0_58] : memref<16x128xf32, #tpu.memory_space<vmem>>, vector<1x128xf32>
    %143 = arith.addf %142, %140 : vector<1x128xf32>
    %144 = arith.index_cast %133 : i32 to index
    %c0_59 = arith.constant 0 : index
    %145 = vector.load %arg24[%144, %c0_59] : memref<16x128xf32, #tpu.memory_space<vmem>>, vector<1x128xf32>
    tpu.vector_store %arg24[%144, %c0_59], %143 {strides = array<i32>} : memref<16x128xf32, #tpu.memory_space<vmem>>, vector<1x128xf32>,
    %c8_i32 = arith.constant 8 : i32
    %146 = arith.index_cast %c8_i32 : i32 to index
    %147 = memref.load %arg0[%146] : memref<32xi32, #tpu.memory_space<smem>>
    %148 = arith.index_cast %c8_i32 : i32 to index
    %149 = memref.load %arg1[%148] : memref<32xi32, #tpu.memory_space<smem>>
    %150 = arith.index_cast %147 : i32 to index
    %c0_60 = arith.constant 0 : index
    %151 = vector.load %arg22[%150, %c0_60] : memref<16x128xf32, #tpu.memory_space<vmem>>, vector<1x128xf32>
    %152 = arith.index_cast %c8_i32 : i32 to index
    %c0_61 = arith.constant 0 : index
    %153 = vector.load %arg23[%152, %c0_61] : memref<32x128xf32, #tpu.memory_space<vmem>>, vector<1x128xf32>
    %154 = arith.addf %151, %153 : vector<1x128xf32>
    %cst_62 = arith.constant 0.000000e+00 : f32
    %155 = vector.broadcast %cst_62 : f32 to vector<1x128xf32>
    %156 = arith.maximumf %154, %155 : vector<1x128xf32>
    %157 = arith.index_cast %149 : i32 to index
    %c0_63 = arith.constant 0 : index
    %158 = vector.load %arg24[%157, %c0_63] : memref<16x128xf32, #tpu.memory_space<vmem>>, vector<1x128xf32>
    %159 = arith.addf %158, %156 : vector<1x128xf32>
    %160 = arith.index_cast %149 : i32 to index
    %c0_64 = arith.constant 0 : index
    %161 = vector.load %arg24[%160, %c0_64] : memref<16x128xf32, #tpu.memory_space<vmem>>, vector<1x128xf32>
    tpu.vector_store %arg24[%160, %c0_64], %159 {strides = array<i32>} : memref<16x128xf32, #tpu.memory_space<vmem>>, vector<1x128xf32>,
    %c9_i32 = arith.constant 9 : i32
    %162 = arith.index_cast %c9_i32 : i32 to index
    %163 = memref.load %arg0[%162] : memref<32xi32, #tpu.memory_space<smem>>
    %164 = arith.index_cast %c9_i32 : i32 to index
    %165 = memref.load %arg1[%164] : memref<32xi32, #tpu.memory_space<smem>>
    %166 = arith.index_cast %163 : i32 to index
    %c0_65 = arith.constant 0 : index
    %167 = vector.load %arg22[%166, %c0_65] : memref<16x128xf32, #tpu.memory_space<vmem>>, vector<1x128xf32>
    %168 = arith.index_cast %c9_i32 : i32 to index
    %c0_66 = arith.constant 0 : index
    %169 = vector.load %arg23[%168, %c0_66] : memref<32x128xf32, #tpu.memory_space<vmem>>, vector<1x128xf32>
    %170 = arith.addf %167, %169 : vector<1x128xf32>
    %cst_67 = arith.constant 0.000000e+00 : f32
    %171 = vector.broadcast %cst_67 : f32 to vector<1x128xf32>
    %172 = arith.maximumf %170, %171 : vector<1x128xf32>
    %173 = arith.index_cast %165 : i32 to index
    %c0_68 = arith.constant 0 : index
    %174 = vector.load %arg24[%173, %c0_68] : memref<16x128xf32, #tpu.memory_space<vmem>>, vector<1x128xf32>
    %175 = arith.addf %174, %172 : vector<1x128xf32>
    %176 = arith.index_cast %165 : i32 to index
    %c0_69 = arith.constant 0 : index
    %177 = vector.load %arg24[%176, %c0_69] : memref<16x128xf32, #tpu.memory_space<vmem>>, vector<1x128xf32>
    tpu.vector_store %arg24[%176, %c0_69], %175 {strides = array<i32>} : memref<16x128xf32, #tpu.memory_space<vmem>>, vector<1x128xf32>,
    %c10_i32 = arith.constant 10 : i32
    %178 = arith.index_cast %c10_i32 : i32 to index
    %179 = memref.load %arg0[%178] : memref<32xi32, #tpu.memory_space<smem>>
    %180 = arith.index_cast %c10_i32 : i32 to index
    %181 = memref.load %arg1[%180] : memref<32xi32, #tpu.memory_space<smem>>
    %182 = arith.index_cast %179 : i32 to index
    %c0_70 = arith.constant 0 : index
    %183 = vector.load %arg22[%182, %c0_70] : memref<16x128xf32, #tpu.memory_space<vmem>>, vector<1x128xf32>
    %184 = arith.index_cast %c10_i32 : i32 to index
    %c0_71 = arith.constant 0 : index
    %185 = vector.load %arg23[%184, %c0_71] : memref<32x128xf32, #tpu.memory_space<vmem>>, vector<1x128xf32>
    %186 = arith.addf %183, %185 : vector<1x128xf32>
    %cst_72 = arith.constant 0.000000e+00 : f32
    %187 = vector.broadcast %cst_72 : f32 to vector<1x128xf32>
    %188 = arith.maximumf %186, %187 : vector<1x128xf32>
    %189 = arith.index_cast %181 : i32 to index
    %c0_73 = arith.constant 0 : index
    %190 = vector.load %arg24[%189, %c0_73] : memref<16x128xf32, #tpu.memory_space<vmem>>, vector<1x128xf32>
    %191 = arith.addf %190, %188 : vector<1x128xf32>
    %192 = arith.index_cast %181 : i32 to index
    %c0_74 = arith.constant 0 : index
    %193 = vector.load %arg24[%192, %c0_74] : memref<16x128xf32, #tpu.memory_space<vmem>>, vector<1x128xf32>
    tpu.vector_store %arg24[%192, %c0_74], %191 {strides = array<i32>} : memref<16x128xf32, #tpu.memory_space<vmem>>, vector<1x128xf32>,
    %c11_i32 = arith.constant 11 : i32
    %194 = arith.index_cast %c11_i32 : i32 to index
    %195 = memref.load %arg0[%194] : memref<32xi32, #tpu.memory_space<smem>>
    %196 = arith.index_cast %c11_i32 : i32 to index
    %197 = memref.load %arg1[%196] : memref<32xi32, #tpu.memory_space<smem>>
    %198 = arith.index_cast %195 : i32 to index
    %c0_75 = arith.constant 0 : index
    %199 = vector.load %arg22[%198, %c0_75] : memref<16x128xf32, #tpu.memory_space<vmem>>, vector<1x128xf32>
    %200 = arith.index_cast %c11_i32 : i32 to index
    %c0_76 = arith.constant 0 : index
    %201 = vector.load %arg23[%200, %c0_76] : memref<32x128xf32, #tpu.memory_space<vmem>>, vector<1x128xf32>
    %202 = arith.addf %199, %201 : vector<1x128xf32>
    %cst_77 = arith.constant 0.000000e+00 : f32
    %203 = vector.broadcast %cst_77 : f32 to vector<1x128xf32>
    %204 = arith.maximumf %202, %203 : vector<1x128xf32>
    %205 = arith.index_cast %197 : i32 to index
    %c0_78 = arith.constant 0 : index
    %206 = vector.load %arg24[%205, %c0_78] : memref<16x128xf32, #tpu.memory_space<vmem>>, vector<1x128xf32>
    %207 = arith.addf %206, %204 : vector<1x128xf32>
    %208 = arith.index_cast %197 : i32 to index
    %c0_79 = arith.constant 0 : index
    %209 = vector.load %arg24[%208, %c0_79] : memref<16x128xf32, #tpu.memory_space<vmem>>, vector<1x128xf32>
    tpu.vector_store %arg24[%208, %c0_79], %207 {strides = array<i32>} : memref<16x128xf32, #tpu.memory_space<vmem>>, vector<1x128xf32>,
    %c12_i32 = arith.constant 12 : i32
    %210 = arith.index_cast %c12_i32 : i32 to index
    %211 = memref.load %arg0[%210] : memref<32xi32, #tpu.memory_space<smem>>
    %212 = arith.index_cast %c12_i32 : i32 to index
    %213 = memref.load %arg1[%212] : memref<32xi32, #tpu.memory_space<smem>>
    %214 = arith.index_cast %211 : i32 to index
    %c0_80 = arith.constant 0 : index
    %215 = vector.load %arg22[%214, %c0_80] : memref<16x128xf32, #tpu.memory_space<vmem>>, vector<1x128xf32>
    %216 = arith.index_cast %c12_i32 : i32 to index
    %c0_81 = arith.constant 0 : index
    %217 = vector.load %arg23[%216, %c0_81] : memref<32x128xf32, #tpu.memory_space<vmem>>, vector<1x128xf32>
    %218 = arith.addf %215, %217 : vector<1x128xf32>
    %cst_82 = arith.constant 0.000000e+00 : f32
    %219 = vector.broadcast %cst_82 : f32 to vector<1x128xf32>
    %220 = arith.maximumf %218, %219 : vector<1x128xf32>
    %221 = arith.index_cast %213 : i32 to index
    %c0_83 = arith.constant 0 : index
    %222 = vector.load %arg24[%221, %c0_83] : memref<16x128xf32, #tpu.memory_space<vmem>>, vector<1x128xf32>
    %223 = arith.addf %222, %220 : vector<1x128xf32>
    %224 = arith.index_cast %213 : i32 to index
    %c0_84 = arith.constant 0 : index
    %225 = vector.load %arg24[%224, %c0_84] : memref<16x128xf32, #tpu.memory_space<vmem>>, vector<1x128xf32>
    tpu.vector_store %arg24[%224, %c0_84], %223 {strides = array<i32>} : memref<16x128xf32, #tpu.memory_space<vmem>>, vector<1x128xf32>,
    %c13_i32 = arith.constant 13 : i32
    %226 = arith.index_cast %c13_i32 : i32 to index
    %227 = memref.load %arg0[%226] : memref<32xi32, #tpu.memory_space<smem>>
    %228 = arith.index_cast %c13_i32 : i32 to index
    %229 = memref.load %arg1[%228] : memref<32xi32, #tpu.memory_space<smem>>
    %230 = arith.index_cast %227 : i32 to index
    %c0_85 = arith.constant 0 : index
    %231 = vector.load %arg22[%230, %c0_85] : memref<16x128xf32, #tpu.memory_space<vmem>>, vector<1x128xf32>
    %232 = arith.index_cast %c13_i32 : i32 to index
    %c0_86 = arith.constant 0 : index
    %233 = vector.load %arg23[%232, %c0_86] : memref<32x128xf32, #tpu.memory_space<vmem>>, vector<1x128xf32>
    %234 = arith.addf %231, %233 : vector<1x128xf32>
    %cst_87 = arith.constant 0.000000e+00 : f32
    %235 = vector.broadcast %cst_87 : f32 to vector<1x128xf32>
    %236 = arith.maximumf %234, %235 : vector<1x128xf32>
    %237 = arith.index_cast %229 : i32 to index
    %c0_88 = arith.constant 0 : index
    %238 = vector.load %arg24[%237, %c0_88] : memref<16x128xf32, #tpu.memory_space<vmem>>, vector<1x128xf32>
    %239 = arith.addf %238, %236 : vector<1x128xf32>
    %240 = arith.index_cast %229 : i32 to index
    %c0_89 = arith.constant 0 : index
    %241 = vector.load %arg24[%240, %c0_89] : memref<16x128xf32, #tpu.memory_space<vmem>>, vector<1x128xf32>
    tpu.vector_store %arg24[%240, %c0_89], %239 {strides = array<i32>} : memref<16x128xf32, #tpu.memory_space<vmem>>, vector<1x128xf32>,
    %c14_i32 = arith.constant 14 : i32
    %242 = arith.index_cast %c14_i32 : i32 to index
    %243 = memref.load %arg0[%242] : memref<32xi32, #tpu.memory_space<smem>>
    %244 = arith.index_cast %c14_i32 : i32 to index
    %245 = memref.load %arg1[%244] : memref<32xi32, #tpu.memory_space<smem>>
    %246 = arith.index_cast %243 : i32 to index
    %c0_90 = arith.constant 0 : index
    %247 = vector.load %arg22[%246, %c0_90] : memref<16x128xf32, #tpu.memory_space<vmem>>, vector<1x128xf32>
    %248 = arith.index_cast %c14_i32 : i32 to index
    %c0_91 = arith.constant 0 : index
    %249 = vector.load %arg23[%248, %c0_91] : memref<32x128xf32, #tpu.memory_space<vmem>>, vector<1x128xf32>
    %250 = arith.addf %247, %249 : vector<1x128xf32>
    %cst_92 = arith.constant 0.000000e+00 : f32
    %251 = vector.broadcast %cst_92 : f32 to vector<1x128xf32>
    %252 = arith.maximumf %250, %251 : vector<1x128xf32>
    %253 = arith.index_cast %245 : i32 to index
    %c0_93 = arith.constant 0 : index
    %254 = vector.load %arg24[%253, %c0_93] : memref<16x128xf32, #tpu.memory_space<vmem>>, vector<1x128xf32>
    %255 = arith.addf %254, %252 : vector<1x128xf32>
    %256 = arith.index_cast %245 : i32 to index
    %c0_94 = arith.constant 0 : index
    %257 = vector.load %arg24[%256, %c0_94] : memref<16x128xf32, #tpu.memory_space<vmem>>, vector<1x128xf32>
    tpu.vector_store %arg24[%256, %c0_94], %255 {strides = array<i32>} : memref<16x128xf32, #tpu.memory_space<vmem>>, vector<1x128xf32>,
    %c15_i32 = arith.constant 15 : i32
    %258 = arith.index_cast %c15_i32 : i32 to index
    %259 = memref.load %arg0[%258] : memref<32xi32, #tpu.memory_space<smem>>
    %260 = arith.index_cast %c15_i32 : i32 to index
    %261 = memref.load %arg1[%260] : memref<32xi32, #tpu.memory_space<smem>>
    %262 = arith.index_cast %259 : i32 to index
    %c0_95 = arith.constant 0 : index
    %263 = vector.load %arg22[%262, %c0_95] : memref<16x128xf32, #tpu.memory_space<vmem>>, vector<1x128xf32>
    %264 = arith.index_cast %c15_i32 : i32 to index
    %c0_96 = arith.constant 0 : index
    %265 = vector.load %arg23[%264, %c0_96] : memref<32x128xf32, #tpu.memory_space<vmem>>, vector<1x128xf32>
    %266 = arith.addf %263, %265 : vector<1x128xf32>
    %cst_97 = arith.constant 0.000000e+00 : f32
    %267 = vector.broadcast %cst_97 : f32 to vector<1x128xf32>
    %268 = arith.maximumf %266, %267 : vector<1x128xf32>
    %269 = arith.index_cast %261 : i32 to index
    %c0_98 = arith.constant 0 : index
    %270 = vector.load %arg24[%269, %c0_98] : memref<16x128xf32, #tpu.memory_space<vmem>>, vector<1x128xf32>
    %271 = arith.addf %270, %268 : vector<1x128xf32>
    %272 = arith.index_cast %261 : i32 to index
    %c0_99 = arith.constant 0 : index
    %273 = vector.load %arg24[%272, %c0_99] : memref<16x128xf32, #tpu.memory_space<vmem>>, vector<1x128xf32>
    tpu.vector_store %arg24[%272, %c0_99], %271 {strides = array<i32>} : memref<16x128xf32, #tpu.memory_space<vmem>>, vector<1x128xf32>,
    %c16_i32 = arith.constant 16 : i32
    %274 = arith.index_cast %c16_i32 : i32 to index
    %275 = memref.load %arg0[%274] : memref<32xi32, #tpu.memory_space<smem>>
    %276 = arith.index_cast %c16_i32 : i32 to index
    %277 = memref.load %arg1[%276] : memref<32xi32, #tpu.memory_space<smem>>
    %278 = arith.index_cast %275 : i32 to index
    %c0_100 = arith.constant 0 : index
    %279 = vector.load %arg22[%278, %c0_100] : memref<16x128xf32, #tpu.memory_space<vmem>>, vector<1x128xf32>
    %280 = arith.index_cast %c16_i32 : i32 to index
    %c0_101 = arith.constant 0 : index
    %281 = vector.load %arg23[%280, %c0_101] : memref<32x128xf32, #tpu.memory_space<vmem>>, vector<1x128xf32>
    %282 = arith.addf %279, %281 : vector<1x128xf32>
    %cst_102 = arith.constant 0.000000e+00 : f32
    %283 = vector.broadcast %cst_102 : f32 to vector<1x128xf32>
    %284 = arith.maximumf %282, %283 : vector<1x128xf32>
    %285 = arith.index_cast %277 : i32 to index
    %c0_103 = arith.constant 0 : index
    %286 = vector.load %arg24[%285, %c0_103] : memref<16x128xf32, #tpu.memory_space<vmem>>, vector<1x128xf32>
    %287 = arith.addf %286, %284 : vector<1x128xf32>
    %288 = arith.index_cast %277 : i32 to index
    %c0_104 = arith.constant 0 : index
    %289 = vector.load %arg24[%288, %c0_104] : memref<16x128xf32, #tpu.memory_space<vmem>>, vector<1x128xf32>
    tpu.vector_store %arg24[%288, %c0_104], %287 {strides = array<i32>} : memref<16x128xf32, #tpu.memory_space<vmem>>, vector<1x128xf32>,
    %c17_i32 = arith.constant 17 : i32
    %290 = arith.index_cast %c17_i32 : i32 to index
    %291 = memref.load %arg0[%290] : memref<32xi32, #tpu.memory_space<smem>>
    %292 = arith.index_cast %c17_i32 : i32 to index
    %293 = memref.load %arg1[%292] : memref<32xi32, #tpu.memory_space<smem>>
    %294 = arith.index_cast %291 : i32 to index
    %c0_105 = arith.constant 0 : index
    %295 = vector.load %arg22[%294, %c0_105] : memref<16x128xf32, #tpu.memory_space<vmem>>, vector<1x128xf32>
    %296 = arith.index_cast %c17_i32 : i32 to index
    %c0_106 = arith.constant 0 : index
    %297 = vector.load %arg23[%296, %c0_106] : memref<32x128xf32, #tpu.memory_space<vmem>>, vector<1x128xf32>
    %298 = arith.addf %295, %297 : vector<1x128xf32>
    %cst_107 = arith.constant 0.000000e+00 : f32
    %299 = vector.broadcast %cst_107 : f32 to vector<1x128xf32>
    %300 = arith.maximumf %298, %299 : vector<1x128xf32>
    %301 = arith.index_cast %293 : i32 to index
    %c0_108 = arith.constant 0 : index
    %302 = vector.load %arg24[%301, %c0_108] : memref<16x128xf32, #tpu.memory_space<vmem>>, vector<1x128xf32>
    %303 = arith.addf %302, %300 : vector<1x128xf32>
    %304 = arith.index_cast %293 : i32 to index
    %c0_109 = arith.constant 0 : index
    %305 = vector.load %arg24[%304, %c0_109] : memref<16x128xf32, #tpu.memory_space<vmem>>, vector<1x128xf32>
    tpu.vector_store %arg24[%304, %c0_109], %303 {strides = array<i32>} : memref<16x128xf32, #tpu.memory_space<vmem>>, vector<1x128xf32>,
    %c18_i32 = arith.constant 18 : i32
    %306 = arith.index_cast %c18_i32 : i32 to index
    %307 = memref.load %arg0[%306] : memref<32xi32, #tpu.memory_space<smem>>
    %308 = arith.index_cast %c18_i32 : i32 to index
    %309 = memref.load %arg1[%308] : memref<32xi32, #tpu.memory_space<smem>>
    %310 = arith.index_cast %307 : i32 to index
    %c0_110 = arith.constant 0 : index
    %311 = vector.load %arg22[%310, %c0_110] : memref<16x128xf32, #tpu.memory_space<vmem>>, vector<1x128xf32>
    %312 = arith.index_cast %c18_i32 : i32 to index
    %c0_111 = arith.constant 0 : index
    %313 = vector.load %arg23[%312, %c0_111] : memref<32x128xf32, #tpu.memory_space<vmem>>, vector<1x128xf32>
    %314 = arith.addf %311, %313 : vector<1x128xf32>
    %cst_112 = arith.constant 0.000000e+00 : f32
    %315 = vector.broadcast %cst_112 : f32 to vector<1x128xf32>
    %316 = arith.maximumf %314, %315 : vector<1x128xf32>
    %317 = arith.index_cast %309 : i32 to index
    %c0_113 = arith.constant 0 : index
    %318 = vector.load %arg24[%317, %c0_113] : memref<16x128xf32, #tpu.memory_space<vmem>>, vector<1x128xf32>
    %319 = arith.addf %318, %316 : vector<1x128xf32>
    %320 = arith.index_cast %309 : i32 to index
    %c0_114 = arith.constant 0 : index
    %321 = vector.load %arg24[%320, %c0_114] : memref<16x128xf32, #tpu.memory_space<vmem>>, vector<1x128xf32>
    tpu.vector_store %arg24[%320, %c0_114], %319 {strides = array<i32>} : memref<16x128xf32, #tpu.memory_space<vmem>>, vector<1x128xf32>,
    %c19_i32 = arith.constant 19 : i32
    %322 = arith.index_cast %c19_i32 : i32 to index
    %323 = memref.load %arg0[%322] : memref<32xi32, #tpu.memory_space<smem>>
    %324 = arith.index_cast %c19_i32 : i32 to index
    %325 = memref.load %arg1[%324] : memref<32xi32, #tpu.memory_space<smem>>
    %326 = arith.index_cast %323 : i32 to index
    %c0_115 = arith.constant 0 : index
    %327 = vector.load %arg22[%326, %c0_115] : memref<16x128xf32, #tpu.memory_space<vmem>>, vector<1x128xf32>
    %328 = arith.index_cast %c19_i32 : i32 to index
    %c0_116 = arith.constant 0 : index
    %329 = vector.load %arg23[%328, %c0_116] : memref<32x128xf32, #tpu.memory_space<vmem>>, vector<1x128xf32>
    %330 = arith.addf %327, %329 : vector<1x128xf32>
    %cst_117 = arith.constant 0.000000e+00 : f32
    %331 = vector.broadcast %cst_117 : f32 to vector<1x128xf32>
    %332 = arith.maximumf %330, %331 : vector<1x128xf32>
    %333 = arith.index_cast %325 : i32 to index
    %c0_118 = arith.constant 0 : index
    %334 = vector.load %arg24[%333, %c0_118] : memref<16x128xf32, #tpu.memory_space<vmem>>, vector<1x128xf32>
    %335 = arith.addf %334, %332 : vector<1x128xf32>
    %336 = arith.index_cast %325 : i32 to index
    %c0_119 = arith.constant 0 : index
    %337 = vector.load %arg24[%336, %c0_119] : memref<16x128xf32, #tpu.memory_space<vmem>>, vector<1x128xf32>
    tpu.vector_store %arg24[%336, %c0_119], %335 {strides = array<i32>} : memref<16x128xf32, #tpu.memory_space<vmem>>, vector<1x128xf32>,
    %c20_i32 = arith.constant 20 : i32
    %338 = arith.index_cast %c20_i32 : i32 to index
    %339 = memref.load %arg0[%338] : memref<32xi32, #tpu.memory_space<smem>>
    %340 = arith.index_cast %c20_i32 : i32 to index
    %341 = memref.load %arg1[%340] : memref<32xi32, #tpu.memory_space<smem>>
    %342 = arith.index_cast %339 : i32 to index
    %c0_120 = arith.constant 0 : index
    %343 = vector.load %arg22[%342, %c0_120] : memref<16x128xf32, #tpu.memory_space<vmem>>, vector<1x128xf32>
    %344 = arith.index_cast %c20_i32 : i32 to index
    %c0_121 = arith.constant 0 : index
    %345 = vector.load %arg23[%344, %c0_121] : memref<32x128xf32, #tpu.memory_space<vmem>>, vector<1x128xf32>
    %346 = arith.addf %343, %345 : vector<1x128xf32>
    %cst_122 = arith.constant 0.000000e+00 : f32
    %347 = vector.broadcast %cst_122 : f32 to vector<1x128xf32>
    %348 = arith.maximumf %346, %347 : vector<1x128xf32>
    %349 = arith.index_cast %341 : i32 to index
    %c0_123 = arith.constant 0 : index
    %350 = vector.load %arg24[%349, %c0_123] : memref<16x128xf32, #tpu.memory_space<vmem>>, vector<1x128xf32>
    %351 = arith.addf %350, %348 : vector<1x128xf32>
    %352 = arith.index_cast %341 : i32 to index
    %c0_124 = arith.constant 0 : index
    %353 = vector.load %arg24[%352, %c0_124] : memref<16x128xf32, #tpu.memory_space<vmem>>, vector<1x128xf32>
    tpu.vector_store %arg24[%352, %c0_124], %351 {strides = array<i32>} : memref<16x128xf32, #tpu.memory_space<vmem>>, vector<1x128xf32>,
    %c21_i32 = arith.constant 21 : i32
    %354 = arith.index_cast %c21_i32 : i32 to index
    %355 = memref.load %arg0[%354] : memref<32xi32, #tpu.memory_space<smem>>
    %356 = arith.index_cast %c21_i32 : i32 to index
    %357 = memref.load %arg1[%356] : memref<32xi32, #tpu.memory_space<smem>>
    %358 = arith.index_cast %355 : i32 to index
    %c0_125 = arith.constant 0 : index
    %359 = vector.load %arg22[%358, %c0_125] : memref<16x128xf32, #tpu.memory_space<vmem>>, vector<1x128xf32>
    %360 = arith.index_cast %c21_i32 : i32 to index
    %c0_126 = arith.constant 0 : index
    %361 = vector.load %arg23[%360, %c0_126] : memref<32x128xf32, #tpu.memory_space<vmem>>, vector<1x128xf32>
    %362 = arith.addf %359, %361 : vector<1x128xf32>
    %cst_127 = arith.constant 0.000000e+00 : f32
    %363 = vector.broadcast %cst_127 : f32 to vector<1x128xf32>
    %364 = arith.maximumf %362, %363 : vector<1x128xf32>
    %365 = arith.index_cast %357 : i32 to index
    %c0_128 = arith.constant 0 : index
    %366 = vector.load %arg24[%365, %c0_128] : memref<16x128xf32, #tpu.memory_space<vmem>>, vector<1x128xf32>
    %367 = arith.addf %366, %364 : vector<1x128xf32>
    %368 = arith.index_cast %357 : i32 to index
    %c0_129 = arith.constant 0 : index
    %369 = vector.load %arg24[%368, %c0_129] : memref<16x128xf32, #tpu.memory_space<vmem>>, vector<1x128xf32>
    tpu.vector_store %arg24[%368, %c0_129], %367 {strides = array<i32>} : memref<16x128xf32, #tpu.memory_space<vmem>>, vector<1x128xf32>,
    %c22_i32 = arith.constant 22 : i32
    %370 = arith.index_cast %c22_i32 : i32 to index
    %371 = memref.load %arg0[%370] : memref<32xi32, #tpu.memory_space<smem>>
    %372 = arith.index_cast %c22_i32 : i32 to index
    %373 = memref.load %arg1[%372] : memref<32xi32, #tpu.memory_space<smem>>
    %374 = arith.index_cast %371 : i32 to index
    %c0_130 = arith.constant 0 : index
    %375 = vector.load %arg22[%374, %c0_130] : memref<16x128xf32, #tpu.memory_space<vmem>>, vector<1x128xf32>
    %376 = arith.index_cast %c22_i32 : i32 to index
    %c0_131 = arith.constant 0 : index
    %377 = vector.load %arg23[%376, %c0_131] : memref<32x128xf32, #tpu.memory_space<vmem>>, vector<1x128xf32>
    %378 = arith.addf %375, %377 : vector<1x128xf32>
    %cst_132 = arith.constant 0.000000e+00 : f32
    %379 = vector.broadcast %cst_132 : f32 to vector<1x128xf32>
    %380 = arith.maximumf %378, %379 : vector<1x128xf32>
    %381 = arith.index_cast %373 : i32 to index
    %c0_133 = arith.constant 0 : index
    %382 = vector.load %arg24[%381, %c0_133] : memref<16x128xf32, #tpu.memory_space<vmem>>, vector<1x128xf32>
    %383 = arith.addf %382, %380 : vector<1x128xf32>
    %384 = arith.index_cast %373 : i32 to index
    %c0_134 = arith.constant 0 : index
    %385 = vector.load %arg24[%384, %c0_134] : memref<16x128xf32, #tpu.memory_space<vmem>>, vector<1x128xf32>
    tpu.vector_store %arg24[%384, %c0_134], %383 {strides = array<i32>} : memref<16x128xf32, #tpu.memory_space<vmem>>, vector<1x128xf32>,
    %c23_i32 = arith.constant 23 : i32
    %386 = arith.index_cast %c23_i32 : i32 to index
    %387 = memref.load %arg0[%386] : memref<32xi32, #tpu.memory_space<smem>>
    %388 = arith.index_cast %c23_i32 : i32 to index
    %389 = memref.load %arg1[%388] : memref<32xi32, #tpu.memory_space<smem>>
    %390 = arith.index_cast %387 : i32 to index
    %c0_135 = arith.constant 0 : index
    %391 = vector.load %arg22[%390, %c0_135] : memref<16x128xf32, #tpu.memory_space<vmem>>, vector<1x128xf32>
    %392 = arith.index_cast %c23_i32 : i32 to index
    %c0_136 = arith.constant 0 : index
    %393 = vector.load %arg23[%392, %c0_136] : memref<32x128xf32, #tpu.memory_space<vmem>>, vector<1x128xf32>
    %394 = arith.addf %391, %393 : vector<1x128xf32>
    %cst_137 = arith.constant 0.000000e+00 : f32
    %395 = vector.broadcast %cst_137 : f32 to vector<1x128xf32>
    %396 = arith.maximumf %394, %395 : vector<1x128xf32>
    %397 = arith.index_cast %389 : i32 to index
    %c0_138 = arith.constant 0 : index
    %398 = vector.load %arg24[%397, %c0_138] : memref<16x128xf32, #tpu.memory_space<vmem>>, vector<1x128xf32>
    %399 = arith.addf %398, %396 : vector<1x128xf32>
    %400 = arith.index_cast %389 : i32 to index
    %c0_139 = arith.constant 0 : index
    %401 = vector.load %arg24[%400, %c0_139] : memref<16x128xf32, #tpu.memory_space<vmem>>, vector<1x128xf32>
    tpu.vector_store %arg24[%400, %c0_139], %399 {strides = array<i32>} : memref<16x128xf32, #tpu.memory_space<vmem>>, vector<1x128xf32>,
    %c24_i32 = arith.constant 24 : i32
    %402 = arith.index_cast %c24_i32 : i32 to index
    %403 = memref.load %arg0[%402] : memref<32xi32, #tpu.memory_space<smem>>
    %404 = arith.index_cast %c24_i32 : i32 to index
    %405 = memref.load %arg1[%404] : memref<32xi32, #tpu.memory_space<smem>>
    %406 = arith.index_cast %403 : i32 to index
    %c0_140 = arith.constant 0 : index
    %407 = vector.load %arg22[%406, %c0_140] : memref<16x128xf32, #tpu.memory_space<vmem>>, vector<1x128xf32>
    %408 = arith.index_cast %c24_i32 : i32 to index
    %c0_141 = arith.constant 0 : index
    %409 = vector.load %arg23[%408, %c0_141] : memref<32x128xf32, #tpu.memory_space<vmem>>, vector<1x128xf32>
    %410 = arith.addf %407, %409 : vector<1x128xf32>
    %cst_142 = arith.constant 0.000000e+00 : f32
    %411 = vector.broadcast %cst_142 : f32 to vector<1x128xf32>
    %412 = arith.maximumf %410, %411 : vector<1x128xf32>
    %413 = arith.index_cast %405 : i32 to index
    %c0_143 = arith.constant 0 : index
    %414 = vector.load %arg24[%413, %c0_143] : memref<16x128xf32, #tpu.memory_space<vmem>>, vector<1x128xf32>
    %415 = arith.addf %414, %412 : vector<1x128xf32>
    %416 = arith.index_cast %405 : i32 to index
    %c0_144 = arith.constant 0 : index
    %417 = vector.load %arg24[%416, %c0_144] : memref<16x128xf32, #tpu.memory_space<vmem>>, vector<1x128xf32>
    tpu.vector_store %arg24[%416, %c0_144], %415 {strides = array<i32>} : memref<16x128xf32, #tpu.memory_space<vmem>>, vector<1x128xf32>,
    %c25_i32 = arith.constant 25 : i32
    %418 = arith.index_cast %c25_i32 : i32 to index
    %419 = memref.load %arg0[%418] : memref<32xi32, #tpu.memory_space<smem>>
    %420 = arith.index_cast %c25_i32 : i32 to index
    %421 = memref.load %arg1[%420] : memref<32xi32, #tpu.memory_space<smem>>
    %422 = arith.index_cast %419 : i32 to index
    %c0_145 = arith.constant 0 : index
    %423 = vector.load %arg22[%422, %c0_145] : memref<16x128xf32, #tpu.memory_space<vmem>>, vector<1x128xf32>
    %424 = arith.index_cast %c25_i32 : i32 to index
    %c0_146 = arith.constant 0 : index
    %425 = vector.load %arg23[%424, %c0_146] : memref<32x128xf32, #tpu.memory_space<vmem>>, vector<1x128xf32>
    %426 = arith.addf %423, %425 : vector<1x128xf32>
    %cst_147 = arith.constant 0.000000e+00 : f32
    %427 = vector.broadcast %cst_147 : f32 to vector<1x128xf32>
    %428 = arith.maximumf %426, %427 : vector<1x128xf32>
    %429 = arith.index_cast %421 : i32 to index
    %c0_148 = arith.constant 0 : index
    %430 = vector.load %arg24[%429, %c0_148] : memref<16x128xf32, #tpu.memory_space<vmem>>, vector<1x128xf32>
    %431 = arith.addf %430, %428 : vector<1x128xf32>
    %432 = arith.index_cast %421 : i32 to index
    %c0_149 = arith.constant 0 : index
    %433 = vector.load %arg24[%432, %c0_149] : memref<16x128xf32, #tpu.memory_space<vmem>>, vector<1x128xf32>
    tpu.vector_store %arg24[%432, %c0_149], %431 {strides = array<i32>} : memref<16x128xf32, #tpu.memory_space<vmem>>, vector<1x128xf32>,
    %c26_i32 = arith.constant 26 : i32
    %434 = arith.index_cast %c26_i32 : i32 to index
    %435 = memref.load %arg0[%434] : memref<32xi32, #tpu.memory_space<smem>>
    %436 = arith.index_cast %c26_i32 : i32 to index
    %437 = memref.load %arg1[%436] : memref<32xi32, #tpu.memory_space<smem>>
    %438 = arith.index_cast %435 : i32 to index
    %c0_150 = arith.constant 0 : index
    %439 = vector.load %arg22[%438, %c0_150] : memref<16x128xf32, #tpu.memory_space<vmem>>, vector<1x128xf32>
    %440 = arith.index_cast %c26_i32 : i32 to index
    %c0_151 = arith.constant 0 : index
    %441 = vector.load %arg23[%440, %c0_151] : memref<32x128xf32, #tpu.memory_space<vmem>>, vector<1x128xf32>
    %442 = arith.addf %439, %441 : vector<1x128xf32>
    %cst_152 = arith.constant 0.000000e+00 : f32
    %443 = vector.broadcast %cst_152 : f32 to vector<1x128xf32>
    %444 = arith.maximumf %442, %443 : vector<1x128xf32>
    %445 = arith.index_cast %437 : i32 to index
    %c0_153 = arith.constant 0 : index
    %446 = vector.load %arg24[%445, %c0_153] : memref<16x128xf32, #tpu.memory_space<vmem>>, vector<1x128xf32>
    %447 = arith.addf %446, %444 : vector<1x128xf32>
    %448 = arith.index_cast %437 : i32 to index
    %c0_154 = arith.constant 0 : index
    %449 = vector.load %arg24[%448, %c0_154] : memref<16x128xf32, #tpu.memory_space<vmem>>, vector<1x128xf32>
    tpu.vector_store %arg24[%448, %c0_154], %447 {strides = array<i32>} : memref<16x128xf32, #tpu.memory_space<vmem>>, vector<1x128xf32>,
    %c27_i32 = arith.constant 27 : i32
    %450 = arith.index_cast %c27_i32 : i32 to index
    %451 = memref.load %arg0[%450] : memref<32xi32, #tpu.memory_space<smem>>
    %452 = arith.index_cast %c27_i32 : i32 to index
    %453 = memref.load %arg1[%452] : memref<32xi32, #tpu.memory_space<smem>>
    %454 = arith.index_cast %451 : i32 to index
    %c0_155 = arith.constant 0 : index
    %455 = vector.load %arg22[%454, %c0_155] : memref<16x128xf32, #tpu.memory_space<vmem>>, vector<1x128xf32>
    %456 = arith.index_cast %c27_i32 : i32 to index
    %c0_156 = arith.constant 0 : index
    %457 = vector.load %arg23[%456, %c0_156] : memref<32x128xf32, #tpu.memory_space<vmem>>, vector<1x128xf32>
    %458 = arith.addf %455, %457 : vector<1x128xf32>
    %cst_157 = arith.constant 0.000000e+00 : f32
    %459 = vector.broadcast %cst_157 : f32 to vector<1x128xf32>
    %460 = arith.maximumf %458, %459 : vector<1x128xf32>
    %461 = arith.index_cast %453 : i32 to index
    %c0_158 = arith.constant 0 : index
    %462 = vector.load %arg24[%461, %c0_158] : memref<16x128xf32, #tpu.memory_space<vmem>>, vector<1x128xf32>
    %463 = arith.addf %462, %460 : vector<1x128xf32>
    %464 = arith.index_cast %453 : i32 to index
    %c0_159 = arith.constant 0 : index
    %465 = vector.load %arg24[%464, %c0_159] : memref<16x128xf32, #tpu.memory_space<vmem>>, vector<1x128xf32>
    tpu.vector_store %arg24[%464, %c0_159], %463 {strides = array<i32>} : memref<16x128xf32, #tpu.memory_space<vmem>>, vector<1x128xf32>,
    %c28_i32 = arith.constant 28 : i32
    %466 = arith.index_cast %c28_i32 : i32 to index
    %467 = memref.load %arg0[%466] : memref<32xi32, #tpu.memory_space<smem>>
    %468 = arith.index_cast %c28_i32 : i32 to index
    %469 = memref.load %arg1[%468] : memref<32xi32, #tpu.memory_space<smem>>
    %470 = arith.index_cast %467 : i32 to index
    %c0_160 = arith.constant 0 : index
    %471 = vector.load %arg22[%470, %c0_160] : memref<16x128xf32, #tpu.memory_space<vmem>>, vector<1x128xf32>
    %472 = arith.index_cast %c28_i32 : i32 to index
    %c0_161 = arith.constant 0 : index
    %473 = vector.load %arg23[%472, %c0_161] : memref<32x128xf32, #tpu.memory_space<vmem>>, vector<1x128xf32>
    %474 = arith.addf %471, %473 : vector<1x128xf32>
    %cst_162 = arith.constant 0.000000e+00 : f32
    %475 = vector.broadcast %cst_162 : f32 to vector<1x128xf32>
    %476 = arith.maximumf %474, %475 : vector<1x128xf32>
    %477 = arith.index_cast %469 : i32 to index
    %c0_163 = arith.constant 0 : index
    %478 = vector.load %arg24[%477, %c0_163] : memref<16x128xf32, #tpu.memory_space<vmem>>, vector<1x128xf32>
    %479 = arith.addf %478, %476 : vector<1x128xf32>
    %480 = arith.index_cast %469 : i32 to index
    %c0_164 = arith.constant 0 : index
    %481 = vector.load %arg24[%480, %c0_164] : memref<16x128xf32, #tpu.memory_space<vmem>>, vector<1x128xf32>
    tpu.vector_store %arg24[%480, %c0_164], %479 {strides = array<i32>} : memref<16x128xf32, #tpu.memory_space<vmem>>, vector<1x128xf32>,
    %c29_i32 = arith.constant 29 : i32
    %482 = arith.index_cast %c29_i32 : i32 to index
    %483 = memref.load %arg0[%482] : memref<32xi32, #tpu.memory_space<smem>>
    %484 = arith.index_cast %c29_i32 : i32 to index
    %485 = memref.load %arg1[%484] : memref<32xi32, #tpu.memory_space<smem>>
    %486 = arith.index_cast %483 : i32 to index
    %c0_165 = arith.constant 0 : index
    %487 = vector.load %arg22[%486, %c0_165] : memref<16x128xf32, #tpu.memory_space<vmem>>, vector<1x128xf32>
    %488 = arith.index_cast %c29_i32 : i32 to index
    %c0_166 = arith.constant 0 : index
    %489 = vector.load %arg23[%488, %c0_166] : memref<32x128xf32, #tpu.memory_space<vmem>>, vector<1x128xf32>
    %490 = arith.addf %487, %489 : vector<1x128xf32>
    %cst_167 = arith.constant 0.000000e+00 : f32
    %491 = vector.broadcast %cst_167 : f32 to vector<1x128xf32>
    %492 = arith.maximumf %490, %491 : vector<1x128xf32>
    %493 = arith.index_cast %485 : i32 to index
    %c0_168 = arith.constant 0 : index
    %494 = vector.load %arg24[%493, %c0_168] : memref<16x128xf32, #tpu.memory_space<vmem>>, vector<1x128xf32>
    %495 = arith.addf %494, %492 : vector<1x128xf32>
    %496 = arith.index_cast %485 : i32 to index
    %c0_169 = arith.constant 0 : index
    %497 = vector.load %arg24[%496, %c0_169] : memref<16x128xf32, #tpu.memory_space<vmem>>, vector<1x128xf32>
    tpu.vector_store %arg24[%496, %c0_169], %495 {strides = array<i32>} : memref<16x128xf32, #tpu.memory_space<vmem>>, vector<1x128xf32>,
    %c30_i32 = arith.constant 30 : i32
    %498 = arith.index_cast %c30_i32 : i32 to index
    %499 = memref.load %arg0[%498] : memref<32xi32, #tpu.memory_space<smem>>
    %500 = arith.index_cast %c30_i32 : i32 to index
    %501 = memref.load %arg1[%500] : memref<32xi32, #tpu.memory_space<smem>>
    %502 = arith.index_cast %499 : i32 to index
    %c0_170 = arith.constant 0 : index
    %503 = vector.load %arg22[%502, %c0_170] : memref<16x128xf32, #tpu.memory_space<vmem>>, vector<1x128xf32>
    %504 = arith.index_cast %c30_i32 : i32 to index
    %c0_171 = arith.constant 0 : index
    %505 = vector.load %arg23[%504, %c0_171] : memref<32x128xf32, #tpu.memory_space<vmem>>, vector<1x128xf32>
    %506 = arith.addf %503, %505 : vector<1x128xf32>
    %cst_172 = arith.constant 0.000000e+00 : f32
    %507 = vector.broadcast %cst_172 : f32 to vector<1x128xf32>
    %508 = arith.maximumf %506, %507 : vector<1x128xf32>
    %509 = arith.index_cast %501 : i32 to index
    %c0_173 = arith.constant 0 : index
    %510 = vector.load %arg24[%509, %c0_173] : memref<16x128xf32, #tpu.memory_space<vmem>>, vector<1x128xf32>
    %511 = arith.addf %510, %508 : vector<1x128xf32>
    %512 = arith.index_cast %501 : i32 to index
    %c0_174 = arith.constant 0 : index
    %513 = vector.load %arg24[%512, %c0_174] : memref<16x128xf32, #tpu.memory_space<vmem>>, vector<1x128xf32>
    tpu.vector_store %arg24[%512, %c0_174], %511 {strides = array<i32>} : memref<16x128xf32, #tpu.memory_space<vmem>>, vector<1x128xf32>,
    %c31_i32 = arith.constant 31 : i32
    %514 = arith.index_cast %c31_i32 : i32 to index
    %515 = memref.load %arg0[%514] : memref<32xi32, #tpu.memory_space<smem>>
    %516 = arith.index_cast %c31_i32 : i32 to index
    %517 = memref.load %arg1[%516] : memref<32xi32, #tpu.memory_space<smem>>
    %518 = arith.index_cast %515 : i32 to index
    %c0_175 = arith.constant 0 : index
    %519 = vector.load %arg22[%518, %c0_175] : memref<16x128xf32, #tpu.memory_space<vmem>>, vector<1x128xf32>
    %520 = arith.index_cast %c31_i32 : i32 to index
    %c0_176 = arith.constant 0 : index
    %521 = vector.load %arg23[%520, %c0_176] : memref<32x128xf32, #tpu.memory_space<vmem>>, vector<1x128xf32>
    %522 = arith.addf %519, %521 : vector<1x128xf32>
    %cst_177 = arith.constant 0.000000e+00 : f32
    %523 = vector.broadcast %cst_177 : f32 to vector<1x128xf32>
    %524 = arith.maximumf %522, %523 : vector<1x128xf32>
    %525 = arith.index_cast %517 : i32 to index
    %c0_178 = arith.constant 0 : index
    %526 = vector.load %arg24[%525, %c0_178] : memref<16x128xf32, #tpu.memory_space<vmem>>, vector<1x128xf32>
    %527 = arith.addf %526, %524 : vector<1x128xf32>
    %528 = arith.index_cast %517 : i32 to index
    %c0_179 = arith.constant 0 : index
    %529 = vector.load %arg24[%528, %c0_179] : memref<16x128xf32, #tpu.memory_space<vmem>>, vector<1x128xf32>
    tpu.vector_store %arg24[%528, %c0_179], %527 {strides = array<i32>} : memref<16x128xf32, #tpu.memory_space<vmem>>, vector<1x128xf32>,
    %c32_i32 = arith.constant 32 : i32
    %c0_180 = arith.constant 0 : index
    %c0_181 = arith.constant 0 : index
    %530 = vector.load %arg22[%c0_180, %c0_181] : memref<16x128xf32, #tpu.memory_space<vmem>>, vector<16x128xf32>
    %c0_182 = arith.constant 0 : index
    %c0_183 = arith.constant 0 : index
    %531 = vector.load %arg24[%c0_182, %c0_183] : memref<16x128xf32, #tpu.memory_space<vmem>>, vector<16x128xf32>
    %532 = arith.addf %530, %531 : vector<16x128xf32>
    %533 = arith.truncf %532 : vector<16x128xf32> to vector<16x128xbf16>
    %c0_184 = arith.constant 0 : index
    %c0_185 = arith.constant 0 : index
    %534 = vector.load %arg9[%c0_184, %c0_185] : memref<128x256xbf16, #tpu.memory_space<vmem>>, vector<128x256xbf16>
    %cst_186 = arith.constant dense<0.000000e+00> : vector<16x256xf32>
    %535 = tpu.matmul %533, %534, %cst_186 {dimension_numbers = #tpu.dot_dimension_numbers<[1], [0], [0], [1], [0, 0, 1, 1], [], []>} : vector<16x128xbf16>, vector<128x256xbf16>, vector<16x256xf32> -> vector<16x256xf32>
    %c0_187 = arith.constant 0 : index
    %c0_188 = arith.constant 0 : index
    %536 = vector.load %arg10[%c0_187, %c0_188] : memref<1x256xf32, #tpu.memory_space<vmem>>, vector<1x256xf32>
    %537 = vector.broadcast %536 : vector<1x256xf32> to vector<16x256xf32>
    %538 = arith.addf %535, %537 : vector<16x256xf32>
    %cst_189 = arith.constant 0.000000e+00 : f32
    %539 = vector.broadcast %cst_189 : f32 to vector<16x256xf32>
    %540 = arith.maximumf %538, %539 : vector<16x256xf32>
    %541 = arith.truncf %540 : vector<16x256xf32> to vector<16x256xbf16>
    %c0_190 = arith.constant 0 : index
    %c0_191 = arith.constant 0 : index
    %542 = vector.load %arg11[%c0_190, %c0_191] : memref<256x128xbf16, #tpu.memory_space<vmem>>, vector<256x128xbf16>
    %cst_192 = arith.constant dense<0.000000e+00> : vector<16x128xf32>
    %543 = tpu.matmul %541, %542, %cst_192 {dimension_numbers = #tpu.dot_dimension_numbers<[1], [0], [0], [1], [0, 0, 1, 1], [], []>} : vector<16x256xbf16>, vector<256x128xbf16>, vector<16x128xf32> -> vector<16x128xf32>
    %c0_193 = arith.constant 0 : index
    %c0_194 = arith.constant 0 : index
    %544 = vector.load %arg12[%c0_193, %c0_194] : memref<1x128xf32, #tpu.memory_space<vmem>>, vector<1x128xf32>
    %545 = vector.broadcast %544 : vector<1x128xf32> to vector<16x128xf32>
    %546 = arith.addf %543, %545 : vector<16x128xf32>
    %cst_195 = arith.constant 0.000000e+00 : f32
    %547 = vector.broadcast %cst_195 : f32 to vector<16x128xf32>
    %548 = arith.maximumf %546, %547 : vector<16x128xf32>
    %c0_196 = arith.constant 0 : index
    %c0_197 = arith.constant 0 : index
    %549 = vector.load %arg25[%c0_196, %c0_197] : memref<16x128xf32, #tpu.memory_space<vmem>>, vector<16x128xf32>
    tpu.vector_store %arg25[%c0_196, %c0_197], %548 {strides = array<i32>} : memref<16x128xf32, #tpu.memory_space<vmem>>, vector<16x128xf32>,
    %cst_198 = arith.constant 0.000000e+00 : f32
    %550 = vector.broadcast %cst_198 : f32 to vector<8x128xf32>
    %c0_199 = arith.constant 0 : index
    %c0_200 = arith.constant 0 : index
    %551 = vector.load %arg26[%c0_199, %c0_200] : memref<8x128xf32, #tpu.memory_space<vmem>>, vector<8x128xf32>
    tpu.vector_store %arg26[%c0_199, %c0_200], %550 {strides = array<i32>} : memref<8x128xf32, #tpu.memory_space<vmem>>, vector<8x128xf32>,
    %c0_i32_201 = arith.constant 0 : i32
    %552 = arith.index_cast %c0_i32_201 : i32 to index
    %553 = memref.load %arg2[%552] : memref<16xi32, #tpu.memory_space<smem>>
    %554 = arith.index_cast %553 : i32 to index
    %c0_202 = arith.constant 0 : index
    %555 = vector.load %arg26[%554, %c0_202] : memref<8x128xf32, #tpu.memory_space<vmem>>, vector<1x128xf32>
    %556 = arith.index_cast %c0_i32_201 : i32 to index
    %c0_203 = arith.constant 0 : index
    %557 = vector.load %arg25[%556, %c0_203] : memref<16x128xf32, #tpu.memory_space<vmem>>, vector<1x128xf32>
    %558 = arith.addf %555, %557 : vector<1x128xf32>
    %559 = arith.index_cast %553 : i32 to index
    %c0_204 = arith.constant 0 : index
    %560 = vector.load %arg26[%559, %c0_204] : memref<8x128xf32, #tpu.memory_space<vmem>>, vector<1x128xf32>
    tpu.vector_store %arg26[%559, %c0_204], %558 {strides = array<i32>} : memref<8x128xf32, #tpu.memory_space<vmem>>, vector<1x128xf32>,
    %c1_i32_205 = arith.constant 1 : i32
    %561 = arith.index_cast %c1_i32_205 : i32 to index
    %562 = memref.load %arg2[%561] : memref<16xi32, #tpu.memory_space<smem>>
    %563 = arith.index_cast %562 : i32 to index
    %c0_206 = arith.constant 0 : index
    %564 = vector.load %arg26[%563, %c0_206] : memref<8x128xf32, #tpu.memory_space<vmem>>, vector<1x128xf32>
    %565 = arith.index_cast %c1_i32_205 : i32 to index
    %c0_207 = arith.constant 0 : index
    %566 = vector.load %arg25[%565, %c0_207] : memref<16x128xf32, #tpu.memory_space<vmem>>, vector<1x128xf32>
    %567 = arith.addf %564, %566 : vector<1x128xf32>
    %568 = arith.index_cast %562 : i32 to index
    %c0_208 = arith.constant 0 : index
    %569 = vector.load %arg26[%568, %c0_208] : memref<8x128xf32, #tpu.memory_space<vmem>>, vector<1x128xf32>
    tpu.vector_store %arg26[%568, %c0_208], %567 {strides = array<i32>} : memref<8x128xf32, #tpu.memory_space<vmem>>, vector<1x128xf32>,
    %c2_i32_209 = arith.constant 2 : i32
    %570 = arith.index_cast %c2_i32_209 : i32 to index
    %571 = memref.load %arg2[%570] : memref<16xi32, #tpu.memory_space<smem>>
    %572 = arith.index_cast %571 : i32 to index
    %c0_210 = arith.constant 0 : index
    %573 = vector.load %arg26[%572, %c0_210] : memref<8x128xf32, #tpu.memory_space<vmem>>, vector<1x128xf32>
    %574 = arith.index_cast %c2_i32_209 : i32 to index
    %c0_211 = arith.constant 0 : index
    %575 = vector.load %arg25[%574, %c0_211] : memref<16x128xf32, #tpu.memory_space<vmem>>, vector<1x128xf32>
    %576 = arith.addf %573, %575 : vector<1x128xf32>
    %577 = arith.index_cast %571 : i32 to index
    %c0_212 = arith.constant 0 : index
    %578 = vector.load %arg26[%577, %c0_212] : memref<8x128xf32, #tpu.memory_space<vmem>>, vector<1x128xf32>
    tpu.vector_store %arg26[%577, %c0_212], %576 {strides = array<i32>} : memref<8x128xf32, #tpu.memory_space<vmem>>, vector<1x128xf32>,
    %c3_i32_213 = arith.constant 3 : i32
    %579 = arith.index_cast %c3_i32_213 : i32 to index
    %580 = memref.load %arg2[%579] : memref<16xi32, #tpu.memory_space<smem>>
    %581 = arith.index_cast %580 : i32 to index
    %c0_214 = arith.constant 0 : index
    %582 = vector.load %arg26[%581, %c0_214] : memref<8x128xf32, #tpu.memory_space<vmem>>, vector<1x128xf32>
    %583 = arith.index_cast %c3_i32_213 : i32 to index
    %c0_215 = arith.constant 0 : index
    %584 = vector.load %arg25[%583, %c0_215] : memref<16x128xf32, #tpu.memory_space<vmem>>, vector<1x128xf32>
    %585 = arith.addf %582, %584 : vector<1x128xf32>
    %586 = arith.index_cast %580 : i32 to index
    %c0_216 = arith.constant 0 : index
    %587 = vector.load %arg26[%586, %c0_216] : memref<8x128xf32, #tpu.memory_space<vmem>>, vector<1x128xf32>
    tpu.vector_store %arg26[%586, %c0_216], %585 {strides = array<i32>} : memref<8x128xf32, #tpu.memory_space<vmem>>, vector<1x128xf32>,
    %c4_i32_217 = arith.constant 4 : i32
    %588 = arith.index_cast %c4_i32_217 : i32 to index
    %589 = memref.load %arg2[%588] : memref<16xi32, #tpu.memory_space<smem>>
    %590 = arith.index_cast %589 : i32 to index
    %c0_218 = arith.constant 0 : index
    %591 = vector.load %arg26[%590, %c0_218] : memref<8x128xf32, #tpu.memory_space<vmem>>, vector<1x128xf32>
    %592 = arith.index_cast %c4_i32_217 : i32 to index
    %c0_219 = arith.constant 0 : index
    %593 = vector.load %arg25[%592, %c0_219] : memref<16x128xf32, #tpu.memory_space<vmem>>, vector<1x128xf32>
    %594 = arith.addf %591, %593 : vector<1x128xf32>
    %595 = arith.index_cast %589 : i32 to index
    %c0_220 = arith.constant 0 : index
    %596 = vector.load %arg26[%595, %c0_220] : memref<8x128xf32, #tpu.memory_space<vmem>>, vector<1x128xf32>
    tpu.vector_store %arg26[%595, %c0_220], %594 {strides = array<i32>} : memref<8x128xf32, #tpu.memory_space<vmem>>, vector<1x128xf32>,
    %c5_i32_221 = arith.constant 5 : i32
    %597 = arith.index_cast %c5_i32_221 : i32 to index
    %598 = memref.load %arg2[%597] : memref<16xi32, #tpu.memory_space<smem>>
    %599 = arith.index_cast %598 : i32 to index
    %c0_222 = arith.constant 0 : index
    %600 = vector.load %arg26[%599, %c0_222] : memref<8x128xf32, #tpu.memory_space<vmem>>, vector<1x128xf32>
    %601 = arith.index_cast %c5_i32_221 : i32 to index
    %c0_223 = arith.constant 0 : index
    %602 = vector.load %arg25[%601, %c0_223] : memref<16x128xf32, #tpu.memory_space<vmem>>, vector<1x128xf32>
    %603 = arith.addf %600, %602 : vector<1x128xf32>
    %604 = arith.index_cast %598 : i32 to index
    %c0_224 = arith.constant 0 : index
    %605 = vector.load %arg26[%604, %c0_224] : memref<8x128xf32, #tpu.memory_space<vmem>>, vector<1x128xf32>
    tpu.vector_store %arg26[%604, %c0_224], %603 {strides = array<i32>} : memref<8x128xf32, #tpu.memory_space<vmem>>, vector<1x128xf32>,
    %c6_i32_225 = arith.constant 6 : i32
    %606 = arith.index_cast %c6_i32_225 : i32 to index
    %607 = memref.load %arg2[%606] : memref<16xi32, #tpu.memory_space<smem>>
    %608 = arith.index_cast %607 : i32 to index
    %c0_226 = arith.constant 0 : index
    %609 = vector.load %arg26[%608, %c0_226] : memref<8x128xf32, #tpu.memory_space<vmem>>, vector<1x128xf32>
    %610 = arith.index_cast %c6_i32_225 : i32 to index
    %c0_227 = arith.constant 0 : index
    %611 = vector.load %arg25[%610, %c0_227] : memref<16x128xf32, #tpu.memory_space<vmem>>, vector<1x128xf32>
    %612 = arith.addf %609, %611 : vector<1x128xf32>
    %613 = arith.index_cast %607 : i32 to index
    %c0_228 = arith.constant 0 : index
    %614 = vector.load %arg26[%613, %c0_228] : memref<8x128xf32, #tpu.memory_space<vmem>>, vector<1x128xf32>
    tpu.vector_store %arg26[%613, %c0_228], %612 {strides = array<i32>} : memref<8x128xf32, #tpu.memory_space<vmem>>, vector<1x128xf32>,
    %c7_i32_229 = arith.constant 7 : i32
    %615 = arith.index_cast %c7_i32_229 : i32 to index
    %616 = memref.load %arg2[%615] : memref<16xi32, #tpu.memory_space<smem>>
    %617 = arith.index_cast %616 : i32 to index
    %c0_230 = arith.constant 0 : index
    %618 = vector.load %arg26[%617, %c0_230] : memref<8x128xf32, #tpu.memory_space<vmem>>, vector<1x128xf32>
    %619 = arith.index_cast %c7_i32_229 : i32 to index
    %c0_231 = arith.constant 0 : index
    %620 = vector.load %arg25[%619, %c0_231] : memref<16x128xf32, #tpu.memory_space<vmem>>, vector<1x128xf32>
    %621 = arith.addf %618, %620 : vector<1x128xf32>
    %622 = arith.index_cast %616 : i32 to index
    %c0_232 = arith.constant 0 : index
    %623 = vector.load %arg26[%622, %c0_232] : memref<8x128xf32, #tpu.memory_space<vmem>>, vector<1x128xf32>
    tpu.vector_store %arg26[%622, %c0_232], %621 {strides = array<i32>} : memref<8x128xf32, #tpu.memory_space<vmem>>, vector<1x128xf32>,
    %c8_i32_233 = arith.constant 8 : i32
    %624 = arith.index_cast %c8_i32_233 : i32 to index
    %625 = memref.load %arg2[%624] : memref<16xi32, #tpu.memory_space<smem>>
    %626 = arith.index_cast %625 : i32 to index
    %c0_234 = arith.constant 0 : index
    %627 = vector.load %arg26[%626, %c0_234] : memref<8x128xf32, #tpu.memory_space<vmem>>, vector<1x128xf32>
    %628 = arith.index_cast %c8_i32_233 : i32 to index
    %c0_235 = arith.constant 0 : index
    %629 = vector.load %arg25[%628, %c0_235] : memref<16x128xf32, #tpu.memory_space<vmem>>, vector<1x128xf32>
    %630 = arith.addf %627, %629 : vector<1x128xf32>
    %631 = arith.index_cast %625 : i32 to index
    %c0_236 = arith.constant 0 : index
    %632 = vector.load %arg26[%631, %c0_236] : memref<8x128xf32, #tpu.memory_space<vmem>>, vector<1x128xf32>
    tpu.vector_store %arg26[%631, %c0_236], %630 {strides = array<i32>} : memref<8x128xf32, #tpu.memory_space<vmem>>, vector<1x128xf32>,
    %c9_i32_237 = arith.constant 9 : i32
    %633 = arith.index_cast %c9_i32_237 : i32 to index
    %634 = memref.load %arg2[%633] : memref<16xi32, #tpu.memory_space<smem>>
    %635 = arith.index_cast %634 : i32 to index
    %c0_238 = arith.constant 0 : index
    %636 = vector.load %arg26[%635, %c0_238] : memref<8x128xf32, #tpu.memory_space<vmem>>, vector<1x128xf32>
    %637 = arith.index_cast %c9_i32_237 : i32 to index
    %c0_239 = arith.constant 0 : index
    %638 = vector.load %arg25[%637, %c0_239] : memref<16x128xf32, #tpu.memory_space<vmem>>, vector<1x128xf32>
    %639 = arith.addf %636, %638 : vector<1x128xf32>
    %640 = arith.index_cast %634 : i32 to index
    %c0_240 = arith.constant 0 : index
    %641 = vector.load %arg26[%640, %c0_240] : memref<8x128xf32, #tpu.memory_space<vmem>>, vector<1x128xf32>
    tpu.vector_store %arg26[%640, %c0_240], %639 {strides = array<i32>} : memref<8x128xf32, #tpu.memory_space<vmem>>, vector<1x128xf32>,
    %c10_i32_241 = arith.constant 10 : i32
    %642 = arith.index_cast %c10_i32_241 : i32 to index
    %643 = memref.load %arg2[%642] : memref<16xi32, #tpu.memory_space<smem>>
    %644 = arith.index_cast %643 : i32 to index
    %c0_242 = arith.constant 0 : index
    %645 = vector.load %arg26[%644, %c0_242] : memref<8x128xf32, #tpu.memory_space<vmem>>, vector<1x128xf32>
    %646 = arith.index_cast %c10_i32_241 : i32 to index
    %c0_243 = arith.constant 0 : index
    %647 = vector.load %arg25[%646, %c0_243] : memref<16x128xf32, #tpu.memory_space<vmem>>, vector<1x128xf32>
    %648 = arith.addf %645, %647 : vector<1x128xf32>
    %649 = arith.index_cast %643 : i32 to index
    %c0_244 = arith.constant 0 : index
    %650 = vector.load %arg26[%649, %c0_244] : memref<8x128xf32, #tpu.memory_space<vmem>>, vector<1x128xf32>
    tpu.vector_store %arg26[%649, %c0_244], %648 {strides = array<i32>} : memref<8x128xf32, #tpu.memory_space<vmem>>, vector<1x128xf32>,
    %c11_i32_245 = arith.constant 11 : i32
    %651 = arith.index_cast %c11_i32_245 : i32 to index
    %652 = memref.load %arg2[%651] : memref<16xi32, #tpu.memory_space<smem>>
    %653 = arith.index_cast %652 : i32 to index
    %c0_246 = arith.constant 0 : index
    %654 = vector.load %arg26[%653, %c0_246] : memref<8x128xf32, #tpu.memory_space<vmem>>, vector<1x128xf32>
    %655 = arith.index_cast %c11_i32_245 : i32 to index
    %c0_247 = arith.constant 0 : index
    %656 = vector.load %arg25[%655, %c0_247] : memref<16x128xf32, #tpu.memory_space<vmem>>, vector<1x128xf32>
    %657 = arith.addf %654, %656 : vector<1x128xf32>
    %658 = arith.index_cast %652 : i32 to index
    %c0_248 = arith.constant 0 : index
    %659 = vector.load %arg26[%658, %c0_248] : memref<8x128xf32, #tpu.memory_space<vmem>>, vector<1x128xf32>
    tpu.vector_store %arg26[%658, %c0_248], %657 {strides = array<i32>} : memref<8x128xf32, #tpu.memory_space<vmem>>, vector<1x128xf32>,
    %c12_i32_249 = arith.constant 12 : i32
    %660 = arith.index_cast %c12_i32_249 : i32 to index
    %661 = memref.load %arg2[%660] : memref<16xi32, #tpu.memory_space<smem>>
    %662 = arith.index_cast %661 : i32 to index
    %c0_250 = arith.constant 0 : index
    %663 = vector.load %arg26[%662, %c0_250] : memref<8x128xf32, #tpu.memory_space<vmem>>, vector<1x128xf32>
    %664 = arith.index_cast %c12_i32_249 : i32 to index
    %c0_251 = arith.constant 0 : index
    %665 = vector.load %arg25[%664, %c0_251] : memref<16x128xf32, #tpu.memory_space<vmem>>, vector<1x128xf32>
    %666 = arith.addf %663, %665 : vector<1x128xf32>
    %667 = arith.index_cast %661 : i32 to index
    %c0_252 = arith.constant 0 : index
    %668 = vector.load %arg26[%667, %c0_252] : memref<8x128xf32, #tpu.memory_space<vmem>>, vector<1x128xf32>
    tpu.vector_store %arg26[%667, %c0_252], %666 {strides = array<i32>} : memref<8x128xf32, #tpu.memory_space<vmem>>, vector<1x128xf32>,
    %c13_i32_253 = arith.constant 13 : i32
    %669 = arith.index_cast %c13_i32_253 : i32 to index
    %670 = memref.load %arg2[%669] : memref<16xi32, #tpu.memory_space<smem>>
    %671 = arith.index_cast %670 : i32 to index
    %c0_254 = arith.constant 0 : index
    %672 = vector.load %arg26[%671, %c0_254] : memref<8x128xf32, #tpu.memory_space<vmem>>, vector<1x128xf32>
    %673 = arith.index_cast %c13_i32_253 : i32 to index
    %c0_255 = arith.constant 0 : index
    %674 = vector.load %arg25[%673, %c0_255] : memref<16x128xf32, #tpu.memory_space<vmem>>, vector<1x128xf32>
    %675 = arith.addf %672, %674 : vector<1x128xf32>
    %676 = arith.index_cast %670 : i32 to index
    %c0_256 = arith.constant 0 : index
    %677 = vector.load %arg26[%676, %c0_256] : memref<8x128xf32, #tpu.memory_space<vmem>>, vector<1x128xf32>
    tpu.vector_store %arg26[%676, %c0_256], %675 {strides = array<i32>} : memref<8x128xf32, #tpu.memory_space<vmem>>, vector<1x128xf32>,
    %c14_i32_257 = arith.constant 14 : i32
    %678 = arith.index_cast %c14_i32_257 : i32 to index
    %679 = memref.load %arg2[%678] : memref<16xi32, #tpu.memory_space<smem>>
    %680 = arith.index_cast %679 : i32 to index
    %c0_258 = arith.constant 0 : index
    %681 = vector.load %arg26[%680, %c0_258] : memref<8x128xf32, #tpu.memory_space<vmem>>, vector<1x128xf32>
    %682 = arith.index_cast %c14_i32_257 : i32 to index
    %c0_259 = arith.constant 0 : index
    %683 = vector.load %arg25[%682, %c0_259] : memref<16x128xf32, #tpu.memory_space<vmem>>, vector<1x128xf32>
    %684 = arith.addf %681, %683 : vector<1x128xf32>
    %685 = arith.index_cast %679 : i32 to index
    %c0_260 = arith.constant 0 : index
    %686 = vector.load %arg26[%685, %c0_260] : memref<8x128xf32, #tpu.memory_space<vmem>>, vector<1x128xf32>
    tpu.vector_store %arg26[%685, %c0_260], %684 {strides = array<i32>} : memref<8x128xf32, #tpu.memory_space<vmem>>, vector<1x128xf32>,
    %c15_i32_261 = arith.constant 15 : i32
    %687 = arith.index_cast %c15_i32_261 : i32 to index
    %688 = memref.load %arg2[%687] : memref<16xi32, #tpu.memory_space<smem>>
    %689 = arith.index_cast %688 : i32 to index
    %c0_262 = arith.constant 0 : index
    %690 = vector.load %arg26[%689, %c0_262] : memref<8x128xf32, #tpu.memory_space<vmem>>, vector<1x128xf32>
    %691 = arith.index_cast %c15_i32_261 : i32 to index
    %c0_263 = arith.constant 0 : index
    %692 = vector.load %arg25[%691, %c0_263] : memref<16x128xf32, #tpu.memory_space<vmem>>, vector<1x128xf32>
    %693 = arith.addf %690, %692 : vector<1x128xf32>
    %694 = arith.index_cast %688 : i32 to index
    %c0_264 = arith.constant 0 : index
    %695 = vector.load %arg26[%694, %c0_264] : memref<8x128xf32, #tpu.memory_space<vmem>>, vector<1x128xf32>
    tpu.vector_store %arg26[%694, %c0_264], %693 {strides = array<i32>} : memref<8x128xf32, #tpu.memory_space<vmem>>, vector<1x128xf32>,
    %c16_i32_265 = arith.constant 16 : i32
    %c0_266 = arith.constant 0 : index
    %c0_267 = arith.constant 0 : index
    %696 = vector.load %arg26[%c0_266, %c0_267] : memref<8x128xf32, #tpu.memory_space<vmem>>, vector<8x128xf32>
    %697 = arith.truncf %696 : vector<8x128xf32> to vector<8x128xbf16>
    %c0_268 = arith.constant 0 : index
    %c0_269 = arith.constant 0 : index
    %698 = vector.load %arg13[%c0_268, %c0_269] : memref<128x128xbf16, #tpu.memory_space<vmem>>, vector<128x128xbf16>
    %cst_270 = arith.constant dense<0.000000e+00> : vector<8x128xf32>
    %699 = tpu.matmul %697, %698, %cst_270 {dimension_numbers = #tpu.dot_dimension_numbers<[1], [0], [0], [1], [0, 0, 1, 1], [], []>} : vector<8x128xbf16>, vector<128x128xbf16>, vector<8x128xf32> -> vector<8x128xf32>
    %c0_271 = arith.constant 0 : index
    %c0_272 = arith.constant 0 : index
    %700 = vector.load %arg14[%c0_271, %c0_272] : memref<1x128xf32, #tpu.memory_space<vmem>>, vector<1x128xf32>
    %701 = vector.broadcast %700 : vector<1x128xf32> to vector<8x128xf32>
    %702 = arith.addf %699, %701 : vector<8x128xf32>
    %cst_273 = arith.constant 0.000000e+00 : f32
    %703 = vector.broadcast %cst_273 : f32 to vector<8x128xf32>
    %704 = arith.maximumf %702, %703 : vector<8x128xf32>
    %c0_274 = arith.constant 0 : index
    %c0_275 = arith.constant 0 : index
    %705 = vector.load %arg20[%c0_274, %c0_275] : memref<8x1xf32, #tpu.memory_space<vmem>>, vector<8x1xf32>
    %cst_276 = arith.constant 1.000000e+01 : f32
    %706 = vector.broadcast %cst_276 : f32 to vector<8x1xf32>
    %707 = arith.mulf %706, %705 : vector<8x1xf32>
    %708 = arith.truncf %704 : vector<8x128xf32> to vector<8x128xbf16>
    %c0_277 = arith.constant 0 : index
    %c0_278 = arith.constant 0 : index
    %709 = vector.load %arg15[%c0_277, %c0_278] : memref<128x128xbf16, #tpu.memory_space<vmem>>, vector<128x128xbf16>
    %cst_279 = arith.constant dense<0.000000e+00> : vector<8x128xf32>
    %710 = tpu.matmul %708, %709, %cst_279 {dimension_numbers = #tpu.dot_dimension_numbers<[1], [0], [0], [1], [0, 0, 1, 1], [], []>} : vector<8x128xbf16>, vector<128x128xbf16>, vector<8x128xf32> -> vector<8x128xf32>
    %c0_280 = arith.constant 0 : index
    %c0_281 = arith.constant 0 : index
    %711 = vector.load %arg16[%c0_280, %c0_281] : memref<1x128xf32, #tpu.memory_space<vmem>>, vector<1x128xf32>
    %712 = vector.broadcast %707 : vector<8x1xf32> to vector<8x128xf32>
    %713 = vector.broadcast %711 : vector<1x128xf32> to vector<8x128xf32>
    %714 = arith.mulf %712, %713 : vector<8x128xf32>
    %715 = arith.addf %710, %714 : vector<8x128xf32>
    %c0_282 = arith.constant 0 : index
    %c0_283 = arith.constant 0 : index
    %716 = vector.load %arg17[%c0_282, %c0_283] : memref<1x128xf32, #tpu.memory_space<vmem>>, vector<1x128xf32>
    %717 = vector.broadcast %716 : vector<1x128xf32> to vector<8x128xf32>
    %718 = arith.addf %715, %717 : vector<8x128xf32>
    %cst_284 = arith.constant 0.000000e+00 : f32
    %719 = vector.broadcast %cst_284 : f32 to vector<8x128xf32>
    %720 = arith.maximumf %718, %719 : vector<8x128xf32>
    %721 = arith.truncf %720 : vector<8x128xf32> to vector<8x128xbf16>
    %c0_285 = arith.constant 0 : index
    %c0_286 = arith.constant 0 : index
    %722 = vector.load %arg18[%c0_285, %c0_286] : memref<128x128xbf16, #tpu.memory_space<vmem>>, vector<128x128xbf16>
    %cst_287 = arith.constant dense<0.000000e+00> : vector<8x128xf32>
    %723 = tpu.matmul %721, %722, %cst_287 {dimension_numbers = #tpu.dot_dimension_numbers<[1], [0], [0], [1], [0, 0, 1, 1], [], []>} : vector<8x128xbf16>, vector<128x128xbf16>, vector<8x128xf32> -> vector<8x128xf32>
    %c0_288 = arith.constant 0 : index
    %c0_289 = arith.constant 0 : index
    %724 = vector.load %arg19[%c0_288, %c0_289] : memref<1x128xf32, #tpu.memory_space<vmem>>, vector<1x128xf32>
    %725 = vector.broadcast %724 : vector<1x128xf32> to vector<8x128xf32>
    %726 = arith.addf %723, %725 : vector<8x128xf32>
    %c0_290 = arith.constant 0 : index
    %c0_291 = arith.constant 0 : index
    %727 = vector.load %arg21[%c0_290, %c0_291] : memref<8x128xf32, #tpu.memory_space<vmem>>, vector<8x128xf32>
    tpu.vector_store %arg21[%c0_290, %c0_291], %726 {strides = array<i32>} : memref<8x128xf32, #tpu.memory_space<vmem>>, vector<8x128xf32>,
    return
  }
}

</mosaic_0001>

<bundles_post_ra>
// kernel: tpu_custom_call.1
= control target key start
LH: loop header
LB: loop body
LE: loop exit
PB: predicated region body
PF: predicated region fallthrough
CT: control target
= control target key end

     0   :  { %s3050_s0 = inlined_call_operand.vmem [shape: s32[32], index: 0, kind: input, shape index: {}]   ;;  %s3051_s1 = inlined_call_operand.hbm [shape: s32[32], index: 1, kind: input, shape index: {}]   ;;  %s3052_s2 = inlined_call_operand.hbm [shape: s32[16], index: 2, kind: input, shape index: {}]   ;;  %s3053_s3 = inlined_call_operand.hbm [shape: bf16[16,128], index: 3, kind: input, shape index: {}]   ;;  %s3054_s4 = inlined_call_operand.hbm [shape: bf16[128,128], index: 4, kind: input, shape index: {}]   ;;  %s3055_s5 = inlined_call_operand.hbm [shape: f32[1,128], index: 5, kind: input, shape index: {}]   ;;  %s3056_s6 = inlined_call_operand.hbm [shape: bf16[32,128], index: 6, kind: input, shape index: {}]   ;;  %s3057_s7 = inlined_call_operand.hbm [shape: bf16[128,128], index: 7, kind: input, shape index: {}]   ;;  %s3058_s8 = inlined_call_operand.hbm [shape: f32[1,128], index: 8, kind: input, shape index: {}]   ;;  %s3059_s9 = inlined_call_operand.hbm [shape: bf16[128,256], index: 9, kind: input, shape index: {}]   ;;  %s3060_s10 = inlined_call_operand.hbm [shape: f32[1,256], index: 10, kind: input, shape index: {}]   ;;  %s3061_s11 = inlined_call_operand.hbm [shape: bf16[256,128], index: 11, kind: input, shape index: {}]   ;;  %s3062_s12 = inlined_call_operand.hbm [shape: f32[1,128], index: 12, kind: input, shape index: {}]   ;;  %s3063_s13 = inlined_call_operand.hbm [shape: bf16[128,128], index: 13, kind: input, shape index: {}]   ;;  %s3064_s14 = inlined_call_operand.hbm [shape: f32[1,128], index: 14, kind: input, shape index: {}]   ;;  %s3065_s15 = inlined_call_operand.vmem [shape: bf16[128,128], index: 15, kind: input, shape index: {}]   ;;  %s3066_s16 = inlined_call_operand.vmem [shape: f32[1,128], index: 16, kind: input, shape index: {}]   ;;  %s3067_s17 = inlined_call_operand.vmem [shape: f32[1,128], index: 17, kind: input, shape index: {}]   ;;  %s3068_s18 = inlined_call_operand.hbm [shape: bf16[128,128], index: 18, kind: input, shape index: {}]   ;;  %s3069_s19 = inlined_call_operand.vmem [shape: f32[1,128], index: 19, kind: input, shape index: {}]   ;;  %s3070_s20 = inlined_call_operand.vmem [shape: f32[8,1], index: 20, kind: input, shape index: {}]   ;;  %s3071_s21 = inlined_call_operand.hbm [shape: f32[8,128], index: 21, kind: output, shape index: {}]  }
   0x1   :  { %3078 = sst [smem:[#allocation46_spill]] %s3050_s0 }
   0x2   :  { %3079 = sst [smem:[#allocation47_spill]] %s3051_s1 }
   0x3   :  { %3080 = sst [smem:[#allocation48_spill]] %s3052_s2 }
   0x4   :  { %3081 = sst [smem:[#allocation49_spill]] %s3053_s3 }
   0x5   :  { %3082 = sst [smem:[#allocation50_spill]] %s3054_s4 }
   0x6   :  { %3083 = sst [smem:[#allocation51_spill]] %s3055_s5 }
   0x7   :  { %3084 = sst [smem:[#allocation52_spill]] %s3071_s21 }
   0x8   :  { %26 = vsyncpa [#allocation11], 0 }
   0x9   :  { %27 = vsyncpa [#allocation10], 0 }
   0xa   :  { %28 = vsyncpa [#allocation14], 0 }
   0xb   :  { %29 = vsyncpa [#allocation8], 0 }
   0xc   :  { %30 = vsyncpa [#allocation17], 0 }
   0xd   :  { %31 = vsyncpa [#allocation20], 0 }
   0xe   :  { %32 = vsyncpa [#allocation23], 0 }
   0xf   :  { %33 = vsyncpa [#allocation26], 0 }
  0x10   :  { %34 = vsyncpa [#allocation29], 0 }
  0x11   :  { %35 = vsyncpa [#allocation32], 0 }
  0x12   :  { %36 = vsyncpa [#allocation9], 0  ;;  %s2586_s2 = smov [#allocation16]   ;;  %s2587_s26 = smov [#allocation19]  }
  0x13   :  { %s80_s25 = sshll.u32 %s2586_s2, 4  ;;  %s102_s27 = sshll.u32 %s2587_s26, 4  ;;  %s81_s25 = int_to_ptr.vmem [resolvable:$true] %s80_s25  ;;  %s2720_s27 = int_to_ptr.vmem [resolvable:$true] %s102_s27 }
  0x14   :  { %s3085_s29 = sld [smem:[#allocation50_spill]] }
  0x1a   :  { %s2224_s0 = scalar_lea.hbm %s3085_s29, 1024 }
  0x1b   :  { %p2225_p0 = scmp.ne.s32.totalorder %s3085_s29, %s2224_s0  ;;  %p2228_p1 = scmp.lt.u32.totalorder %s2224_s0, %s3085_s29 }
  0x1d   :  { %p2230_p2 = pnand %p2228_p1, %p2225_p0 }
  0x1f   :  { %2233 = shalt.err (!%p2230_p2)
}
  0x20   :  { %s2234_s23 = scalar_lea.vmem %s81_s25, 1024  ;;  %p2239_p4 = scmp.lt.s32.totalorder %s81_s25, %s81_s25 }
  0x21   :  { %p2235_p3 = scmp.ne.s32.totalorder %s81_s25, %s2234_s23  ;;  %p2240_p5 = scmp.lt.s32.totalorder %s2234_s23, %s2234_s23 }
  0x23   :  { %p2241_p6 = por %p2240_p5, %p2239_p4 }
  0x25   :  { %p2242_p7 = pnand %p2241_p6, %p2235_p3 }
  0x27   :  { %2245 = shalt.err (!%p2242_p7)
}
  0x28   :  { %s2588_s1 = smov 64   ;;  %s2589_s24 = smov 4  }
  0x29   :  { %86 = dma.hbm_to_vmem [thread:$0]  %s3085_s29, 1024, %s81_s25, [#allocation17], %s2588_s1, %s2588_s1, %s2589_s24  }
  0x2a   :  { %s2246_s0 = scalar_lea.hbm %s3056_s6, 256 }
  0x2b   :  { %p2247_p8 = scmp.ne.s32.totalorder %s3056_s6, %s2246_s0  ;;  %p2250_p9 = scmp.lt.u32.totalorder %s2246_s0, %s3056_s6 }
  0x2d   :  { %p2252_p10 = pnand %p2250_p9, %p2247_p8 }
  0x2f   :  { %2255 = shalt.err (!%p2252_p10)
}
  0x30   :  { %s2256_s23 = scalar_lea.vmem %s2720_s27, 256  ;;  %p2261_p12 = scmp.lt.s32.totalorder %s2720_s27, %s2720_s27 }
  0x31   :  { %p2257_p11 = scmp.ne.s32.totalorder %s2720_s27, %s2256_s23  ;;  %p2262_p13 = scmp.lt.s32.totalorder %s2256_s23, %s2256_s23 }
  0x33   :  { %p2263_p0 = por %p2262_p13, %p2261_p12 }
  0x35   :  { %p2264_p1 = pnand %p2263_p0, %p2257_p11 }
  0x37   :  { %2267 = shalt.err (!%p2264_p1)
}
  0x38   :  { %108 = dma.hbm_to_vmem [thread:$0]  %s3056_s6, 256, %s2720_s27, [#allocation20], %s2588_s1, %s2588_s1, %s2589_s24  }
  0x39   :  { %s2590_s2 = smov [#allocation22]   ;;  %s2591_s3 = smov [#allocation25]  }
  0x3a   :  { %s127_s26 = sshll.u32 %s2590_s2, 4  ;;  %s149_s28 = sshll.u32 %s2591_s3, 4  ;;  %s128_s26 = int_to_ptr.vmem [resolvable:$true] %s127_s26  ;;  %s150_s28 = int_to_ptr.vmem [resolvable:$true] %s149_s28 }
  0x3b   :  { %s2268_s30 = scalar_lea.hbm %s3058_s8, 16 }
  0x3c   :  { %p2269_p2 = scmp.ne.s32.totalorder %s3058_s8, %s2268_s30  ;;  %p2272_p3 = scmp.lt.u32.totalorder %s2268_s30, %s3058_s8 }
  0x3e   :  { %p2274_p4 = pnand %p2272_p3, %p2269_p2 }
  0x40   :  { %2277 = shalt.err (!%p2274_p4)
}
  0x41   :  { %s2278_s6 = scalar_lea.vmem %s128_s26, 16  ;;  %s2282_s27 = scalar_lea.vmem %s128_s26, 32 }
  0x42   :  { %p2279_p5 = scmp.ne.s32.totalorder %s128_s26, %s2278_s6  ;;  %p2283_p6 = scmp.lt.s32.totalorder %s128_s26, %s128_s26 }
  0x43   :  { %p2284_p7 = scmp.lt.s32.totalorder %s2282_s27, %s2278_s6 }
  0x45   :  { %p2285_p8 = por %p2284_p7, %p2283_p6 }
  0x47   :  { %p2286_p9 = pnand %p2285_p8, %p2279_p5 }
  0x49   :  { %2289 = shalt.err (!%p2286_p9)
}
  0x4a   :  { %130 = dma.hbm_to_vmem [thread:$0]  %s3058_s8, 16, %s128_s26, [#allocation23]  }
  0x4b   :  { %s2290_s0 = scalar_lea.hbm %s3060_s10, 32 }
  0x4c   :  { %p2291_p10 = scmp.ne.s32.totalorder %s3060_s10, %s2290_s0  ;;  %p2294_p11 = scmp.lt.u32.totalorder %s2290_s0, %s3060_s10 }
  0x4e   :  { %p2296_p12 = pnand %p2294_p11, %p2291_p10 }
  0x50   :  { %2299 = shalt.err (!%p2296_p12)
}
  0x51   :  { %s2300_s22 = scalar_lea.vmem %s150_s28, 32  ;;  %p2305_p0 = scmp.lt.s32.totalorder %s150_s28, %s150_s28 }
  0x52   :  { %p2301_p13 = scmp.ne.s32.totalorder %s150_s28, %s2300_s22  ;;  %p2306_p1 = scmp.lt.s32.totalorder %s2300_s22, %s2300_s22 }
  0x54   :  { %p2307_p2 = por %p2306_p1, %p2305_p0 }
  0x56   :  { %p2308_p3 = pnand %p2307_p2, %p2301_p13 }
  0x58   :  { %2311 = shalt.err (!%p2308_p3)
}
  0x59   :  { %152 = dma.hbm_to_vmem [thread:$0]  %s3060_s10, 32, %s150_s28, [#allocation26]  }
  0x5a   :  { %s2592_s23 = smov [#allocation28]   ;;  %s2593_s27 = smov [#allocation31]  }
  0x5b   :  { %s171_s6 = sshll.u32 %s2592_s23, 4  ;;  %s193_s25 = sshll.u32 %s2593_s27, 4  ;;  %s172_s6 = int_to_ptr.vmem [resolvable:$true] %s171_s6  ;;  %s194_s25 = int_to_ptr.vmem [resolvable:$true] %s193_s25 }
  0x5c   :  { %s2312_s3 = scalar_lea.hbm %s3062_s12, 16 }
  0x5d   :  { %p2313_p4 = scmp.ne.s32.totalorder %s3062_s12, %s2312_s3  ;;  %p2316_p5 = scmp.lt.u32.totalorder %s2312_s3, %s3062_s12 }
  0x5f   :  { %p2318_p6 = pnand %p2316_p5, %p2313_p4 }
  0x61   :  { %2321 = shalt.err (!%p2318_p6)
}
  0x62   :  { %s2322_s10 = scalar_lea.vmem %s172_s6, 16  ;;  %s2326_s28 = scalar_lea.vmem %s172_s6, 32 }
  0x63   :  { %p2323_p7 = scmp.ne.s32.totalorder %s172_s6, %s2322_s10  ;;  %p2327_p8 = scmp.lt.s32.totalorder %s172_s6, %s172_s6 }
  0x64   :  { %p2328_p9 = scmp.lt.s32.totalorder %s2326_s28, %s2322_s10 }
  0x66   :  { %p2329_p10 = por %p2328_p9, %p2327_p8 }
  0x68   :  { %p2330_p11 = pnand %p2329_p10, %p2323_p7 }
  0x6a   :  { %2333 = shalt.err (!%p2330_p11)
}
  0x6b   :  { %174 = dma.hbm_to_vmem [thread:$0]  %s3062_s12, 16, %s172_s6, [#allocation29]  }
  0x6c   :  { %s2334_s23 = scalar_lea.hbm %s3064_s14, 16 }
  0x6d   :  { %p2335_p12 = scmp.ne.s32.totalorder %s3064_s14, %s2334_s23  ;;  %p2338_p13 = scmp.lt.u32.totalorder %s2334_s23, %s3064_s14 }
  0x6f   :  { %p2340_p0 = pnand %p2338_p13, %p2335_p12 }
  0x71   :  { %2343 = shalt.err (!%p2340_p0)
}
  0x72   :  { %s2344_s0 = scalar_lea.vmem %s194_s25, 16  ;;  %s2348_s21 = scalar_lea.vmem %s194_s25, 32 }
  0x73   :  { %p2345_p1 = scmp.ne.s32.totalorder %s194_s25, %s2344_s0  ;;  %p2349_p2 = scmp.lt.s32.totalorder %s194_s25, %s194_s25 }
  0x74   :  { %p2350_p3 = scmp.lt.s32.totalorder %s2348_s21, %s2344_s0 }
  0x76   :  { %p2351_p4 = por %p2350_p3, %p2349_p2 }
  0x78   :  { %p2352_p5 = pnand %p2351_p4, %p2345_p1 }
  0x7a   :  { %2355 = shalt.err (!%p2352_p5)
}
  0x7b   :  { %196 = dma.hbm_to_vmem [thread:$0]  %s3064_s14, 16, %s194_s25, [#allocation32]  }
  0x7c   :  { %s3086_s10 = sld [smem:[#allocation46_spill]] }
  0x82   :  { %s43_s28 = sshll.u32 %s3086_s10, 4  ;;  %s44_s28 = int_to_ptr.vmem [resolvable:$true] %s43_s28 }
  0x83   :  { %s2356_s5 = scalar_lea.vmem %s44_s28, 16  ;;  %p2361_p7 = scmp.lt.s32.totalorder %s44_s28, %s44_s28 }
  0x84   :  { %p2357_p6 = scmp.ne.s32.totalorder %s44_s28, %s2356_s5  ;;  %p2362_p8 = scmp.lt.s32.totalorder %s2356_s5, %s2356_s5 }
  0x86   :  { %p2363_p9 = por %p2362_p8, %p2361_p7 }
  0x88   :  { %p2364_p10 = pnand %p2363_p9, %p2357_p6 }
  0x8a   :  { %2367 = shalt.err (!%p2364_p10)
}
  0x8b   :  { %s2594_s22 = smov [#allocation7]   ;;  %s3087_s23 = sld [smem:[#allocation47_spill]] }
  0x8c   :  { %46 = dma.vmem_to_smem %s44_s28, 16, %s2594_s22, [#allocation11]  }
  0x91   :  { %s2368_s27 = scalar_lea.hbm %s3087_s23, 16 }
  0x92   :  { %p2369_p11 = scmp.ne.s32.totalorder %s3087_s23, %s2368_s27  ;;  %p2372_p12 = scmp.lt.u32.totalorder %s2368_s27, %s3087_s23 }
  0x94   :  { %p2374_p13 = pnand %p2372_p12, %p2369_p11 }
  0x96   :  { %2377 = shalt.err (!%p2374_p13)
}
  0x97   :  { %s2595_s3 = smov [#allocation12]   ;;  %s3088_s4 = sld [smem:[#allocation48_spill]] }
  0x98   :  { %54 = dma.hbm_to_smem %s3087_s23, 16, %s2595_s3, [#allocation10]  }
  0x9d   :  { %s2378_s30 = scalar_lea.hbm %s3088_s4, 16 }
  0x9e   :  { %p2379_p0 = scmp.ne.s32.totalorder %s3088_s4, %s2378_s30  ;;  %p2382_p1 = scmp.lt.u32.totalorder %s2378_s30, %s3088_s4 }
  0xa0   :  { %p2384_p2 = pnand %p2382_p1, %p2379_p0 }
  0xa2   :  { %2387 = shalt.err (!%p2384_p2)
}
  0xa3   :  { %s2596_s8 = smov [#allocation13]   ;;  %s2597_s23 = smov [#allocation15]  }
  0xa4   :  { %62 = dma.hbm_to_smem %s3088_s4, 16, %s2596_s8, [#allocation14]  }
  0xa5   :  { %s68_s29 = sshll.u32 %s2597_s23, 4  ;;  %s2598_s14 = smov [#allocation18]   ;;  %s69_s29 = int_to_ptr.vmem [resolvable:$true] %s68_s29 }
  0xa6   :  { %s93_s25 = sshll.u32 %s2598_s14, 4  ;;  %s3089_s0 = sld [smem:[#allocation49_spill]]  ;;  %s94_s25 = int_to_ptr.vmem [resolvable:$true] %s93_s25 }
  0xac   :  { %s2388_s21 = scalar_lea.hbm %s3089_s0, 128 }
  0xad   :  { %p2389_p3 = scmp.ne.s32.totalorder %s3089_s0, %s2388_s21  ;;  %p2392_p4 = scmp.lt.u32.totalorder %s2388_s21, %s3089_s0 }
  0xaf   :  { %p2394_p5 = pnand %p2392_p4, %p2389_p3 }
  0xb1   :  { %2397 = shalt.err (!%p2394_p5)
}
  0xb2   :  { %s2398_s4 = scalar_lea.vmem %s69_s29, 128  ;;  %p2403_p7 = scmp.lt.s32.totalorder %s69_s29, %s69_s29 }
  0xb3   :  { %p2399_p6 = scmp.ne.s32.totalorder %s69_s29, %s2398_s4  ;;  %p2404_p8 = scmp.lt.s32.totalorder %s2398_s4, %s2398_s4 }
  0xb5   :  { %p2405_p9 = por %p2404_p8, %p2403_p7 }
  0xb7   :  { %p2406_p10 = pnand %p2405_p9, %p2399_p6 }
  0xb9   :  { %2409 = shalt.err (!%p2406_p10)
}
  0xba   :  { %74 = dma.hbm_to_vmem [thread:$0]  %s3089_s0, 128, %s69_s29, [#allocation8], %s2588_s1, %s2588_s1, %s2589_s24  }
  0xbb   :  { %s3090_s26 = sld [smem:[#allocation51_spill]] }
  0xc1   :  { %s2410_s27 = scalar_lea.hbm %s3090_s26, 16 }
  0xc2   :  { %p2411_p11 = scmp.ne.s32.totalorder %s3090_s26, %s2410_s27  ;;  %p2414_p12 = scmp.lt.u32.totalorder %s2410_s27, %s3090_s26 }
  0xc4   :  { %p2416_p13 = pnand %p2414_p12, %p2411_p11 }
  0xc6   :  { %2419 = shalt.err (!%p2416_p13)
}
  0xc7   :  { %s2420_s21 = scalar_lea.vmem %s94_s25, 16  ;;  %s2424_s12 = scalar_lea.vmem %s94_s25, 32 }
  0xc8   :  { %p2421_p0 = scmp.ne.s32.totalorder %s94_s25, %s2420_s21  ;;  %p2425_p1 = scmp.lt.s32.totalorder %s94_s25, %s94_s25 }
  0xc9   :  { %p2426_p2 = scmp.lt.s32.totalorder %s2424_s12, %s2420_s21 }
  0xcb   :  { %p2427_p3 = por %p2426_p2, %p2425_p1 }
  0xcd   :  { %p2428_p4 = pnand %p2427_p3, %p2421_p0 }
  0xcf   :  { %2431 = shalt.err (!%p2428_p4)
}
  0xd0   :  { %96 = dma.hbm_to_vmem [thread:$0]  %s3090_s26, 16, %s94_s25, [#allocation17]  }
  0xd1   :  { %s2599_s6 = smov [#allocation21]   ;;  %s2600_s10 = smov [#allocation24]  }
  0xd2   :  { %s114_s30 = sshll.u32 %s2599_s6, 4  ;;  %s136_s4 = sshll.u32 %s2600_s10, 4  ;;  %s115_s30 = int_to_ptr.vmem [resolvable:$true] %s114_s30  ;;  %s137_s4 = int_to_ptr.vmem [resolvable:$true] %s136_s4 }
  0xd3   :  { %s2432_s22 = scalar_lea.hbm %s3057_s7, 1024 }
  0xd4   :  { %p2433_p5 = scmp.ne.s32.totalorder %s3057_s7, %s2432_s22  ;;  %p2436_p6 = scmp.lt.u32.totalorder %s2432_s22, %s3057_s7 }
  0xd6   :  { %p2438_p7 = pnand %p2436_p6, %p2433_p5 }
  0xd8   :  { %2441 = shalt.err (!%p2438_p7)
}
  0xd9   :  { %s2442_s25 = scalar_lea.vmem %s115_s30, 1024  ;;  %p2447_p9 = scmp.lt.s32.totalorder %s115_s30, %s115_s30 }
  0xda   :  { %p2443_p8 = scmp.ne.s32.totalorder %s115_s30, %s2442_s25  ;;  %p2448_p10 = scmp.lt.s32.totalorder %s2442_s25, %s2442_s25 }
  0xdc   :  { %p2449_p11 = por %p2448_p10, %p2447_p9 }
  0xde   :  { %p2450_p12 = pnand %p2449_p11, %p2443_p8 }
  0xe0   :  { %2453 = shalt.err (!%p2450_p12)
}
  0xe1   :  { %120 = dma.hbm_to_vmem [thread:$0]  %s3057_s7, 1024, %s115_s30, [#allocation20], %s2588_s1, %s2588_s1, %s2589_s24  }
  0xe2   :  { %s2454_s12 = scalar_lea.hbm %s3059_s9, 2048 }
  0xe3   :  { %p2455_p13 = scmp.ne.s32.totalorder %s3059_s9, %s2454_s12  ;;  %p2458_p0 = scmp.lt.u32.totalorder %s2454_s12, %s3059_s9 }
  0xe5   :  { %p2460_p1 = pnand %p2458_p0, %p2455_p13 }
  0xe7   :  { %2463 = shalt.err (!%p2460_p1)
}
  0xe8   :  { %s2464_s28 = scalar_lea.vmem %s137_s4, 2048  ;;  %p2469_p3 = scmp.lt.s32.totalorder %s137_s4, %s137_s4 }
  0xe9   :  { %p2465_p2 = scmp.ne.s32.totalorder %s137_s4, %s2464_s28  ;;  %p2470_p4 = scmp.lt.s32.totalorder %s2464_s28, %s2464_s28 }
  0xeb   :  { %p2471_p5 = por %p2470_p4, %p2469_p3 }
  0xed   :  { %p2472_p6 = pnand %p2471_p5, %p2465_p2 }
  0xef   :  { %2475 = shalt.err (!%p2472_p6)
}
  0xf0   :  { %s2601_s7 = smov 128   ;;  %s2602_s30 = smov 8  }
  0xf1   :  { %142 = dma.hbm_to_vmem [thread:$0]  %s3059_s9, 2048, %s137_s4, [#allocation23], %s2601_s7, %s2601_s7, %s2602_s30  }
  0xf2   :  { %s2603_s8 = smov [#allocation27]   ;;  %s2604_s23 = smov [#allocation30]  }
  0xf3   :  { %s158_s27 = sshll.u32 %s2603_s8, 4  ;;  %s180_s14 = sshll.u32 %s2604_s23, 4  ;;  %s159_s27 = int_to_ptr.vmem [resolvable:$true] %s158_s27  ;;  %s181_s14 = int_to_ptr.vmem [resolvable:$true] %s180_s14 }
  0xf4   :  { %s2476_s2 = scalar_lea.hbm %s3061_s11, 2048 }
  0xf5   :  { %p2477_p7 = scmp.ne.s32.totalorder %s3061_s11, %s2476_s2  ;;  %p2480_p8 = scmp.lt.u32.totalorder %s2476_s2, %s3061_s11 }
  0xf7   :  { %p2482_p9 = pnand %p2480_p8, %p2477_p7 }
  0xf9   :  { %2485 = shalt.err (!%p2482_p9)
}
  0xfa   :  { %s2486_s9 = scalar_lea.vmem %s159_s27, 2048  ;;  %p2491_p11 = scmp.lt.s32.totalorder %s159_s27, %s159_s27 }
  0xfb   :  { %p2487_p10 = scmp.ne.s32.totalorder %s159_s27, %s2486_s9  ;;  %p2492_p12 = scmp.lt.s32.totalorder %s2486_s9, %s2486_s9 }
  0xfd   :  { %p2493_p13 = por %p2492_p12, %p2491_p11 }
  0xff   :  { %p2494_p0 = pnand %p2493_p13, %p2487_p10 }
 0x101   :  { %2497 = shalt.err (!%p2494_p0)
}
 0x102   :  { %164 = dma.hbm_to_vmem [thread:$0]  %s3061_s11, 2048, %s159_s27, [#allocation26], %s2588_s1, %s2588_s1, %s2589_s24  }
 0x103   :  { %s2498_s28 = scalar_lea.hbm %s3063_s13, 1024 }
 0x104   :  { %p2499_p1 = scmp.ne.s32.totalorder %s3063_s13, %s2498_s28  ;;  %p2502_p2 = scmp.lt.u32.totalorder %s2498_s28, %s3063_s13 }
 0x106   :  { %p2504_p3 = pnand %p2502_p2, %p2499_p1 }
 0x108   :  { %2507 = shalt.err (!%p2504_p3)
}
 0x109   :  { %s2508_s8 = scalar_lea.vmem %s181_s14, 1024  ;;  %p2513_p5 = scmp.lt.s32.totalorder %s181_s14, %s181_s14 }
 0x10a   :  { %p2509_p4 = scmp.ne.s32.totalorder %s181_s14, %s2508_s8  ;;  %p2514_p6 = scmp.lt.s32.totalorder %s2508_s8, %s2508_s8 }
 0x10c   :  { %p2515_p7 = por %p2514_p6, %p2513_p5 }
 0x10e   :  { %p2516_p8 = pnand %p2515_p7, %p2509_p4 }
 0x110   :  { %2519 = shalt.err (!%p2516_p8)
}
 0x111   :  { %186 = dma.hbm_to_vmem [thread:$0]  %s3063_s13, 1024, %s181_s14, [#allocation29], %s2588_s1, %s2588_s1, %s2589_s24  }
 0x112   :  { %s2605_s23 = smov [#allocation33]   ;;  %s2520_s3 = scalar_lea.hbm %s3068_s18, 1024 }
 0x113   :  { %s208_s25 = sshll.u32 %s2605_s23, 4  ;;  %p2521_p9 = scmp.ne.s32.totalorder %s3068_s18, %s2520_s3  ;;  %s209_s25 = int_to_ptr.vmem [resolvable:$true] %s208_s25 }
 0x114   :  { %p2524_p10 = scmp.lt.u32.totalorder %s2520_s3, %s3068_s18 }
 0x116   :  { %p2526_p11 = pnand %p2524_p10, %p2521_p9 }
 0x118   :  { %2529 = shalt.err (!%p2526_p11)
}
 0x119   :  { %s2530_s4 = scalar_lea.vmem %s209_s25, 1024  ;;  %p2535_p13 = scmp.lt.s32.totalorder %s209_s25, %s209_s25 }
 0x11a   :  { %p2531_p12 = scmp.ne.s32.totalorder %s209_s25, %s2530_s4  ;;  %p2536_p0 = scmp.lt.s32.totalorder %s2530_s4, %s2530_s4 }
 0x11c   :  { %p2537_p1 = por %p2536_p0, %p2535_p13 }
 0x11e   :  { %p2538_p2 = pnand %p2537_p1, %p2531_p12 }
 0x120   :  { %2541 = shalt.err (!%p2538_p2)
}
 0x121   :  { %214 = dma.hbm_to_vmem [thread:$0]  %s3068_s18, 1024, %s209_s25, [#allocation32], %s2588_s1, %s2588_s1, %s2589_s24  }
 0x122   :  { %2564 = dma.done.wait [#allocation11], 16  }
 0x123   :  { %2565 = vsyncadd [#allocation11], 4294967280 }
 0x124   :  { %2566 = dma.done.wait [#allocation10], 16  }
 0x125   :  { %2567 = vsyncadd [#allocation10], 4294967280 }
 0x126   :  { %2568 = dma.done.wait [#allocation14], 16  }
 0x127   :  { %2569 = vsyncadd [#allocation14], 4294967280 }
 0x128   :  { %2570 = dma.done.wait [#allocation8], 128  }
 0x129   :  { %2571 = vsyncadd [#allocation8], 4294967168 }
 0x12a   :  { %2572 = dma.done.wait [#allocation17], 1040  }
 0x12b   :  { %2573 = vsyncadd [#allocation17], 4294966256 }
 0x12c   :  { %2574 = dma.done.wait [#allocation20], 1280  }
 0x12d   :  { %2575 = vsyncadd [#allocation20], 4294966016 }
 0x12e   :  { %2576 = dma.done.wait [#allocation23], 2064  }
 0x12f   :  { %2577 = vsyncadd [#allocation23], 4294965232 }
 0x130   :  { %2578 = dma.done.wait [#allocation26], 2080  }
 0x131   :  { %2579 = vsyncadd [#allocation26], 4294965216 }
 0x132   :  { %2580 = dma.done.wait [#allocation29], 1040  }
 0x133   :  { %2581 = vsyncadd [#allocation29], 4294966256 }
 0x134   :  { %2582 = dma.done.wait [#allocation32], 1040  }
 0x135   :  { %2583 = vsyncadd [#allocation32], 4294966256 }
 0x136   :  { %267 = sfence }
 0x137   :  { %v2140_v0 = vld [vmem:[#allocation16] sm:$0xff]   ;;  %v2606_v1 = vmov 0.0   ;;  %v2141_v2 = vld [vmem:[#allocation21] sm:$0xff]   ;;  %v2142_v3 = vld [vmem:[#allocation16 + $0x8] sm:$0xff]   ;;  %vm2607_vm0 = vmmov 0   ;;  %s535_s18 = sld [smem:[#allocation7]] }
 0x138   :  { %2015 = vmatprep.subr.bf16.mxu0 %v2606_v1  ;;  %533 = vst [vmem:[#allocation4] sm:$0xff] %v2606_v1  ;;  %534 = vst [vmem:[#allocation4 + $0x8] sm:$0xff] %v2606_v1  ;;  %2031 = vmatprep.mubr.msk.bf16.mxu0 %vm2607_vm0, %v2606_v1  ;;  %v2143_v4 = vld [vmem:[#allocation21 + $0x8] sm:$0xff]   ;;  %v2145_v5 = vld [vmem:[#allocation21 + $0x10] sm:$0xff]   ;;  %s536_s1 = sld [smem:[#allocation12]]  ;;  %s1809_s24 = sld [smem:[#allocation7 + $0x1]] }
 0x139   :  { %1231 = vst [vmem:[#allocation6] sm:$0xff] %v2606_v1  ;;  %2016 = vmatpush3.bf16.msra.mxu0 %v2140_v0  ;;  %2035 = vmatprep.subr.bf16.mxu1 %v2141_v2  ;;  %v2144_v6 = vld [vmem:[#allocation16 + $0x10] sm:$0xff]   ;;  %v2146_v8 = vld [vmem:[#allocation16 + $0x18] sm:$0xff]   ;;  %v2148_v10 = vld [vmem:[#allocation16 + $0x20] sm:$0xff]   ;;  %s1810_s10 = sld [smem:[#allocation12 + $0x1]]  ;;  %s1811_s28 = sld [smem:[#allocation7 + $0x2]] }
 0x13a   :  { %2017 = vmatprep.subr.bf16.mxu0 %v2606_v1  ;;  %2036 = vmatpush3.bf16.msra.mxu1 %v2141_v2  ;;  %v2147_v7 = vld [vmem:[#allocation21 + $0x18] sm:$0xff]   ;;  %v2149_v9 = vld [vmem:[#allocation21 + $0x20] sm:$0xff]   ;;  %v2151_v11 = vld [vmem:[#allocation21 + $0x28] sm:$0xff]   ;;  %s1812_s30 = sld [smem:[#allocation12 + $0x2]]  ;;  %s1813_s22 = sld [smem:[#allocation7 + $0x3]] }
 0x13b   :  { %2037 = vmatprep.subr.bf16.mxu1 %v2143_v4  ;;  %v2157_v12 = vld [vmem:[#allocation19] sm:$0xff]   ;;  %v2152_v15 = vld [vmem:[#allocation16 + $0x30] sm:$0xff]   ;;  %v2154_v17 = vld [vmem:[#allocation16 + $0x38] sm:$0xff]   ;;  %s1814_s11 = sld [smem:[#allocation12 + $0x3]]  ;;  %s1815_s23 = sld [smem:[#allocation7 + $0x4]] }
 0x13c   :  { %v2150_v13 = vld [vmem:[#allocation16 + $0x28] sm:$0xff]   ;;  %2051 = vmatprep.mubr.bf16.mxu1 %v2157_v12  ;;  %v2156_v18 = vld [vmem:[#allocation15] sm:$0xff]   ;;  %v1788_v20 = vld [vmem:[#allocation18] ss:$0 sm:$0xff]  ;;  %s1816_s26 = sld [smem:[#allocation12 + $0x4]]  ;;  %s1817_s3 = sld [smem:[#allocation7 + $0x5]] }
 0x13d   :  { %2018 = vmatpush3.bf16.msra.mxu0 %v2142_v3  ;;  %v2153_v14 = vld [vmem:[#allocation21 + $0x30] sm:$0xff]   ;;  %v2155_v16 = vld [vmem:[#allocation21 + $0x38] sm:$0xff]   ;;  %v1798_v22 = vld [vmem:[#allocation22] ss:$0 sm:$0xff]  ;;  %s537_s0 = scalar_lea.vmem [#allocation2], %s535_s18  ;;  %s1818_s12 = sld [smem:[#allocation12 + $0x5]] }
 0x13e   :  { %2019 = vmatprep.subr.bf16.mxu0 %v2606_v1  ;;  %2038 = vmatpush3.bf16.msra.mxu1 %v2143_v4  ;;  %v2158_v19 = vld [vmem:[#allocation19 + $0x8] sm:$0xff]   ;;  %s542_s6 = scalar_lea.vmem [#allocation4], %s536_s1  ;;  %s548_s7 = scalar_lea.vmem [#allocation2], %s1809_s24 }
 0x13f   :  { %2039 = vmatprep.subr.bf16.mxu1 %v2145_v5  ;;  %v543_v41 = vld [vmem:[%s542_s6] sm:$0x1]  ;;  %s553_s5 = scalar_lea.vmem [#allocation4], %s1810_s10  ;;  %s559_s8 = scalar_lea.vmem [#allocation2], %s1811_s28 }
 0x140   :  { %s564_s27 = scalar_lea.vmem [#allocation4], %s1812_s30  ;;  %s570_s25 = scalar_lea.vmem [#allocation2], %s1813_s22 }
 0x141   :  { %2020 = vmatpush3.bf16.msra.mxu0 %v2144_v6  ;;  %s575_s2 = scalar_lea.vmem [#allocation4], %s1814_s11  ;;  %s581_s21 = scalar_lea.vmem [#allocation2], %s1815_s23 }
 0x142   :  { %2021 = vmatprep.subr.bf16.mxu0 %v2606_v1  ;;  %2040 = vmatpush3.bf16.msra.mxu1 %v2145_v5  ;;  %s586_s29 = scalar_lea.vmem [#allocation4], %s1816_s26  ;;  %s1819_s9 = sld [smem:[#allocation7 + $0x6]] }
 0x143   :  { %2041 = vmatprep.subr.bf16.mxu1 %v2147_v7  ;;  %s592_s4 = scalar_lea.vmem [#allocation2], %s1817_s3  ;;  %s1820_s13 = sld [smem:[#allocation12 + $0x6]] }
 0x144   :  { %s597_s14 = scalar_lea.vmem [#allocation4], %s1818_s12  ;;  %s1821_s18 = sld [smem:[#allocation7 + $0x7]] }
 0x145   :  { %2022 = vmatpush3.bf16.msra.mxu0 %v2146_v8  ;;  %s1822_s24 = sld [smem:[#allocation12 + $0x7]]  ;;  %s1824_s28 = sld [smem:[#allocation12 + $0x8]] }
 0x146   :  { %2023 = vmatprep.subr.bf16.mxu0 %v2606_v1  ;;  %2042 = vmatpush3.bf16.msra.mxu1 %v2147_v7  ;;  %s1825_s30 = sld [smem:[#allocation7 + $0x9]]  ;;  %s1827_s11 = sld [smem:[#allocation7 + $0xa]] }
 0x147   :  { %2043 = vmatprep.subr.bf16.mxu1 %v2149_v9  ;;  %s1826_s22 = sld [smem:[#allocation12 + $0x9]]  ;;  %s1828_s23 = sld [smem:[#allocation12 + $0xa]] }
 0x148   :  { %s603_s1 = scalar_lea.vmem [#allocation2], %s1819_s9  ;;  %s1829_s26 = sld [smem:[#allocation7 + $0xb]] }
 0x149   :  { %2024 = vmatpush3.bf16.msra.mxu0 %v2148_v10  ;;  %s1830_s3 = sld [smem:[#allocation12 + $0xb]]  ;;  %s1831_s12 = sld [smem:[#allocation7 + $0xc]] }
 0x14a   :  { %2025 = vmatprep.subr.bf16.mxu0 %v2606_v1  ;;  %2044 = vmatpush3.bf16.msra.mxu1 %v2149_v9  ;;  %s614_s10 = scalar_lea.vmem [#allocation2], %s1821_s18  ;;  %s1832_s9 = sld [smem:[#allocation12 + $0xc]] }
 0x14b   :  { %2045 = vmatprep.subr.bf16.mxu1 %v2151_v11  ;;  %s1834_s18 = sld [smem:[#allocation12 + $0xd]] }
 0x14d   :  { %2026 = vmatpush3.bf16.msra.mxu0 %v2150_v13 }
 0x14e   :  { %2027 = vmatprep.subr.bf16.mxu0 %v2606_v1  ;;  %2046 = vmatpush3.bf16.msra.mxu1 %v2151_v11 }
 0x14f   :  { %2047 = vmatprep.subr.bf16.mxu1 %v2153_v14 }
 0x151   :  { %2028 = vmatpush3.bf16.msra.mxu0 %v2152_v15 }
 0x152   :  { %2029 = vmatprep.subr.bf16.mxu0 %v2606_v1  ;;  %2048 = vmatpush3.bf16.msra.mxu1 %v2153_v14 }
 0x153   :  { %2049 = vmatprep.subr.bf16.mxu1 %v2155_v16 }
 0x155   :  { %2030 = vmatpush3.bf16.msra.mxu0 %v2154_v17 }
 0x156   :  { %2050 = vmatpush3.bf16.msra.mxu1 %v2155_v16 }
 0x158   :  { %2032 = vmatmul.mubr.bf16.vlgmr.msra.gmra.mrb[0].mxu0 %v2156_v18 }
 0x159   :  { %2052 = vmatmul.mubr.bf16.vlgmr.msra.gmra.mrb[0].mxu1 %v2158_v19 }
 0x22b   :  { %v382_v21 = vpop.f32.mrb[0].mxu0 }
 0x22c   :  { %v2932_v23 = vadd.f32 %v1788_v20, %v382_v21  ;;  %v2033_v24 = vpop.f32.mrb[1].mxu0  ;;  %v2053_v25 = vpop.f32.mrb[0].mxu1 }
 0x22d   :  { %v385_v26 = vpop.f32.mrb[2].mxu0  ;;  %v523_v28 = vadd.f32 %v2053_v25, %v1798_v22  ;;  %v514_v30 = vpop.f32.mrb[1].mxu1 }
 0x22e   :  { %v389_v27 = vmax.f32 %v2932_v23, 0.0  ;;  %v2935_v29 = vadd.f32 %v1788_v20, %v385_v26  ;;  %v2034_v31 = vpop.f32.mrb[3].mxu0  ;;  %v515_v32 = vadd.f32 %v1798_v22, %v514_v30  ;;  %v2054_v33 = vpop.f32.mrb[2].mxu1  ;;  %v912_v23 = vlaneseq }
 0x22f   :  { %531 = vst [vmem:[#allocation3 + $0x10] sm:$0xff] %v523_v28  ;;  %v526_v35 = vadd.f32 %v2054_v33, %v1798_v22  ;;  %v517_v36 = vpop.f32.mrb[3].mxu1 }
 0x230   :  { %391 = vst [vmem:[#allocation2] sm:$0xff] %v389_v27  ;;  %v390_v34 = vmax.f32 %v2935_v29, 0.0  ;;  %529 = vst [vmem:[#allocation3] sm:$0xff] %v515_v32  ;;  %v518_v37 = vadd.f32 %v1798_v22, %v517_v36 }
 0x231   :  { %532 = vst [vmem:[#allocation3 + $0x18] sm:$0xff] %v526_v35 }
 0x232   :  { %392 = vst [vmem:[#allocation2 + $0x8] sm:$0xff] %v390_v34  ;;  %530 = vst [vmem:[#allocation3 + $0x8] sm:$0xff] %v518_v37 }
 0x237   :  { %v539_v39 = vld [vmem:[#allocation3] sm:$0x1]  ;;  %v550_v45 = vld [vmem:[#allocation3 + $0x1] sm:$0x1]  ;;  %v561_v51 = vld [vmem:[#allocation3 + $0x2] sm:$0x1] }
 0x238   :  { %v572_v57 = vld [vmem:[#allocation3 + $0x3] sm:$0x1]  ;;  %v583_v63 = vld [vmem:[#allocation3 + $0x4] sm:$0x1]  ;;  %v594_v5 = vld [vmem:[#allocation3 + $0x5] sm:$0x1] }
 0x239   :  { %v538_v38 = vld [vmem:[%s537_s0] sm:$0x1]  ;;  %v605_v11 = vld [vmem:[#allocation3 + $0x6] sm:$0x1]  ;;  %s608_s0 = scalar_lea.vmem [#allocation4], %s1820_s13  ;;  %s1833_s13 = sld [smem:[#allocation7 + $0xd]] }
 0x23a   :  { %v540_v40 = vadd.f32 %v539_v39, %v538_v38  ;;  %v549_v44 = vld [vmem:[%s548_s7] sm:$0x1]  ;;  %v616_v17 = vld [vmem:[#allocation3 + $0x7] sm:$0x1]  ;;  %s619_s7 = scalar_lea.vmem [#allocation4], %s1822_s24  ;;  %s1835_s24 = sld [smem:[#allocation7 + $0xe]] }
 0x23b   :  { %v551_v46 = vadd.f32 %v550_v45, %v549_v44  ;;  %v560_v50 = vld [vmem:[%s559_s8] sm:$0x1]  ;;  %v627_v24 = vld [vmem:[#allocation3 + $0x8] sm:$0x1]  ;;  %s630_s8 = scalar_lea.vmem [#allocation4], %s1824_s28  ;;  %s1837_s28 = sld [smem:[#allocation7 + $0xf]] }
 0x23c   :  { %v541_v42 = vmax.f32 %v540_v40, 0.0  ;;  %v562_v52 = vadd.f32 %v561_v51, %v560_v50  ;;  %v571_v56 = vld [vmem:[%s570_s25] sm:$0x1]  ;;  %v638_v32 = vld [vmem:[#allocation3 + $0x9] sm:$0x1]  ;;  %s641_s25 = scalar_lea.vmem [#allocation4], %s1826_s22 }
 0x23d   :  { %v552_v47 = vmax.f32 %v551_v46, 0.0  ;;  %v573_v58 = vadd.f32 %v572_v57, %v571_v56  ;;  %v582_v62 = vld [vmem:[%s581_s21] sm:$0x1]  ;;  %v649_v39 = vld [vmem:[#allocation3 + $0xa] sm:$0x1]  ;;  %s652_s21 = scalar_lea.vmem [#allocation4], %s1828_s23 }
 0x23e   :  { %v544_v43 = vadd.f32 %v543_v41, %v541_v42  ;;  %v563_v53 = vmax.f32 %v562_v52, 0.0  ;;  %v584_v0 = vadd.f32 %v583_v63, %v582_v62  ;;  %v593_v4 = vld [vmem:[%s592_s4] sm:$0x1]  ;;  %v660_v45 = vld [vmem:[#allocation3 + $0xb] sm:$0x1]  ;;  %s663_s4 = scalar_lea.vmem [#allocation4], %s1830_s3 }
 0x23f   :  { %v574_v59 = vmax.f32 %v573_v58, 0.0  ;;  %v595_v6 = vadd.f32 %v594_v5, %v593_v4  ;;  %v604_v10 = vld [vmem:[%s603_s1] sm:$0x1]  ;;  %v671_v51 = vld [vmem:[#allocation3 + $0xc] sm:$0x1]  ;;  %s674_s1 = scalar_lea.vmem [#allocation4], %s1832_s9 }
 0x240   :  { %545 = vst [vmem:[%s542_s6] sm:$0x1] %v544_v43  ;;  %v585_v1 = vmax.f32 %v584_v0, 0.0  ;;  %v606_v12 = vadd.f32 %v605_v11, %v604_v10  ;;  %s1823_s6 = sld [smem:[#allocation7 + $0x8]]  ;;  %v615_v16 = vld [vmem:[%s614_s10] sm:$0x1]  ;;  %s685_s10 = scalar_lea.vmem [#allocation4], %s1834_s18 }
 0x241   :  { %v596_v7 = vmax.f32 %v595_v6, 0.0  ;;  %v617_v18 = vadd.f32 %v616_v17, %v615_v16  ;;  %v682_v57 = vld [vmem:[#allocation3 + $0xd] sm:$0x1]  ;;  %v693_v63 = vld [vmem:[#allocation3 + $0xe] sm:$0x1]  ;;  %s1839_s22 = sld [smem:[#allocation7 + $0x10]] }
 0x242   :  { %v607_v13 = vmax.f32 %v606_v12, 0.0  ;;  %v704_v5 = vld [vmem:[#allocation3 + $0xf] sm:$0x1]  ;;  %s1841_s23 = sld [smem:[#allocation7 + $0x11]]  ;;  %v715_v10 = vld [vmem:[#allocation3 + $0x10] sm:$0x1] }
 0x243   :  { %v618_v19 = vmax.f32 %v617_v18, 0.0  ;;  %s1843_s3 = sld [smem:[#allocation7 + $0x12]]  ;;  %v726_v16 = vld [vmem:[#allocation3 + $0x11] sm:$0x1]  ;;  %s1845_s9 = sld [smem:[#allocation7 + $0x13]] }
 0x244   :  { %s2944_s18 = sld [smem:[#allocation7 + $0x14]] }
 0x247   :  { %v554_v48 = vld [vmem:[%s553_s5] sm:$0x1] }
 0x248   :  { %v555_v49 = vadd.f32 %v554_v48, %v552_v47 }
 0x24a   :  { %556 = vst [vmem:[%s553_s5] sm:$0x1] %v555_v49  ;;  %s625_s5 = scalar_lea.vmem [#allocation2], %s1823_s6  ;;  %s1836_s6 = sld [smem:[#allocation12 + $0xe]] }
 0x24b   :  { %v626_v22 = vld [vmem:[%s625_s5] sm:$0x1] }
 0x24c   :  { %v628_v25 = vadd.f32 %v627_v24, %v626_v22  ;;  %v737_v22 = vld [vmem:[#allocation3 + $0x12] sm:$0x1] }
 0x24e   :  { %v629_v26 = vmax.f32 %v628_v25, 0.0 }
 0x250   :  { %s696_s5 = scalar_lea.vmem [#allocation4], %s1836_s6  ;;  %s2949_s6 = sld [smem:[#allocation7 + $0x15]] }
 0x251   :  { %v565_v54 = vld [vmem:[%s564_s27] sm:$0x1] }
 0x252   :  { %v566_v55 = vadd.f32 %v565_v54, %v563_v53 }
 0x254   :  { %567 = vst [vmem:[%s564_s27] sm:$0x1] %v566_v55  ;;  %s636_s27 = scalar_lea.vmem [#allocation2], %s1825_s30  ;;  %s1838_s30 = sld [smem:[#allocation12 + $0xf]] }
 0x255   :  { %v637_v31 = vld [vmem:[%s636_s27] sm:$0x1] }
 0x256   :  { %v639_v33 = vadd.f32 %v638_v32, %v637_v31  ;;  %v748_v31 = vld [vmem:[#allocation3 + $0x13] sm:$0x1] }
 0x258   :  { %v640_v35 = vmax.f32 %v639_v33, 0.0  ;;  %v2159_v33 = vld [vmem:[#allocation24] ss:$8 sps:$4 sm:$0xff]  }
 0x25a   :  { %s707_s27 = scalar_lea.vmem [#allocation4], %s1838_s30  ;;  %s2955_s30 = sld [smem:[#allocation7 + $0x16]] }
 0x25b   :  { %v576_v60 = vld [vmem:[%s575_s2] sm:$0x1] }
 0x25c   :  { %v577_v61 = vadd.f32 %v576_v60, %v574_v59 }
 0x25e   :  { %578 = vst [vmem:[%s575_s2] sm:$0x1] %v577_v61  ;;  %s647_s2 = scalar_lea.vmem [#allocation2], %s1827_s11  ;;  %s1840_s11 = sld [smem:[#allocation12 + $0x10]] }
 0x25f   :  { %v648_v38 = vld [vmem:[%s647_s2] sm:$0x1] }
 0x260   :  { %v650_v40 = vadd.f32 %v649_v39, %v648_v38  ;;  %v2162_v38 = vld [vmem:[#allocation24 + $0x10] ss:$8 sps:$4 sm:$0xff]   ;;  %v2167_v39 = vld [vmem:[#allocation24 + $0x24] ss:$8 sps:$4 sm:$0xff]  }
 0x262   :  { %v651_v41 = vmax.f32 %v650_v40, 0.0 }
 0x264   :  { %s718_s2 = scalar_lea.vmem [#allocation4], %s1840_s11  ;;  %s1853_s11 = sld [smem:[#allocation7 + $0x17]] }
 0x265   :  { %v587_v2 = vld [vmem:[%s586_s29] sm:$0x1] }
 0x266   :  { %v588_v3 = vadd.f32 %v587_v2, %v585_v1 }
 0x268   :  { %589 = vst [vmem:[%s586_s29] sm:$0x1] %v588_v3  ;;  %s658_s29 = scalar_lea.vmem [#allocation2], %s1829_s26  ;;  %s1842_s26 = sld [smem:[#allocation12 + $0x11]] }
 0x269   :  { %v659_v44 = vld [vmem:[%s658_s29] sm:$0x1] }
 0x26a   :  { %v661_v46 = vadd.f32 %v660_v45, %v659_v44  ;;  %v2170_v45 = vld [vmem:[#allocation24 + $0x34] ss:$8 sps:$4 sm:$0xff]  }
 0x26c   :  { %v662_v47 = vmax.f32 %v661_v46, 0.0  ;;  %v759_v46 = vld [vmem:[#allocation3 + $0x14] sm:$0x1] }
 0x26e   :  { %s729_s29 = scalar_lea.vmem [#allocation4], %s1842_s26  ;;  %s1855_s26 = sld [smem:[#allocation7 + $0x18]] }
 0x26f   :  { %v598_v8 = vld [vmem:[%s597_s14] sm:$0x1] }
 0x270   :  { %v599_v9 = vadd.f32 %v598_v8, %v596_v7 }
 0x272   :  { %600 = vst [vmem:[%s597_s14] sm:$0x1] %v599_v9  ;;  %s669_s14 = scalar_lea.vmem [#allocation2], %s1831_s12  ;;  %s1844_s12 = sld [smem:[#allocation12 + $0x12]] }
 0x273   :  { %v670_v50 = vld [vmem:[%s669_s14] sm:$0x1] }
 0x274   :  { %v672_v52 = vadd.f32 %v671_v51, %v670_v50  ;;  %v2173_v50 = vld [vmem:[#allocation24 + $0x44] ss:$8 sps:$4 sm:$0xff]  }
 0x275   :  { %v2183_v51 = vld [vmem:[#allocation27 + $0x40] sm:$0xff]  }
 0x276   :  { %v673_v53 = vmax.f32 %v672_v52, 0.0  ;;  %v2184_v52 = vld [vmem:[#allocation27] sm:$0xff]   ;;  %1966 = vmatprep.subr.bf16.mxu1 %v2183_v51 }
 0x277   :  { %1967 = vmatpush3.bf16.msra.mxu1 %v2184_v52 }
 0x278   :  { %s740_s14 = scalar_lea.vmem [#allocation4], %s1844_s12  ;;  %s1857_s12 = sld [smem:[#allocation7 + $0x19]] }
 0x279   :  { %v609_v14 = vld [vmem:[%s608_s0] sm:$0x1] }
 0x27a   :  { %v610_v15 = vadd.f32 %v609_v14, %v607_v13 }
 0x27c   :  { %611 = vst [vmem:[%s608_s0] sm:$0x1] %v610_v15  ;;  %s680_s0 = scalar_lea.vmem [#allocation2], %s1833_s13  ;;  %s2942_s13 = sld [smem:[#allocation12 + $0x13]] }
 0x27d   :  { %v681_v56 = vld [vmem:[%s680_s0] sm:$0x1] }
 0x27e   :  { %v683_v58 = vadd.f32 %v682_v57, %v681_v56  ;;  %v2176_v56 = vld [vmem:[#allocation24 + $0x54] ss:$8 sps:$4 sm:$0xff]  }
 0x280   :  { %v684_v59 = vmax.f32 %v683_v58, 0.0  ;;  %v2186_v58 = vld [vmem:[#allocation27 + $0x8] sm:$0xff]  }
 0x282   :  { %s751_s0 = scalar_lea.vmem [#allocation4], %s2942_s13  ;;  %s1859_s13 = sld [smem:[#allocation7 + $0x1a]] }
 0x283   :  { %v620_v20 = vld [vmem:[%s619_s7] sm:$0x1] }
 0x284   :  { %v621_v21 = vadd.f32 %v620_v20, %v618_v19 }
 0x286   :  { %622 = vst [vmem:[%s619_s7] sm:$0x1] %v621_v21  ;;  %s691_s7 = scalar_lea.vmem [#allocation2], %s1835_s24  ;;  %s2946_s24 = sld [smem:[#allocation12 + $0x14]] }
 0x287   :  { %v692_v62 = vld [vmem:[%s691_s7] sm:$0x1] }
 0x288   :  { %v694_v0 = vadd.f32 %v693_v63, %v692_v62  ;;  %v2174_v63 = vld [vmem:[#allocation24 + $0x50] ss:$8 sps:$4 sm:$0xff]  }
 0x28a   :  { %v695_v1 = vmax.f32 %v694_v0, 0.0  ;;  %v2179_v0 = vld [vmem:[#allocation24 + $0x64] ss:$8 sps:$4 sm:$0xff]  }
 0x28c   :  { %s762_s7 = scalar_lea.vmem [#allocation4], %s2946_s24  ;;  %s1861_s24 = sld [smem:[#allocation7 + $0x1b]] }
 0x28d   :  { %v631_v28 = vld [vmem:[%s630_s8] sm:$0x1] }
 0x28e   :  { %v632_v30 = vadd.f32 %v631_v28, %v629_v26 }
 0x290   :  { %633 = vst [vmem:[%s630_s8] sm:$0x1] %v632_v30  ;;  %s702_s8 = scalar_lea.vmem [#allocation2], %s1837_s28  ;;  %s2952_s28 = sld [smem:[#allocation12 + $0x15]] }
 0x291   :  { %v703_v4 = vld [vmem:[%s702_s8] sm:$0x1] }
 0x292   :  { %v705_v6 = vadd.f32 %v704_v5, %v703_v4  ;;  %v2177_v4 = vld [vmem:[#allocation24 + $0x60] ss:$8 sps:$4 sm:$0xff]   ;;  %v2182_v5 = vld [vmem:[#allocation24 + $0x74] ss:$8 sps:$4 sm:$0xff]  }
 0x294   :  { %v706_v7 = vmax.f32 %v705_v6, 0.0  ;;  %v2190_v6 = vld [vmem:[#allocation27 + $0x18] sm:$0xff]  }
 0x296   :  { %s773_s8 = scalar_lea.vmem [#allocation4], %s2952_s28  ;;  %s1863_s28 = sld [smem:[#allocation7 + $0x1c]] }
 0x297   :  { %v642_v36 = vld [vmem:[%s641_s25] sm:$0x1] }
 0x298   :  { %v643_v37 = vadd.f32 %v642_v36, %v640_v35  ;;  %v2161_v35 = vld [vmem:[#allocation24 + $0x4] ss:$8 sps:$4 sm:$0xff]  }
 0x299   :  { %1002 = vmatprep.subr.bf16.mxu0 %v2161_v35 }
 0x29a   :  { %644 = vst [vmem:[%s641_s25] sm:$0x1] %v643_v37  ;;  %s713_s25 = scalar_lea.vmem [#allocation2], %s1839_s22  ;;  %v2164_v37 = vld [vmem:[#allocation24 + $0x14] ss:$8 sps:$4 sm:$0xff]   ;;  %1003 = vmatpush1.bf16.msra.mxu0 %v2159_v33  ;;  %s2958_s22 = sld [smem:[#allocation12 + $0x16]] }
 0x29b   :  { %v714_v11 = vld [vmem:[%s713_s25] sm:$0x1]  ;;  %1004 = vmatprep.subr.bf16.mxu0 %v2164_v37 }
 0x29c   :  { %v716_v12 = vadd.f32 %v715_v10, %v714_v11  ;;  %v2180_v10 = vld [vmem:[#allocation24 + $0x70] ss:$8 sps:$4 sm:$0xff]  }
 0x29e   :  { %v717_v13 = vmax.f32 %v716_v12, 0.0  ;;  %1005 = vmatpush1.bf16.msra.mxu0 %v2162_v38  ;;  %v781_v12 = vld [vmem:[#allocation3 + $0x16] sm:$0x1]  ;;  %v814_v38 = vld [vmem:[#allocation3 + $0x19] sm:$0x1] }
 0x29f   :  { %1006 = vmatprep.subr.bf16.mxu0 %v2167_v39 }
 0x2a0   :  { %s784_s25 = scalar_lea.vmem [#allocation4], %s2958_s22  ;;  %s1865_s22 = sld [smem:[#allocation7 + $0x1d]] }
 0x2a1   :  { %v653_v42 = vld [vmem:[%s652_s21] sm:$0x1] }
 0x2a2   :  { %v654_v43 = vadd.f32 %v653_v42, %v651_v41  ;;  %v2165_v42 = vld [vmem:[#allocation24 + $0x20] ss:$8 sps:$4 sm:$0xff]  }
 0x2a3   :  { %1007 = vmatpush1.bf16.msra.mxu0 %v2165_v42 }
 0x2a4   :  { %655 = vst [vmem:[%s652_s21] sm:$0x1] %v654_v43  ;;  %s724_s21 = scalar_lea.vmem [#allocation2], %s1841_s23  ;;  %v2608_v43 = vmov 0   ;;  %1008 = vmatprep.subr.bf16.mxu0 %v2170_v45  ;;  %s1854_s23 = sld [smem:[#allocation12 + $0x17]] }
 0x2a5   :  { %v725_v17 = vld [vmem:[%s724_s21] sm:$0x1]  ;;  %1034 = vmatprep.mubr.bf16.mxu0 %v2608_v43  ;;  %2139 = vset.pattern.permute.xlu0 %v2608_v43 }
 0x2a6   :  { %v727_v18 = vadd.f32 %v726_v16, %v725_v17  ;;  %v2962_v17 = vld [vmem:[#allocation6] sm:$0xff] }
 0x2a8   :  { %v728_v19 = vmax.f32 %v727_v18, 0.0 }
 0x2aa   :  { %s795_s21 = scalar_lea.vmem [#allocation4], %s1854_s23  ;;  %s1867_s23 = sld [smem:[#allocation7 + $0x1e]] }
 0x2ab   :  { %v664_v48 = vld [vmem:[%s663_s4] sm:$0x1] }
 0x2ac   :  { %v665_v49 = vadd.f32 %v664_v48, %v662_v47  ;;  %v2168_v48 = vld [vmem:[#allocation24 + $0x30] ss:$8 sps:$4 sm:$0xff]  }
 0x2ad   :  { %1009 = vmatpush1.bf16.msra.mxu0 %v2168_v48 }
 0x2ae   :  { %666 = vst [vmem:[%s663_s4] sm:$0x1] %v665_v49  ;;  %s735_s4 = scalar_lea.vmem [#allocation2], %s1843_s3  ;;  %1010 = vmatprep.subr.bf16.mxu0 %v2173_v50  ;;  %s1856_s3 = sld [smem:[#allocation12 + $0x18]]  ;;  %v836_v50 = vld [vmem:[#allocation3 + $0x1b] sm:$0x1] }
 0x2af   :  { %v736_v24 = vld [vmem:[%s735_s4] sm:$0x1] }
 0x2b0   :  { %v738_v25 = vadd.f32 %v737_v22, %v736_v24 }
 0x2b2   :  { %v739_v26 = vmax.f32 %v738_v25, 0.0 }
 0x2b4   :  { %s806_s4 = scalar_lea.vmem [#allocation4], %s1856_s3  ;;  %s1869_s3 = sld [smem:[#allocation7 + $0x1f]] }
 0x2b5   :  { %v675_v54 = vld [vmem:[%s674_s1] sm:$0x1] }
 0x2b6   :  { %v676_v55 = vadd.f32 %v675_v54, %v673_v53  ;;  %v2185_v53 = vld [vmem:[#allocation27 + $0x48] sm:$0xff]  }
 0x2b7   :  { %v2171_v54 = vld [vmem:[#allocation24 + $0x40] ss:$8 sps:$4 sm:$0xff]   ;;  %1968 = vmatprep.subr.bf16.mxu1 %v2185_v53 }
 0x2b8   :  { %677 = vst [vmem:[%s674_s1] sm:$0x1] %v676_v55  ;;  %s746_s1 = scalar_lea.vmem [#allocation2], %s1845_s9  ;;  %1011 = vmatpush1.bf16.msra.mxu0 %v2171_v54  ;;  %1969 = vmatpush3.bf16.msra.mxu1 %v2186_v58  ;;  %s1858_s9 = sld [smem:[#allocation12 + $0x19]] }
 0x2b9   :  { %v747_v32 = vld [vmem:[%s746_s1] sm:$0x1]  ;;  %1012 = vmatprep.subr.bf16.mxu0 %v2176_v56  ;;  %v847_v56 = vld [vmem:[#allocation3 + $0x1c] sm:$0x1] }
 0x2ba   :  { %v749_v36 = vadd.f32 %v748_v31, %v747_v32  ;;  %v803_v31 = vld [vmem:[#allocation3 + $0x18] sm:$0x1] }
 0x2bc   :  { %v750_v40 = vmax.f32 %v749_v36, 0.0  ;;  %1013 = vmatpush1.bf16.msra.mxu0 %v2174_v63 }
 0x2bd   :  { %1014 = vmatprep.subr.bf16.mxu0 %v2179_v0 }
 0x2be   :  { %s817_s1 = scalar_lea.vmem [#allocation4], %s1858_s9  ;;  %s878_s9 = scalar_lea.vmem [#allocation2], %s1869_s3 }
 0x2bf   :  { %v686_v60 = vld [vmem:[%s685_s10] sm:$0x1] }
 0x2c0   :  { %v687_v61 = vadd.f32 %v686_v60, %v684_v59  ;;  %v2187_v60 = vld [vmem:[#allocation27 + $0x50] sm:$0xff]   ;;  %1015 = vmatpush1.bf16.msra.mxu0 %v2177_v4  ;;  %v869_v4 = vld [vmem:[#allocation3 + $0x1e] sm:$0x1] }
 0x2c1   :  { %1970 = vmatprep.subr.bf16.mxu1 %v2187_v60  ;;  %1016 = vmatprep.subr.bf16.mxu0 %v2182_v5 }
 0x2c2   :  { %688 = vst [vmem:[%s685_s10] sm:$0x1] %v687_v61  ;;  %s757_s10 = scalar_lea.vmem [#allocation2], %s2944_s18  ;;  %v770_v61 = vld [vmem:[#allocation3 + $0x15] sm:$0x1]  ;;  %s1860_s18 = sld [smem:[#allocation12 + $0x1a]] }
 0x2c3   :  { %v758_v47 = vld [vmem:[%s757_s10] sm:$0x1] }
 0x2c4   :  { %v760_v49 = vadd.f32 %v759_v46, %v758_v47  ;;  %1017 = vmatpush1.bf16.msra.mxu0 %v2180_v10  ;;  %v880_v10 = vld [vmem:[#allocation3 + $0x1f] sm:$0x1] }
 0x2c5   :  { %2055 = vmatprep.subr.bf16.mxu0 %v2962_v17 }
 0x2c6   :  { %v761_v55 = vmax.f32 %v760_v49, 0.0 }
 0x2c8   :  { %s828_s10 = scalar_lea.vmem [#allocation4], %s1860_s18  ;;  %s1904_s18 = sld [smem:[#allocation13 + $0x1]] }
 0x2c9   :  { %v697_v2 = vld [vmem:[%s696_s5] sm:$0x1] }
 0x2ca   :  { %v698_v3 = vadd.f32 %v697_v2, %v695_v1  ;;  %v2188_v1 = vld [vmem:[#allocation27 + $0x10] sm:$0xff]  }
 0x2cb   :  { %1971 = vmatpush3.bf16.msra.mxu1 %v2188_v1 }
 0x2cc   :  { %699 = vst [vmem:[%s696_s5] sm:$0x1] %v698_v3  ;;  %s768_s5 = scalar_lea.vmem [#allocation2], %s2949_s6  ;;  %v2189_v3 = vld [vmem:[#allocation27 + $0x58] sm:$0xff]   ;;  %s1862_s6 = sld [smem:[#allocation12 + $0x1b]] }
 0x2cd   :  { %v769_v62 = vld [vmem:[%s768_s5] sm:$0x1]  ;;  %1972 = vmatprep.subr.bf16.mxu1 %v2189_v3 }
 0x2ce   :  { %v771_v2 = vadd.f32 %v770_v61, %v769_v62  ;;  %v858_v62 = vld [vmem:[#allocation3 + $0x1d] sm:$0x1] }
 0x2cf   :  { %1973 = vmatpush3.bf16.msra.mxu1 %v2190_v6 }
 0x2d2   :  { %s839_s5 = scalar_lea.vmem [#allocation4], %s1862_s6 }
 0x2d3   :  { %v708_v8 = vld [vmem:[%s707_s27] sm:$0x1] }
 0x2d4   :  { %v709_v9 = vadd.f32 %v708_v8, %v706_v7  ;;  %v772_v7 = vmax.f32 %v771_v2, 0.0  ;;  %v2191_v8 = vld [vmem:[#allocation27 + $0x60] sm:$0xff]  }
 0x2d5   :  { %1974 = vmatprep.subr.bf16.mxu1 %v2191_v8 }
 0x2d6   :  { %710 = vst [vmem:[%s707_s27] sm:$0x1] %v709_v9  ;;  %s779_s27 = scalar_lea.vmem [#allocation2], %s2955_s30  ;;  %s1864_s30 = sld [smem:[#allocation12 + $0x1c]] }
 0x2dd   :  { %v719_v14 = vld [vmem:[%s718_s2] sm:$0x1] }
 0x2de   :  { %v720_v15 = vadd.f32 %v719_v14, %v717_v13  ;;  %v780_v13 = vld [vmem:[%s779_s27] sm:$0x1]  ;;  %v2192_v14 = vld [vmem:[#allocation27 + $0x20] sm:$0xff]   ;;  %s850_s27 = scalar_lea.vmem [#allocation4], %s1864_s30 }
 0x2df   :  { %v782_v16 = vadd.f32 %v781_v12, %v780_v13  ;;  %1975 = vmatpush3.bf16.msra.mxu1 %v2192_v14 }
 0x2e0   :  { %721 = vst [vmem:[%s718_s2] sm:$0x1] %v720_v15  ;;  %v2193_v15 = vld [vmem:[#allocation27 + $0x68] sm:$0xff]   ;;  %s790_s2 = scalar_lea.vmem [#allocation2], %s1853_s11  ;;  %s1866_s11 = sld [smem:[#allocation12 + $0x1d]] }
 0x2e1   :  { %1976 = vmatprep.subr.bf16.mxu1 %v2193_v15  ;;  %v783_v18 = vmax.f32 %v782_v16, 0.0  ;;  %v791_v22 = vld [vmem:[%s790_s2] sm:$0x1] }
 0x2e6   :  { %s861_s2 = scalar_lea.vmem [#allocation4], %s1866_s11 }
 0x2e7   :  { %v730_v20 = vld [vmem:[%s729_s29] sm:$0x1] }
 0x2e8   :  { %v731_v21 = vadd.f32 %v730_v20, %v728_v19 }
 0x2ea   :  { %732 = vst [vmem:[%s729_s29] sm:$0x1] %v731_v21  ;;  %v792_v21 = vld [vmem:[#allocation3 + $0x17] sm:$0x1]  ;;  %s801_s29 = scalar_lea.vmem [#allocation2], %s1855_s26  ;;  %s1868_s26 = sld [smem:[#allocation12 + $0x1e]] }
 0x2eb   :  { %v793_v24 = vadd.f32 %v792_v21, %v791_v22  ;;  %v2194_v21 = vld [vmem:[#allocation27 + $0x28] sm:$0xff]   ;;  %v2195_v22 = vld [vmem:[#allocation27 + $0x70] sm:$0xff]  }
 0x2ec   :  { %1977 = vmatpush3.bf16.msra.mxu1 %v2194_v21  ;;  %v2211_v21 = vld [vmem:[%s3065_s15 + $0x20] sm:$0xff]  }
 0x2ed   :  { %v794_v25 = vmax.f32 %v793_v24, 0.0  ;;  %v2196_v24 = vld [vmem:[#allocation27 + $0x30] sm:$0xff]   ;;  %1978 = vmatprep.subr.bf16.mxu1 %v2195_v22 }
 0x2f0   :  { %1979 = vmatpush3.bf16.msra.mxu1 %v2196_v24 }
 0x2f1   :  { %v741_v28 = vld [vmem:[%s740_s14] sm:$0x1] }
 0x2f2   :  { %v742_v30 = vadd.f32 %v741_v28, %v739_v26 }
 0x2f4   :  { %743 = vst [vmem:[%s740_s14] sm:$0x1] %v742_v30  ;;  %v802_v30 = vld [vmem:[%s801_s29] sm:$0x1]  ;;  %s812_s14 = scalar_lea.vmem [#allocation2], %s1857_s12  ;;  %s1870_s12 = sld [smem:[#allocation12 + $0x1f]] }
 0x2f5   :  { %v804_v32 = vadd.f32 %v803_v31, %v802_v30  ;;  %v813_v37 = vld [vmem:[%s812_s14] sm:$0x1]  ;;  %s872_s29 = scalar_lea.vmem [#allocation4], %s1868_s26 }
 0x2f6   :  { %v815_v39 = vadd.f32 %v814_v38, %v813_v37 }
 0x2f7   :  { %v805_v33 = vmax.f32 %v804_v32, 0.0 }
 0x2fb   :  { %v752_v41 = vld [vmem:[%s751_s0] sm:$0x1] }
 0x2fc   :  { %v753_v44 = vadd.f32 %v752_v41, %v750_v40  ;;  %v816_v40 = vmax.f32 %v815_v39, 0.0 }
 0x2fe   :  { %754 = vst [vmem:[%s751_s0] sm:$0x1] %v753_v44  ;;  %s823_s0 = scalar_lea.vmem [#allocation2], %s1859_s13  ;;  %v825_v44 = vld [vmem:[#allocation3 + $0x1a] sm:$0x1]  ;;  %s1232_s13 = sld [smem:[#allocation13]] }
 0x2ff   :  { %v824_v43 = vld [vmem:[%s823_s0] sm:$0x1]  ;;  %s1906_s0 = sld [smem:[#allocation13 + $0x3]] }
 0x300   :  { %v826_v45 = vadd.f32 %v825_v44, %v824_v43 }
 0x302   :  { %v827_v46 = vmax.f32 %v826_v45, 0.0 }
 0x304   :  { %s1233_s14 = scalar_lea.vmem [#allocation6], %s1232_s13 }
 0x305   :  { %v763_v57 = vld [vmem:[%s762_s7] sm:$0x1] }
 0x306   :  { %v764_v59 = vadd.f32 %v763_v57, %v761_v55 }
 0x308   :  { %765 = vst [vmem:[%s762_s7] sm:$0x1] %v764_v59  ;;  %s834_s7 = scalar_lea.vmem [#allocation2], %s1861_s24  ;;  %s1239_s24 = scalar_lea.vmem [#allocation6], %s1904_s18 }
 0x309   :  { %v835_v49 = vld [vmem:[%s834_s7] sm:$0x1]  ;;  %s1915_s7 = sld [smem:[#allocation13 + $0xc]] }
 0x30a   :  { %v837_v51 = vadd.f32 %v836_v50, %v835_v49 }
 0x30c   :  { %v838_v52 = vmax.f32 %v837_v51, 0.0 }
 0x30f   :  { %v774_v9 = vld [vmem:[%s773_s8] sm:$0x1] }
 0x310   :  { %v775_v11 = vadd.f32 %v774_v9, %v772_v7  ;;  %v879_v9 = vld [vmem:[%s878_s9] sm:$0x1] }
 0x312   :  { %776 = vst [vmem:[%s773_s8] sm:$0x1] %v775_v11  ;;  %s845_s8 = scalar_lea.vmem [#allocation2], %s1863_s28  ;;  %v881_v11 = vadd.f32 %v880_v10, %v879_v9  ;;  %s1251_s28 = scalar_lea.vmem [#allocation6], %s1906_s0  ;;  %v2202_v9 = vld [vmem:[#allocation30 + $0x18] sm:$0xff]   ;;  %v2207_v10 = vld [vmem:[%s3065_s15] sm:$0xff]  }
 0x313   :  { %v846_v55 = vld [vmem:[%s845_s8] sm:$0x1]  ;;  %s2985_s8 = sld [smem:[#allocation13 + $0x5]]  ;;  %s1913_s0 = sld [smem:[#allocation13 + $0xa]] }
 0x314   :  { %v848_v57 = vadd.f32 %v847_v56, %v846_v55  ;;  %v882_v12 = vmax.f32 %v881_v11, 0.0  ;;  %v2208_v11 = vld [vmem:[%s3065_s15 + $0x8] sm:$0xff]  }
 0x316   :  { %v849_v58 = vmax.f32 %v848_v57, 0.0 }
 0x319   :  { %v785_v19 = vld [vmem:[%s784_s25] sm:$0x1] }
 0x31a   :  { %v786_v20 = vadd.f32 %v785_v19, %v783_v18 }
 0x31c   :  { %787 = vst [vmem:[%s784_s25] sm:$0x1] %v786_v20  ;;  %s856_s25 = scalar_lea.vmem [#allocation2], %s1865_s22  ;;  %s1305_s22 = scalar_lea.vmem [#allocation6], %s1915_s7 }
 0x31d   :  { %v857_v61 = vld [vmem:[%s856_s25] sm:$0x1] }
 0x31e   :  { %v859_v63 = vadd.f32 %v858_v62, %v857_v61 }
 0x320   :  { %v860_v0 = vmax.f32 %v859_v63, 0.0 }
 0x323   :  { %v796_v26 = vld [vmem:[%s795_s21] sm:$0x1] }
 0x324   :  { %v797_v28 = vadd.f32 %v796_v26, %v794_v25  ;;  %v2197_v25 = vld [vmem:[#allocation27 + $0x78] sm:$0xff]  }
 0x325   :  { %v2198_v26 = vld [vmem:[#allocation27 + $0x38] sm:$0xff]   ;;  %1980 = vmatprep.subr.bf16.mxu1 %v2197_v25 }
 0x326   :  { %798 = vst [vmem:[%s795_s21] sm:$0x1] %v797_v28  ;;  %s867_s21 = scalar_lea.vmem [#allocation2], %s1867_s23  ;;  %1981 = vmatpush3.bf16.msra.mxu1 %v2198_v26  ;;  %v2206_v26 = vld [vmem:[#allocation30 + $0x38] sm:$0xff]  }
 0x327   :  { %v868_v3 = vld [vmem:[%s867_s21] sm:$0x1]  ;;  %2075 = vmatprep.subr.bf16.mxu1 %v2962_v17 }
 0x328   :  { %v870_v5 = vadd.f32 %v869_v4, %v868_v3  ;;  %v2199_v3 = vld [vmem:[#allocation30] sm:$0xff]   ;;  %v2200_v4 = vld [vmem:[#allocation30 + $0x8] sm:$0xff]  }
 0x32a   :  { %v871_v6 = vmax.f32 %v870_v5, 0.0 }
 0x32d   :  { %v807_v35 = vld [vmem:[%s806_s4] sm:$0x1] }
 0x32e   :  { %v808_v36 = vadd.f32 %v807_v35, %v805_v33 }
 0x330   :  { %809 = vst [vmem:[%s806_s4] sm:$0x1] %v808_v36  ;;  %s883_s4 = scalar_lea.vmem [#allocation4], %s1870_s12  ;;  %s1263_s12 = scalar_lea.vmem [#allocation6], %s2985_s8 }
 0x331   :  { %s1917_s8 = sld [smem:[#allocation13 + $0xe]] }
 0x337   :  { %v818_v41 = vld [vmem:[%s817_s1] sm:$0x1]  ;;  %s1317_s23 = scalar_lea.vmem [#allocation6], %s1917_s8 }
 0x338   :  { %v819_v42 = vadd.f32 %v818_v41, %v816_v40 }
 0x33a   :  { %820 = vst [vmem:[%s817_s1] sm:$0x1] %v819_v42  ;;  %s1905_s1 = sld [smem:[#allocation13 + $0x2]] }
 0x340   :  { %s1245_s6 = scalar_lea.vmem [#allocation6], %s1905_s1  ;;  %s1912_s1 = sld [smem:[#allocation13 + $0x9]] }
 0x341   :  { %v829_v47 = vld [vmem:[%s828_s10] sm:$0x1] }
 0x342   :  { %v830_v48 = vadd.f32 %v829_v47, %v827_v46 }
 0x344   :  { %831 = vst [vmem:[%s828_s10] sm:$0x1] %v830_v48  ;;  %v1887_v48 = vld [vmem:[#allocation28] ss:$0 sm:$0xff]  ;;  %s1907_s10 = sld [smem:[#allocation13 + $0x4]] }
 0x34a   :  { %s1257_s11 = scalar_lea.vmem [#allocation6], %s1907_s10  ;;  %s1914_s10 = sld [smem:[#allocation13 + $0xb]] }
 0x34b   :  { %v840_v53 = vld [vmem:[%s839_s5] sm:$0x1] }
 0x34c   :  { %v841_v54 = vadd.f32 %v840_v53, %v838_v52 }
 0x34e   :  { %842 = vst [vmem:[%s839_s5] sm:$0x1] %v841_v54  ;;  %s1916_s5 = sld [smem:[#allocation13 + $0xd]] }
 0x350   :  { %s1299_s30 = scalar_lea.vmem [#allocation6], %s1914_s10 }
 0x355   :  { %v851_v59 = vld [vmem:[%s850_s27] sm:$0x1] }
 0x356   :  { %v852_v60 = vadd.f32 %v851_v59, %v849_v58  ;;  %v1234_v58 = vld [vmem:[%s1233_s14] sm:$0x1] }
 0x358   :  { %853 = vst [vmem:[%s850_s27] sm:$0x1] %v852_v60  ;;  %s1918_s27 = sld [smem:[#allocation13 + $0xf]] }
 0x35e   :  { %s1323_s25 = scalar_lea.vmem [#allocation6], %s1918_s27 }
 0x35f   :  { %v862_v1 = vld [vmem:[%s861_s2] sm:$0x1] }
 0x360   :  { %v863_v2 = vadd.f32 %v862_v1, %v860_v0 }
 0x362   :  { %864 = vst [vmem:[%s861_s2] sm:$0x1] %v863_v2  ;;  %s1909_s2 = sld [smem:[#allocation13 + $0x6]] }
 0x368   :  { %s1269_s13 = scalar_lea.vmem [#allocation6], %s1909_s2 }
 0x369   :  { %v873_v7 = vld [vmem:[%s872_s29] sm:$0x1] }
 0x36a   :  { %v874_v8 = vadd.f32 %v873_v7, %v871_v6 }
 0x36c   :  { %875 = vst [vmem:[%s872_s29] sm:$0x1] %v874_v8  ;;  %v2201_v8 = vld [vmem:[#allocation30 + $0x10] sm:$0xff]  }
 0x373   :  { %v884_v13 = vld [vmem:[%s883_s4] sm:$0x1] }
 0x374   :  { %v885_v14 = vadd.f32 %v884_v13, %v882_v12  ;;  %v2203_v12 = vld [vmem:[#allocation30 + $0x20] sm:$0xff]  }
 0x376   :  { %886 = vst [vmem:[%s883_s4] sm:$0x1] %v885_v14  ;;  %s1910_s4 = sld [smem:[#allocation13 + $0x7]] }
 0x37c   :  { %s1275_s18 = scalar_lea.vmem [#allocation6], %s1910_s4 }
 0x37d   :  { %v889_v15 = vld [vmem:[#allocation4] sm:$0xff]  ;;  %v890_v16 = vld [vmem:[#allocation4 + $0x8] sm:$0xff] }
 0x37e   :  { %v891_v18 = vadd.f32 %v889_v15, %v389_v27  ;;  %v892_v19 = vadd.f32 %v890_v16, %v390_v34  ;;  %v913_v27 = vshrl.u32 %v912_v23, 7  ;;  %v910_v34 = vld [vmem:[#allocation25] sm:$0x3]  ;;  %v2212_v23 = vld [vmem:[%s3065_s15 + $0x28] sm:$0xff]  }
 0x37f   :  { %v2209_v16 = vld [vmem:[%s3065_s15 + $0x10] sm:$0xff]  }
 0x380   :  { %v893_v20 = vpack.c.bf16 %v892_v19, %v891_v18  ;;  %v914_v29 = vsub.s32 0, %v913_v27  ;;  %v918_v28 = vsub.s32 1, %v913_v27  ;;  %v2204_v18 = vld [vmem:[#allocation30 + $0x28] sm:$0xff]   ;;  %v2210_v19 = vld [vmem:[%s3065_s15 + $0x18] sm:$0xff]  }
 0x382   :  { %1035 = vmatmul.mubr.bf16.vlgmr.msra.gmra.mrb[4].mxu0 %v893_v20  ;;  %v915_v30 = vrot.slane %v910_v34, %v914_v29  ;;  %v919_v31 = vrot.slane %v910_v34, %v918_v28  ;;  %v2205_v20 = vld [vmem:[#allocation30 + $0x30] sm:$0xff]  }
 0x383   :  { %2071 = vmatprep.mubr.msk.bf16.mxu0 %vm2607_vm0, %v2962_v17  ;;  %2056 = vmatpush3.bf16.msra.mxu0 %v2199_v3  ;;  %v2219_v3 = vld [vmem:[#allocation33 + $0x20] sm:$0xff]  }
 0x384   :  { %2057 = vmatprep.subr.bf16.mxu0 %v2962_v17 }
 0x387   :  { %2058 = vmatpush3.bf16.msra.mxu0 %v2200_v4  ;;  %v2220_v4 = vld [vmem:[#allocation33 + $0x28] sm:$0xff]  }
 0x388   :  { %2059 = vmatprep.subr.bf16.mxu0 %v2962_v17 }
 0x38b   :  { %2060 = vmatpush3.bf16.msra.mxu0 %v2201_v8 }
 0x38c   :  { %2061 = vmatprep.subr.bf16.mxu0 %v2962_v17 }
 0x38f   :  { %2062 = vmatpush3.bf16.msra.mxu0 %v2202_v9 }
 0x390   :  { %2063 = vmatprep.subr.bf16.mxu0 %v2962_v17 }
 0x393   :  { %2064 = vmatpush3.bf16.msra.mxu0 %v2203_v12 }
 0x394   :  { %2065 = vmatprep.subr.bf16.mxu0 %v2962_v17 }
 0x397   :  { %2066 = vmatpush3.bf16.msra.mxu0 %v2204_v18 }
 0x398   :  { %2067 = vmatprep.subr.bf16.mxu0 %v2962_v17 }
 0x39b   :  { %2068 = vmatpush3.bf16.msra.mxu0 %v2205_v20  ;;  %v1937_v20 = vld [vmem:[%s3067_s17] ss:$0 sm:$0xff] }
 0x39c   :  { %2069 = vmatprep.subr.bf16.mxu0 %v2962_v17 }
 0x39f   :  { %2070 = vmatpush3.bf16.msra.mxu0 %v2206_v26 }
 0x3a0   :  { %2095 = vmatprep.subr.bf16.mxu0 %v2962_v17 }
 0x455   :  { %v1036_v32 = vpop.f32.mrb[4].mxu0 }
 0x456   :  { %v1037_v33 = vadd.f32 %v1036_v32, %v915_v30  ;;  %v1038_v35 = vpop.f32.mrb[5].mxu0 }
 0x457   :  { %v1039_v36 = vadd.f32 %v1038_v35, %v919_v31  ;;  %v1040_v37 = vpop.f32.mrb[6].mxu0 }
 0x458   :  { %v1041_v38 = vadd.f32 %v1040_v37, %v915_v30  ;;  %v1042_v39 = vpop.f32.mrb[7].mxu0  ;;  %v1045_v41 = vmax.f32 %v1037_v33, 0.0 }
 0x459   :  { %v1043_v40 = vadd.f32 %v1042_v39, %v919_v31  ;;  %v1046_v43 = vmax.f32 %v1039_v36, 0.0 }
 0x45a   :  { %v1047_v42 = vmax.f32 %v1041_v38, 0.0 }
 0x45b   :  { %v1048_v44 = vmax.f32 %v1043_v40, 0.0 }
 0x45c   :  { %v1049_v45 = vpack.c.bf16 %v1047_v42, %v1045_v41 }
 0x45d   :  { %v1050_v46 = vpack.c.bf16 %v1048_v44, %v1046_v43 }
 0x45f   :  { %1218 = vmatprep.mubr.bf16.mxu1 %v1050_v46 }
 0x460   :  { %1219 = vmatmul.mubr.bf16.vlgmr.msra.gmra.mrb[4].mxu1 %v1049_v45 }
 0x461   :  { %2091 = vmatprep.mubr.msk.bf16.mxu1 %vm2607_vm0, %v2962_v17  ;;  %2076 = vmatpush3.bf16.msra.mxu1 %v2207_v10 }
 0x462   :  { %2077 = vmatprep.subr.bf16.mxu1 %v2962_v17 }
 0x465   :  { %2078 = vmatpush3.bf16.msra.mxu1 %v2208_v11 }
 0x466   :  { %2079 = vmatprep.subr.bf16.mxu1 %v2962_v17 }
 0x469   :  { %2080 = vmatpush3.bf16.msra.mxu1 %v2209_v16 }
 0x46a   :  { %2081 = vmatprep.subr.bf16.mxu1 %v2962_v17 }
 0x46d   :  { %2082 = vmatpush3.bf16.msra.mxu1 %v2210_v19 }
 0x46e   :  { %2083 = vmatprep.subr.bf16.mxu1 %v2962_v17 }
 0x471   :  { %2084 = vmatpush3.bf16.msra.mxu1 %v2211_v21 }
 0x472   :  { %2085 = vmatprep.subr.bf16.mxu1 %v2962_v17 }
 0x475   :  { %2086 = vmatpush3.bf16.msra.mxu1 %v2212_v23 }
 0x476   :  { %2087 = vmatprep.subr.bf16.mxu1 %v2962_v17 }
 0x533   :  { %v1982_v47 = vpop.f32.mrb[4].mxu1 }
 0x534   :  { %v1983_v49 = vpop.f32.mrb[5].mxu1 }
 0x535   :  { %v1984_v50 = vadd.f32 %v1983_v49, %v1982_v47  ;;  %v1985_v51 = vpop.f32.mrb[6].mxu1 }
 0x536   :  { %v1986_v52 = vpop.f32.mrb[7].mxu1 }
 0x537   :  { %v1221_v53 = vadd.f32 %v1984_v50, %v1887_v48  ;;  %v1987_v54 = vadd.f32 %v1986_v52, %v1985_v51 }
 0x539   :  { %v1227_v55 = vmax.f32 %v1221_v53, 0.0  ;;  %v1224_v56 = vadd.f32 %v1987_v54, %v1887_v48 }
 0x53b   :  { %1229 = vst [vmem:[#allocation5] sm:$0xff] %v1227_v55  ;;  %v1228_v57 = vmax.f32 %v1224_v56, 0.0 }
 0x53d   :  { %1230 = vst [vmem:[#allocation5 + $0x8] sm:$0xff] %v1228_v57 }
 0x542   :  { %v1235_v59 = vld [vmem:[#allocation5] sm:$0x1]  ;;  %v1241_v62 = vld [vmem:[#allocation5 + $0x1] sm:$0x1]  ;;  %v1247_v1 = vld [vmem:[#allocation5 + $0x2] sm:$0x1] }
 0x543   :  { %v1236_v60 = vadd.f32 %v1235_v59, %v1234_v58  ;;  %v1253_v6 = vld [vmem:[#allocation5 + $0x3] sm:$0x1]  ;;  %v1259_v14 = vld [vmem:[#allocation5 + $0x4] sm:$0x1]  ;;  %v1265_v24 = vld [vmem:[#allocation5 + $0x5] sm:$0x1] }
 0x544   :  { %v1271_v29 = vld [vmem:[#allocation5 + $0x6] sm:$0x1]  ;;  %v1277_v30 = vld [vmem:[#allocation5 + $0x7] sm:$0x1]  ;;  %v1283_v33 = vld [vmem:[#allocation5 + $0x8] sm:$0x1] }
 0x545   :  { %1237 = vst [vmem:[%s1233_s14] sm:$0x1] %v1236_v60  ;;  %s1911_s14 = sld [smem:[#allocation13 + $0x8]]  ;;  %v1289_v37 = vld [vmem:[#allocation5 + $0x9] sm:$0x1]  ;;  %v1295_v40 = vld [vmem:[#allocation5 + $0xa] sm:$0x1] }
 0x546   :  { %v1301_v43 = vld [vmem:[#allocation5 + $0xb] sm:$0x1]  ;;  %v1307_v46 = vld [vmem:[#allocation5 + $0xc] sm:$0x1]  ;;  %v1313_v49 = vld [vmem:[#allocation5 + $0xd] sm:$0x1] }
 0x547   :  { %v1319_v52 = vld [vmem:[#allocation5 + $0xe] sm:$0x1]  ;;  %v1325_v55 = vld [vmem:[#allocation5 + $0xf] sm:$0x1]  ;;  %v2213_v59 = vld [vmem:[%s3065_s15 + $0x30] sm:$0xff]  }
 0x548   :  { %2088 = vmatpush3.bf16.msra.mxu1 %v2213_v59  ;;  %v2214_v60 = vld [vmem:[%s3065_s15 + $0x38] sm:$0xff]  }
 0x549   :  { %2089 = vmatprep.subr.bf16.mxu1 %v2962_v17 }
 0x54c   :  { %v1240_v61 = vld [vmem:[%s1239_s24] sm:$0x1]  ;;  %2090 = vmatpush3.bf16.msra.mxu1 %v2214_v60 }
 0x54d   :  { %v1242_v63 = vadd.f32 %v1241_v62, %v1240_v61  ;;  %v1442_v61 = vld [vmem:[%s3070_s20] sm:$0xff] }
 0x54e   :  { %v2215_v62 = vld [vmem:[#allocation33] sm:$0xff]  }
 0x54f   :  { %1243 = vst [vmem:[%s1239_s24] sm:$0x1] %v1242_v63  ;;  %s1281_s24 = scalar_lea.vmem [#allocation6], %s1911_s14  ;;  %v1443_v63 = vmul.f32 10.0, %v1442_v61 }
 0x551   :  { %1464 = vperm.xlu0 %2139, %v1443_v63  }
 0x556   :  { %v1246_v0 = vld [vmem:[%s1245_s6] sm:$0x1] }
 0x557   :  { %v1248_v2 = vadd.f32 %v1247_v1, %v1246_v0  ;;  %v2216_v0 = vld [vmem:[#allocation33 + $0x8] sm:$0xff]   ;;  %v2217_v1 = vld [vmem:[#allocation33 + $0x10] sm:$0xff]  }
 0x559   :  { %1249 = vst [vmem:[%s1245_s6] sm:$0x1] %v1248_v2  ;;  %s1287_s6 = scalar_lea.vmem [#allocation6], %s1912_s1  ;;  %v2218_v2 = vld [vmem:[#allocation33 + $0x18] sm:$0xff]  }
 0x560   :  { %v1252_v5 = vld [vmem:[%s1251_s28] sm:$0x1] }
 0x561   :  { %v1254_v7 = vadd.f32 %v1253_v6, %v1252_v5  ;;  %v1919_v5 = vld [vmem:[#allocation31] ss:$0 sm:$0xff] }
 0x563   :  { %1255 = vst [vmem:[%s1251_s28] sm:$0x1] %v1254_v7  ;;  %s1293_s28 = scalar_lea.vmem [#allocation6], %s1913_s0 }
 0x56a   :  { %v1258_v13 = vld [vmem:[%s1257_s11] sm:$0x1] }
 0x56b   :  { %v1260_v15 = vadd.f32 %v1259_v14, %v1258_v13  ;;  %v2221_v13 = vld [vmem:[#allocation33 + $0x30] sm:$0xff]   ;;  %v2222_v14 = vld [vmem:[#allocation33 + $0x38] sm:$0xff]  }
 0x56d   :  { %1261 = vst [vmem:[%s1257_s11] sm:$0x1] %v1260_v15  ;;  %s1311_s11 = scalar_lea.vmem [#allocation6], %s1916_s5  ;;  %v1928_v15 = vld [vmem:[%s3066_s16] ss:$0 sm:$0xff]  ;;  %s2609_s16 = smov [#allocation34]  }
 0x574   :  { %v1264_v22 = vld [vmem:[%s1263_s12] sm:$0x1] }
 0x575   :  { %v1266_v25 = vadd.f32 %v1265_v24, %v1264_v22 }
 0x577   :  { %1267 = vst [vmem:[%s1263_s12] sm:$0x1] %v1266_v25 }
 0x57e   :  { %v1270_v27 = vld [vmem:[%s1269_s13] sm:$0x1] }
 0x57f   :  { %v1272_v34 = vadd.f32 %v1271_v29, %v1270_v27 }
 0x581   :  { %1273 = vst [vmem:[%s1269_s13] sm:$0x1] %v1272_v34 }
 0x588   :  { %v1276_v28 = vld [vmem:[%s1275_s18] sm:$0x1] }
 0x589   :  { %v1278_v31 = vadd.f32 %v1277_v30, %v1276_v28 }
 0x58b   :  { %1279 = vst [vmem:[%s1275_s18] sm:$0x1] %v1278_v31  ;;  %s1690_s18 = sshll.u32 %s2609_s16, 4  ;;  %s1691_s18 = int_to_ptr.vmem [resolvable:$true] %s1690_s18 }
 0x58c   :  { %s2542_s17 = scalar_lea.vmem %s1691_s18, 128  ;;  %p2547_p4 = scmp.lt.s32.totalorder %s1691_s18, %s1691_s18 }
 0x58d   :  { %p2543_p3 = scmp.ne.s32.totalorder %s1691_s18, %s2542_s17  ;;  %p2548_p5 = scmp.lt.s32.totalorder %s2542_s17, %s2542_s17 }
 0x58f   :  { %p2549_p6 = por %p2548_p5, %p2547_p4 }
 0x591   :  { %p2550_p7 = pnand %p2549_p6, %p2543_p3 }
 0x592   :  { %v1282_v32 = vld [vmem:[%s1281_s24] sm:$0x1] }
 0x593   :  { %v1284_v35 = vadd.f32 %v1283_v33, %v1282_v32 }
 0x595   :  { %1285 = vst [vmem:[%s1281_s24] sm:$0x1] %v1284_v35 }
 0x59c   :  { %v1288_v36 = vld [vmem:[%s1287_s6] sm:$0x1] }
 0x59d   :  { %v1290_v38 = vadd.f32 %v1289_v37, %v1288_v36 }
 0x59f   :  { %1291 = vst [vmem:[%s1287_s6] sm:$0x1] %v1290_v38 }
 0x5a6   :  { %v1294_v39 = vld [vmem:[%s1293_s28] sm:$0x1] }
 0x5a7   :  { %v1296_v41 = vadd.f32 %v1295_v40, %v1294_v39 }
 0x5a9   :  { %1297 = vst [vmem:[%s1293_s28] sm:$0x1] %v1296_v41 }
 0x5b0   :  { %v1300_v42 = vld [vmem:[%s1299_s30] sm:$0x1] }
 0x5b1   :  { %v1302_v44 = vadd.f32 %v1301_v43, %v1300_v42 }
 0x5b3   :  { %1303 = vst [vmem:[%s1299_s30] sm:$0x1] %v1302_v44 }
 0x5ba   :  { %v1306_v45 = vld [vmem:[%s1305_s22] sm:$0x1] }
 0x5bb   :  { %v1308_v47 = vadd.f32 %v1307_v46, %v1306_v45 }
 0x5bd   :  { %1309 = vst [vmem:[%s1305_s22] sm:$0x1] %v1308_v47 }
 0x5c4   :  { %v1312_v48 = vld [vmem:[%s1311_s11] sm:$0x1] }
 0x5c5   :  { %v1314_v50 = vadd.f32 %v1313_v49, %v1312_v48 }
 0x5c7   :  { %1315 = vst [vmem:[%s1311_s11] sm:$0x1] %v1314_v50 }
 0x5ce   :  { %v1318_v51 = vld [vmem:[%s1317_s23] sm:$0x1] }
 0x5cf   :  { %v1320_v53 = vadd.f32 %v1319_v52, %v1318_v51 }
 0x5d0   :  { %v1465_v16 = vpop.permute.xlu0 %1464 }
 0x5d1   :  { %1321 = vst [vmem:[%s1317_s23] sm:$0x1] %v1320_v53  ;;  %v1473_v18 = vmul.f32 %v1928_v15, %v1465_v16 }
 0x5d8   :  { %v1324_v54 = vld [vmem:[%s1323_s25] sm:$0x1] }
 0x5d9   :  { %v1326_v56 = vadd.f32 %v1325_v55, %v1324_v54 }
 0x5db   :  { %1327 = vst [vmem:[%s1323_s25] sm:$0x1] %v1326_v56 }
 0x5e2   :  { %v1328_v57 = vld [vmem:[#allocation6] sm:$0xff] }
 0x5e3   :  { %v1329_v58 = vpack.c.bf16 %v1328_v57, %v1328_v57 }
 0x5e5   :  { %2072 = vmatmul.mubr.bf16.vlgmr.msra.gmra.mrb[8].mxu0 %v1329_v58 }
 0x5e6   :  { %2111 = vmatprep.mubr.msk.bf16.mxu0 %vm2607_vm0, %v2962_v17  ;;  %2096 = vmatpush3.bf16.msra.mxu0 %v2215_v62 }
 0x5e7   :  { %2097 = vmatprep.subr.bf16.mxu0 %v2962_v17 }
 0x5ea   :  { %2098 = vmatpush3.bf16.msra.mxu0 %v2216_v0 }
 0x5eb   :  { %2099 = vmatprep.subr.bf16.mxu0 %v2962_v17 }
 0x5ee   :  { %2100 = vmatpush3.bf16.msra.mxu0 %v2217_v1 }
 0x5ef   :  { %2101 = vmatprep.subr.bf16.mxu0 %v2962_v17 }
 0x5f2   :  { %2102 = vmatpush3.bf16.msra.mxu0 %v2218_v2 }
 0x5f3   :  { %2103 = vmatprep.subr.bf16.mxu0 %v2962_v17 }
 0x5f6   :  { %2104 = vmatpush3.bf16.msra.mxu0 %v2219_v3 }
 0x5f7   :  { %2105 = vmatprep.subr.bf16.mxu0 %v2962_v17 }
 0x5fa   :  { %2106 = vmatpush3.bf16.msra.mxu0 %v2220_v4 }
 0x5fb   :  { %2107 = vmatprep.subr.bf16.mxu0 %v2962_v17 }
 0x5fe   :  { %2108 = vmatpush3.bf16.msra.mxu0 %v2221_v13 }
 0x5ff   :  { %2109 = vmatprep.subr.bf16.mxu0 %v2962_v17  ;;  %v1938_v17 = vld [vmem:[%s3069_s19] ss:$0 sm:$0xff] }
 0x602   :  { %2110 = vmatpush3.bf16.msra.mxu0 %v2222_v14 }
 0x6b8   :  { %v1435_v6 = vpop.f32.mrb[8].mxu0 }
 0x6b9   :  { %v1436_v7 = vadd.f32 %v1919_v5, %v1435_v6  ;;  %v2073_v8 = vpop.f32.mrb[9].mxu0 }
 0x6ba   :  { %v1438_v9 = vpop.f32.mrb[10].mxu0 }
 0x6bb   :  { %v1441_v10 = vmax.f32 %v1436_v7, 0.0  ;;  %v2074_v11 = vpop.f32.mrb[11].mxu0 }
 0x6bd   :  { %v1444_v12 = vpack.c.bf16 %v1441_v10, %v1441_v10 }
 0x6bf   :  { %2092 = vmatmul.mubr.bf16.vlgmr.msra.gmra.mrb[8].mxu1 %v1444_v12 }
 0x792   :  { %v1556_v19 = vpop.f32.mrb[8].mxu1 }
 0x793   :  { %v1557_v21 = vadd.f32 %v1556_v19, %v1473_v18  ;;  %v2093_v22 = vpop.f32.mrb[9].mxu1 }
 0x794   :  { %v1559_v24 = vpop.f32.mrb[10].mxu1 }
 0x795   :  { %v1569_v25 = vadd.f32 %v1937_v20, %v1557_v21  ;;  %v2094_v26 = vpop.f32.mrb[11].mxu1 }
 0x797   :  { %v1570_v23 = vmax.f32 %v1569_v25, 0.0 }
 0x799   :  { %v1571_v27 = vpack.c.bf16 %v1570_v23, %v1570_v23 }
 0x79b   :  { %2112 = vmatmul.mubr.bf16.vlgmr.msra.gmra.mrb[12].mxu0 %v1571_v27 }
 0x86e   :  { %v1677_v29 = vpop.f32.mrb[12].mxu0 }
 0x86f   :  { %v1678_v34 = vadd.f32 %v1938_v17, %v1677_v29  ;;  %v2113_v28 = vpop.f32.mrb[13].mxu0 }
 0x870   :  { %v1680_v30 = vpop.f32.mrb[14].mxu0 }
 0x871   :  { %1683 = vst [vmem:[#allocation34] sm:$0xff] %v1678_v34  ;;  %v2114_v31 = vpop.f32.mrb[15].mxu0 }
 0x872   :  { %2553 = shalt.err (!%p2550_p7)
}
 0x873   :  { %s3091_s0 = sld [smem:[#allocation52_spill]] }
 0x879   :  { %s2554_s19 = scalar_lea.hbm %s3091_s0, 128 }
 0x87a   :  { %p2555_p8 = scmp.ne.s32.totalorder %s3091_s0, %s2554_s19  ;;  %p2558_p9 = scmp.lt.u32.totalorder %s2554_s19, %s3091_s0 }
 0x87c   :  { %p2560_p10 = pnand %p2558_p9, %p2555_p8 }
 0x87e   :  { %2563 = shalt.err (!%p2560_p10)
}
 0x87f   :  { %1693 = dma.vmem_to_hbm [thread:$0]  %s1691_s18, 128, %s3091_s0, [#allocation9]  }
 0x880   :  { %2584 = dma.done.wait [#allocation9], 128  }
 0x881   :  { %2585 = vsyncadd [#allocation9], 4294967168 }
 0x882   :  { %1697 = vsyncpa [#allocation8], 1 }
 0x883   :  { %1698 = vsyncpa [#allocation17], 1 }
 0x884   :  { %1699 = vsyncpa [#allocation20], 1 }
 0x885   :  { %1700 = vsyncpa [#allocation23], 1 }
 0x886   :  { %1701 = vsyncpa [#allocation26], 1 }
 0x887   :  { %1702 = vsyncpa [#allocation29], 1 }
 0x888   :  { %1703 = vsyncpa [#allocation32], 1 }
 0x889   :  { %1704 = vsyncpa [#allocation9], 1 }
 0x88a   :  { %1705 = vsyncpa [#allocation10], 1 }
 0x88b   :  { %1706 = vsyncpa [#allocation14], 1 }
 0x88c   :  { %1707 = vsyncpa [#allocation11], 1 }

</bundles_post_ra>
